<compile_context>
chip_gen: v7x
topology: tpu7x:2x2x1
jax: 0.10.0
libtpu: 0.0.40
codegen_flags: <defaults>
</compile_context>

<pallas_src>
import jax
import jax.numpy as jnp
from jax import lax
from jax.experimental import pallas as pl
from jax.experimental.pallas import tpu as pltpu

OH = OW = 15      # conv output spatial size (32x32 input, 3x3 kernel, stride 2)
PH = PW = 5       # pooled spatial size
NPOOL = PH * PW   # 25 pooled positions
KWIN = 9          # elements per 3x3 pooling window
CONV_C = 32       # conv output channels
TB_MAX = 32       # preferred batch-tile size
NCP = 128         # fc2 output width padded to a full lane group


def _round_up(n, m):
    return ((n + m - 1) // m) * m


# ----------------------------- Pallas kernel -------------------------------- #

def fused_cnn_kernel(p_ref, wc_ref, consts_ref, w1_ref, w2_ref, o_ref, f_ref):
    tb, ncp = o_ref.shape
    cc = wc_ref.shape[1]               # 32 conv channels
    n_win = p_ref.shape[0]             # 9 conv outputs per pooling window
    n_rows = p_ref.shape[1]            # tb * 25 (pooled_pos major, image minor)
    n_pool = n_rows // tb              # 25 pooled positions

    # ---- conv (im2col matmul) + bias + ReLU fused with the 3x3 pool sum -----
    # p_ref[k] holds, for every (pooled_position, image) row, the im2col patch
    # of the k-th conv output inside that pooling window, so pooling is just a
    # 9-term accumulation of (tb*25, C*9)@(C*9, 32) MXU matmuls.  BN and the
    # 1/9 pooling scale are folded into fc1 on the host; elementwise math f32.
    cbias = jnp.broadcast_to(consts_ref[0:1, 0:cc], (n_rows, cc))
    pooled = jnp.maximum(
        jnp.dot(p_ref[0], wc_ref[...], preferred_element_type=jnp.float32) + cbias,
        0.0)
    for k in range(1, n_win):
        zk = jnp.dot(p_ref[k], wc_ref[...], preferred_element_type=jnp.float32)
        pooled = pooled + jnp.maximum(zk + cbias, 0.0)        # (tb*25, 32) f32

    # ---- flatten to a lane-dense (tb, 800) bf16 scratch ----------------------
    # column order is (pooled_pos, channel); fc1's weight rows are permuted to
    # match on the host.  The 25 column-block stores exactly cover f_ref.
    for pp in range(n_pool):
        f_ref[:, pp * cc:(pp + 1) * cc] = (
            pooled[pp * tb:(pp + 1) * tb, :].astype(jnp.bfloat16))

    # ---- dropout (eval identity) + fc1 + ReLU + fc2 (N padded to 128) --------
    h = jnp.dot(f_ref[...], w1_ref[...], preferred_element_type=jnp.float32)
    h = jnp.maximum(h + consts_ref[1:2, 0:h.shape[1]], 0.0)
    out = jnp.dot(h.astype(jnp.bfloat16), w2_ref[...],
                  preferred_element_type=jnp.float32)
    o_ref[...] = out + consts_ref[2:3, 0:ncp]


# ------------------------------ host-side glue ------------------------------ #

def _make_patches(x, tb):
    """im2col for the 3x3/stride-2 conv with rows pre-ordered for the fused pool.

    Returns (9, n_tiles*25*tb, C*9) bf16: axis 0 is the position inside the
    3x3 pooling window; the middle axis is ordered (tile, pooled_pos, image)."""
    b, c, h, w = x.shape
    oh = (h - 3) // 2 + 1
    ow = (w - 3) // 2 + 1
    if (oh, ow) != (OH, OW):
        raise ValueError("fc1(in_features=800) implies a 15x15 conv output (32x32 input)")
    cols = []
    for kh in range(3):
        for kw in range(3):
            cols.append(x[:, :, kh:kh + 2 * oh - 1:2, kw:kw + 2 * ow - 1:2])
    p = jnp.stack(cols, axis=2)                             # (B, C, 9, OH, OW)
    p = jnp.transpose(p, (0, 3, 4, 1, 2)).reshape(b, oh, ow, c * 9)
    p = p.reshape(b, PH, 3, PW, 3, c * 9)                   # (B, ph, dh, pw, dw, K)
    p = jnp.transpose(p, (2, 4, 0, 1, 3, 5))                # (dh, dw, B, ph, pw, K)
    nt = b // tb
    p = p.reshape(KWIN, nt, tb, NPOOL, c * 9)               # (9, nt, TB, 25, K)
    p = jnp.transpose(p, (0, 1, 3, 2, 4))                   # (9, nt, 25, TB, K)
    return p.reshape(KWIN, nt * NPOOL * tb, c * 9).astype(jnp.bfloat16)


def prepare_params(params, eps=1e-5):
    """One-time parameter folding (outside the per-call path): fold eval-mode
    BatchNorm and the 1/9 pooling scale into fc1, permute fc1 rows to match the
    kernel's (pooled_pos, channel) flatten order, pad fc2's N to 128, pack the
    small per-channel biases into a single (8,128) buffer, cast weights bf16."""
    num_classes = params["fc2_w"].shape[0]
    linear_size = params["fc1_w"].shape[0]
    assert linear_size <= 128 and num_classes <= NCP, "bias packing assumes <=128"
    assert params["fc1_w"].shape[1] == NPOOL * CONV_C

    wc = params["conv_w"].reshape(CONV_C, -1).T.astype(jnp.bfloat16)      # (C*9, 32)

    scale = params["bn_gamma"] / jnp.sqrt(params["bn_var"] + eps)          # (32,)
    shift = params["bn_beta"] - params["bn_mean"] * scale                  # (32,)
    w1 = params["fc1_w"]                                                   # (128, 800)
    w1p = jnp.transpose(w1.reshape(linear_size, CONV_C, PH, PW), (2, 3, 1, 0))
    w1p = w1p * (scale / float(KWIN))[None, None, :, None]                 # fold BN + 1/9
    w1p = w1p.reshape(NPOOL * CONV_C, linear_size).astype(jnp.bfloat16)    # rows: (pp, c)
    b1 = params["fc1_b"] + jnp.einsum(
        "c,fc->f", shift, w1.reshape(linear_size, CONV_C, NPOOL).sum(-1))

    w2 = jnp.zeros((linear_size, NCP), jnp.bfloat16)
    w2 = w2.at[:, :num_classes].set(params["fc2_w"].T.astype(jnp.bfloat16))

    # row 0 = conv bias, row 1 = folded fc1 bias, row 2 = fc2 bias (padded)
    consts = jnp.zeros((8, 128), jnp.float32)
    consts = consts.at[0, :CONV_C].set(params["conv_b"])
    consts = consts.at[1, :linear_size].set(b1)
    consts = consts.at[2, :num_classes].set(params["fc2_b"])

    return {"wc": wc, "consts": consts, "w1": w1p, "w2": w2}


def model_forward(x, prep, *, num_classes):
    """Forward pass matching PyTorch Model.forward (eval mode)."""
    batch, c_in = x.shape[0], x.shape[1]
    k_feat = c_in * 9

    # adaptive batch tile: shrink for tiny batches, cap at TB_MAX so realistic
    # batches produce >=2 grid steps (v7x megacore can shard the grid axis)
    tb = min(TB_MAX, _round_up(batch, 8))
    bp = _round_up(batch, tb)
    if bp != batch:
        x = jnp.concatenate(
            [x, jnp.zeros((bp - batch,) + x.shape[1:], x.dtype)], axis=0)
    nt = bp // tb
    m_rows = tb * NPOOL

    patches = _make_patches(x, tb)                       # (9, nt*25*tb, C*9) bf16

    out = pl.pallas_call(
        fused_cnn_kernel,
        out_shape=jax.ShapeDtypeStruct((bp, NCP), jnp.float32),
        grid=(nt,),
        in_specs=[
            pl.BlockSpec((KWIN, m_rows, k_feat), lambda i: (0, i, 0)),  # patches (tiled)
            pl.BlockSpec(prep["wc"].shape, lambda i: (0, 0)),           # conv weight
            pl.BlockSpec(prep["consts"].shape, lambda i: (0, 0)),       # packed biases
            pl.BlockSpec(prep["w1"].shape, lambda i: (0, 0)),           # fc1 weight (folded)
            pl.BlockSpec(prep["w2"].shape, lambda i: (0, 0)),           # fc2 weight (padded)
        ],
        out_specs=pl.BlockSpec((tb, NCP), lambda i: (i, 0)),
        scratch_shapes=[pltpu.VMEM((tb, NPOOL * CONV_C), jnp.bfloat16)],
        compiler_params=pltpu.CompilerParams(
            dimension_semantics=("parallel",)),
    )(patches, prep["wc"], prep["consts"], prep["w1"], prep["w2"])

    return out[:batch, :num_classes]


# ------------------------------ pure-JAX reference -------------------------- #

def model_reference(x, params):
    eps = 1e-5
    z = lax.conv_general_dilated(
        x, params["conv_w"], window_strides=(2, 2), padding="VALID",
        dimension_numbers=("NCHW", "OIHW", "NCHW"),
        precision=lax.Precision.HIGHEST)
    z = z + params["conv_b"].reshape(1, -1, 1, 1)
    z = jnp.maximum(z, 0.0)
    scale = params["bn_gamma"] / jnp.sqrt(params["bn_var"] + eps)
    shift = params["bn_beta"] - params["bn_mean"] * scale
    z = z * scale.reshape(1, -1, 1, 1) + shift.reshape(1, -1, 1, 1)
    b, c, h, w = z.shape
    z = z.reshape(b, c, h // 3, 3, w // 3, 3).mean(axis=(3, 5))      # avg_pool2d(3)
    f = z.reshape(b, -1)                                             # NCHW flatten
    h1 = jnp.maximum(f @ params["fc1_w"].T + params["fc1_b"], 0.0)
    return h1 @ params["fc2_w"].T + params["fc2_b"]


# ----------------------------------- main ------------------------------------ #

if __name__ == "__main__":
    num_channels, num_classes = 3, 10
    batch, height, width = 2, 32, 32   # 32x32 spatial is implied by fc1 in_features = 800

    key = jax.random.PRNGKey(0)
    keys = jax.random.split(key, 11)
    params = {
        "conv_w":  0.10 * jax.random.normal(keys[0], (32, num_channels, 3, 3), jnp.float32),
        "conv_b":  0.10 * jax.random.normal(keys[1], (32,), jnp.float32),
        "bn_gamma": 1.0 + 0.10 * jax.random.normal(keys[2], (32,), jnp.float32),
        "bn_beta":  0.10 * jax.random.normal(keys[3], (32,), jnp.float32),
        "bn_mean":  0.10 * jax.random.normal(keys[4], (32,), jnp.float32),
        "bn_var":   1.0 + jax.nn.softplus(jax.random.normal(keys[5], (32,), jnp.float32)),
        "fc1_w":   0.03 * jax.random.normal(keys[6], (128, 800), jnp.float32),
        "fc1_b":   0.03 * jax.random.normal(keys[7], (128,), jnp.float32),
        "fc2_w":   0.05 * jax.random.normal(keys[8], (num_classes, 128), jnp.float32),
        "fc2_b":   0.05 * jax.random.normal(keys[9], (num_classes,), jnp.float32),
    }
    x = jax.random.normal(keys[10], (batch, num_channels, height, width), jnp.float32)

    prep = prepare_params(params)                      # one-time folding, off the hot path
    fwd = jax.jit(model_forward, static_argnames=("num_classes",))
    out = fwd(x, prep, num_classes=num_classes)
    out = jax.block_until_ready(out)
    assert out.shape == (batch, num_classes), out.shape

    ref = model_reference(x, params)
    if not jnp.allclose(out, ref, rtol=2e-2, atol=2e-2):
        raise AssertionError(
            f"Pallas output mismatch, max abs err = {float(jnp.max(jnp.abs(out - ref)))}")

    print("KERNEL_OK")
</pallas_src>

<mosaic_0001>
module attributes {stable_mosaic.version = 11 : i64} {
  func.func @fused_cnn_kernel(%arg0: i32, %arg1: memref<9x200x27xbf16, #tpu.memory_space<vmem>>, %arg2: memref<27x32xbf16, #tpu.memory_space<vmem>>, %arg3: memref<8x128xf32, #tpu.memory_space<vmem>>, %arg4: memref<800x128xbf16, #tpu.memory_space<vmem>>, %arg5: memref<128x128xbf16, #tpu.memory_space<vmem>>, %arg6: memref<8x128xf32, #tpu.memory_space<vmem>>, %arg7: memref<8x800xbf16, #tpu.memory_space<vmem>>) attributes {dimension_semantics = [#tpu.dimension_semantics<parallel>], iteration_bounds = array<i64: 1>, scalar_prefetch = 0 : i64, scratch_operands = 1 : i64, tpu.core_type = #tpu.core_type<tc>, window_params = [{transform_indices = @transform_0, window_bounds = array<i64: 9, 200, 27>}, {pipeline_mode = #tpu.pipeline_mode<synchronous>, transform_indices = @transform_1, window_bounds = array<i64: 27, 32>}, {pipeline_mode = #tpu.pipeline_mode<synchronous>, transform_indices = @transform_2, window_bounds = array<i64: 8, 128>}, {pipeline_mode = #tpu.pipeline_mode<synchronous>, transform_indices = @transform_3, window_bounds = array<i64: 800, 128>}, {pipeline_mode = #tpu.pipeline_mode<synchronous>, transform_indices = @transform_4, window_bounds = array<i64: 128, 128>}, {transform_indices = @transform_5, window_bounds = array<i64: 8, 128>}]} {
    %c0 = arith.constant 0 : index
    %c0_0 = arith.constant 0 : index
    %0 = vector.load %arg3[%c0, %c0_0] : memref<8x128xf32, #tpu.memory_space<vmem>>, vector<1x32xf32>
    %1 = vector.shape_cast %0 : vector<1x32xf32> to vector<1x32xf32>
    %2 = vector.broadcast %1 : vector<1x32xf32> to vector<200x32xf32>
    %c0_1 = arith.constant 0 : index
    %c0_2 = arith.constant 0 : index
    %c0_3 = arith.constant 0 : index
    %3 = vector.load %arg1[%c0_1, %c0_2, %c0_3] : memref<9x200x27xbf16, #tpu.memory_space<vmem>>, vector<1x200x27xbf16>
    %4 = vector.shape_cast %3 : vector<1x200x27xbf16> to vector<200x27xbf16>
    %c0_4 = arith.constant 0 : index
    %c0_5 = arith.constant 0 : index
    %5 = vector.load %arg2[%c0_4, %c0_5] : memref<27x32xbf16, #tpu.memory_space<vmem>>, vector<27x32xbf16>
    %cst = arith.constant dense<0.000000e+00> : vector<200x32xf32>
    %6 = tpu.matmul %4, %5, %cst {dimension_numbers = #tpu.dot_dimension_numbers<[1], [0], [0], [1], [0, 0, 1, 1], [], []>} : vector<200x27xbf16>, vector<27x32xbf16>, vector<200x32xf32> -> vector<200x32xf32>
    %7 = arith.addf %6, %2 : vector<200x32xf32>
    %cst_6 = arith.constant 0.000000e+00 : f32
    %8 = vector.broadcast %cst_6 : f32 to vector<200x32xf32>
    %9 = arith.maximumf %7, %8 : vector<200x32xf32>
    %c1 = arith.constant 1 : index
    %c0_7 = arith.constant 0 : index
    %c0_8 = arith.constant 0 : index
    %10 = vector.load %arg1[%c1, %c0_7, %c0_8] : memref<9x200x27xbf16, #tpu.memory_space<vmem>>, vector<1x200x27xbf16>
    %11 = vector.shape_cast %10 : vector<1x200x27xbf16> to vector<200x27xbf16>
    %c0_9 = arith.constant 0 : index
    %c0_10 = arith.constant 0 : index
    %12 = vector.load %arg2[%c0_9, %c0_10] : memref<27x32xbf16, #tpu.memory_space<vmem>>, vector<27x32xbf16>
    %cst_11 = arith.constant dense<0.000000e+00> : vector<200x32xf32>
    %13 = tpu.matmul %11, %12, %cst_11 {dimension_numbers = #tpu.dot_dimension_numbers<[1], [0], [0], [1], [0, 0, 1, 1], [], []>} : vector<200x27xbf16>, vector<27x32xbf16>, vector<200x32xf32> -> vector<200x32xf32>
    %14 = arith.addf %13, %2 : vector<200x32xf32>
    %cst_12 = arith.constant 0.000000e+00 : f32
    %15 = vector.broadcast %cst_12 : f32 to vector<200x32xf32>
    %16 = arith.maximumf %14, %15 : vector<200x32xf32>
    %17 = arith.addf %9, %16 : vector<200x32xf32>
    %c2 = arith.constant 2 : index
    %c0_13 = arith.constant 0 : index
    %c0_14 = arith.constant 0 : index
    %18 = vector.load %arg1[%c2, %c0_13, %c0_14] : memref<9x200x27xbf16, #tpu.memory_space<vmem>>, vector<1x200x27xbf16>
    %19 = vector.shape_cast %18 : vector<1x200x27xbf16> to vector<200x27xbf16>
    %c0_15 = arith.constant 0 : index
    %c0_16 = arith.constant 0 : index
    %20 = vector.load %arg2[%c0_15, %c0_16] : memref<27x32xbf16, #tpu.memory_space<vmem>>, vector<27x32xbf16>
    %cst_17 = arith.constant dense<0.000000e+00> : vector<200x32xf32>
    %21 = tpu.matmul %19, %20, %cst_17 {dimension_numbers = #tpu.dot_dimension_numbers<[1], [0], [0], [1], [0, 0, 1, 1], [], []>} : vector<200x27xbf16>, vector<27x32xbf16>, vector<200x32xf32> -> vector<200x32xf32>
    %22 = arith.addf %21, %2 : vector<200x32xf32>
    %cst_18 = arith.constant 0.000000e+00 : f32
    %23 = vector.broadcast %cst_18 : f32 to vector<200x32xf32>
    %24 = arith.maximumf %22, %23 : vector<200x32xf32>
    %25 = arith.addf %17, %24 : vector<200x32xf32>
    %c3 = arith.constant 3 : index
    %c0_19 = arith.constant 0 : index
    %c0_20 = arith.constant 0 : index
    %26 = vector.load %arg1[%c3, %c0_19, %c0_20] : memref<9x200x27xbf16, #tpu.memory_space<vmem>>, vector<1x200x27xbf16>
    %27 = vector.shape_cast %26 : vector<1x200x27xbf16> to vector<200x27xbf16>
    %c0_21 = arith.constant 0 : index
    %c0_22 = arith.constant 0 : index
    %28 = vector.load %arg2[%c0_21, %c0_22] : memref<27x32xbf16, #tpu.memory_space<vmem>>, vector<27x32xbf16>
    %cst_23 = arith.constant dense<0.000000e+00> : vector<200x32xf32>
    %29 = tpu.matmul %27, %28, %cst_23 {dimension_numbers = #tpu.dot_dimension_numbers<[1], [0], [0], [1], [0, 0, 1, 1], [], []>} : vector<200x27xbf16>, vector<27x32xbf16>, vector<200x32xf32> -> vector<200x32xf32>
    %30 = arith.addf %29, %2 : vector<200x32xf32>
    %cst_24 = arith.constant 0.000000e+00 : f32
    %31 = vector.broadcast %cst_24 : f32 to vector<200x32xf32>
    %32 = arith.maximumf %30, %31 : vector<200x32xf32>
    %33 = arith.addf %25, %32 : vector<200x32xf32>
    %c4 = arith.constant 4 : index
    %c0_25 = arith.constant 0 : index
    %c0_26 = arith.constant 0 : index
    %34 = vector.load %arg1[%c4, %c0_25, %c0_26] : memref<9x200x27xbf16, #tpu.memory_space<vmem>>, vector<1x200x27xbf16>
    %35 = vector.shape_cast %34 : vector<1x200x27xbf16> to vector<200x27xbf16>
    %c0_27 = arith.constant 0 : index
    %c0_28 = arith.constant 0 : index
    %36 = vector.load %arg2[%c0_27, %c0_28] : memref<27x32xbf16, #tpu.memory_space<vmem>>, vector<27x32xbf16>
    %cst_29 = arith.constant dense<0.000000e+00> : vector<200x32xf32>
    %37 = tpu.matmul %35, %36, %cst_29 {dimension_numbers = #tpu.dot_dimension_numbers<[1], [0], [0], [1], [0, 0, 1, 1], [], []>} : vector<200x27xbf16>, vector<27x32xbf16>, vector<200x32xf32> -> vector<200x32xf32>
    %38 = arith.addf %37, %2 : vector<200x32xf32>
    %cst_30 = arith.constant 0.000000e+00 : f32
    %39 = vector.broadcast %cst_30 : f32 to vector<200x32xf32>
    %40 = arith.maximumf %38, %39 : vector<200x32xf32>
    %41 = arith.addf %33, %40 : vector<200x32xf32>
    %c5 = arith.constant 5 : index
    %c0_31 = arith.constant 0 : index
    %c0_32 = arith.constant 0 : index
    %42 = vector.load %arg1[%c5, %c0_31, %c0_32] : memref<9x200x27xbf16, #tpu.memory_space<vmem>>, vector<1x200x27xbf16>
    %43 = vector.shape_cast %42 : vector<1x200x27xbf16> to vector<200x27xbf16>
    %c0_33 = arith.constant 0 : index
    %c0_34 = arith.constant 0 : index
    %44 = vector.load %arg2[%c0_33, %c0_34] : memref<27x32xbf16, #tpu.memory_space<vmem>>, vector<27x32xbf16>
    %cst_35 = arith.constant dense<0.000000e+00> : vector<200x32xf32>
    %45 = tpu.matmul %43, %44, %cst_35 {dimension_numbers = #tpu.dot_dimension_numbers<[1], [0], [0], [1], [0, 0, 1, 1], [], []>} : vector<200x27xbf16>, vector<27x32xbf16>, vector<200x32xf32> -> vector<200x32xf32>
    %46 = arith.addf %45, %2 : vector<200x32xf32>
    %cst_36 = arith.constant 0.000000e+00 : f32
    %47 = vector.broadcast %cst_36 : f32 to vector<200x32xf32>
    %48 = arith.maximumf %46, %47 : vector<200x32xf32>
    %49 = arith.addf %41, %48 : vector<200x32xf32>
    %c6 = arith.constant 6 : index
    %c0_37 = arith.constant 0 : index
    %c0_38 = arith.constant 0 : index
    %50 = vector.load %arg1[%c6, %c0_37, %c0_38] : memref<9x200x27xbf16, #tpu.memory_space<vmem>>, vector<1x200x27xbf16>
    %51 = vector.shape_cast %50 : vector<1x200x27xbf16> to vector<200x27xbf16>
    %c0_39 = arith.constant 0 : index
    %c0_40 = arith.constant 0 : index
    %52 = vector.load %arg2[%c0_39, %c0_40] : memref<27x32xbf16, #tpu.memory_space<vmem>>, vector<27x32xbf16>
    %cst_41 = arith.constant dense<0.000000e+00> : vector<200x32xf32>
    %53 = tpu.matmul %51, %52, %cst_41 {dimension_numbers = #tpu.dot_dimension_numbers<[1], [0], [0], [1], [0, 0, 1, 1], [], []>} : vector<200x27xbf16>, vector<27x32xbf16>, vector<200x32xf32> -> vector<200x32xf32>
    %54 = arith.addf %53, %2 : vector<200x32xf32>
    %cst_42 = arith.constant 0.000000e+00 : f32
    %55 = vector.broadcast %cst_42 : f32 to vector<200x32xf32>
    %56 = arith.maximumf %54, %55 : vector<200x32xf32>
    %57 = arith.addf %49, %56 : vector<200x32xf32>
    %c7 = arith.constant 7 : index
    %c0_43 = arith.constant 0 : index
    %c0_44 = arith.constant 0 : index
    %58 = vector.load %arg1[%c7, %c0_43, %c0_44] : memref<9x200x27xbf16, #tpu.memory_space<vmem>>, vector<1x200x27xbf16>
    %59 = vector.shape_cast %58 : vector<1x200x27xbf16> to vector<200x27xbf16>
    %c0_45 = arith.constant 0 : index
    %c0_46 = arith.constant 0 : index
    %60 = vector.load %arg2[%c0_45, %c0_46] : memref<27x32xbf16, #tpu.memory_space<vmem>>, vector<27x32xbf16>
    %cst_47 = arith.constant dense<0.000000e+00> : vector<200x32xf32>
    %61 = tpu.matmul %59, %60, %cst_47 {dimension_numbers = #tpu.dot_dimension_numbers<[1], [0], [0], [1], [0, 0, 1, 1], [], []>} : vector<200x27xbf16>, vector<27x32xbf16>, vector<200x32xf32> -> vector<200x32xf32>
    %62 = arith.addf %61, %2 : vector<200x32xf32>
    %cst_48 = arith.constant 0.000000e+00 : f32
    %63 = vector.broadcast %cst_48 : f32 to vector<200x32xf32>
    %64 = arith.maximumf %62, %63 : vector<200x32xf32>
    %65 = arith.addf %57, %64 : vector<200x32xf32>
    %c8 = arith.constant 8 : index
    %c0_49 = arith.constant 0 : index
    %c0_50 = arith.constant 0 : index
    %66 = vector.load %arg1[%c8, %c0_49, %c0_50] : memref<9x200x27xbf16, #tpu.memory_space<vmem>>, vector<1x200x27xbf16>
    %67 = vector.shape_cast %66 : vector<1x200x27xbf16> to vector<200x27xbf16>
    %c0_51 = arith.constant 0 : index
    %c0_52 = arith.constant 0 : index
    %68 = vector.load %arg2[%c0_51, %c0_52] : memref<27x32xbf16, #tpu.memory_space<vmem>>, vector<27x32xbf16>
    %cst_53 = arith.constant dense<0.000000e+00> : vector<200x32xf32>
    %69 = tpu.matmul %67, %68, %cst_53 {dimension_numbers = #tpu.dot_dimension_numbers<[1], [0], [0], [1], [0, 0, 1, 1], [], []>} : vector<200x27xbf16>, vector<27x32xbf16>, vector<200x32xf32> -> vector<200x32xf32>
    %70 = arith.addf %69, %2 : vector<200x32xf32>
    %cst_54 = arith.constant 0.000000e+00 : f32
    %71 = vector.broadcast %cst_54 : f32 to vector<200x32xf32>
    %72 = arith.maximumf %70, %71 : vector<200x32xf32>
    %73 = arith.addf %65, %72 : vector<200x32xf32>
    %74 = vector.extract_strided_slice %73 {offsets = [0, 0], sizes = [8, 32], strides = [1, 1]} : vector<200x32xf32> to vector<8x32xf32>
    %75 = arith.truncf %74 : vector<8x32xf32> to vector<8x32xbf16>
    %c0_55 = arith.constant 0 : index
    %c0_56 = arith.constant 0 : index
    %76 = vector.load %arg7[%c0_55, %c0_56] : memref<8x800xbf16, #tpu.memory_space<vmem>>, vector<8x32xbf16>
    tpu.vector_store %arg7[%c0_55, %c0_56], %75 {strides = array<i32>} : memref<8x800xbf16, #tpu.memory_space<vmem>>, vector<8x32xbf16>,
    %77 = vector.extract_strided_slice %73 {offsets = [8, 0], sizes = [8, 32], strides = [1, 1]} : vector<200x32xf32> to vector<8x32xf32>
    %78 = arith.truncf %77 : vector<8x32xf32> to vector<8x32xbf16>
    %c0_57 = arith.constant 0 : index
    %c32 = arith.constant 32 : index
    %79 = vector.load %arg7[%c0_57, %c32] : memref<8x800xbf16, #tpu.memory_space<vmem>>, vector<8x32xbf16>
    tpu.vector_store %arg7[%c0_57, %c32], %78 {strides = array<i32>} : memref<8x800xbf16, #tpu.memory_space<vmem>>, vector<8x32xbf16>,
    %80 = vector.extract_strided_slice %73 {offsets = [16, 0], sizes = [8, 32], strides = [1, 1]} : vector<200x32xf32> to vector<8x32xf32>
    %81 = arith.truncf %80 : vector<8x32xf32> to vector<8x32xbf16>
    %c0_58 = arith.constant 0 : index
    %c64 = arith.constant 64 : index
    %82 = vector.load %arg7[%c0_58, %c64] : memref<8x800xbf16, #tpu.memory_space<vmem>>, vector<8x32xbf16>
    tpu.vector_store %arg7[%c0_58, %c64], %81 {strides = array<i32>} : memref<8x800xbf16, #tpu.memory_space<vmem>>, vector<8x32xbf16>,
    %83 = vector.extract_strided_slice %73 {offsets = [24, 0], sizes = [8, 32], strides = [1, 1]} : vector<200x32xf32> to vector<8x32xf32>
    %84 = arith.truncf %83 : vector<8x32xf32> to vector<8x32xbf16>
    %c0_59 = arith.constant 0 : index
    %c96 = arith.constant 96 : index
    %85 = vector.load %arg7[%c0_59, %c96] : memref<8x800xbf16, #tpu.memory_space<vmem>>, vector<8x32xbf16>
    tpu.vector_store %arg7[%c0_59, %c96], %84 {strides = array<i32>} : memref<8x800xbf16, #tpu.memory_space<vmem>>, vector<8x32xbf16>,
    %86 = vector.extract_strided_slice %73 {offsets = [32, 0], sizes = [8, 32], strides = [1, 1]} : vector<200x32xf32> to vector<8x32xf32>
    %87 = arith.truncf %86 : vector<8x32xf32> to vector<8x32xbf16>
    %c0_60 = arith.constant 0 : index
    %c128 = arith.constant 128 : index
    %88 = vector.load %arg7[%c0_60, %c128] : memref<8x800xbf16, #tpu.memory_space<vmem>>, vector<8x32xbf16>
    tpu.vector_store %arg7[%c0_60, %c128], %87 {strides = array<i32>} : memref<8x800xbf16, #tpu.memory_space<vmem>>, vector<8x32xbf16>,
    %89 = vector.extract_strided_slice %73 {offsets = [40, 0], sizes = [8, 32], strides = [1, 1]} : vector<200x32xf32> to vector<8x32xf32>
    %90 = arith.truncf %89 : vector<8x32xf32> to vector<8x32xbf16>
    %c0_61 = arith.constant 0 : index
    %c160 = arith.constant 160 : index
    %91 = vector.load %arg7[%c0_61, %c160] : memref<8x800xbf16, #tpu.memory_space<vmem>>, vector<8x32xbf16>
    tpu.vector_store %arg7[%c0_61, %c160], %90 {strides = array<i32>} : memref<8x800xbf16, #tpu.memory_space<vmem>>, vector<8x32xbf16>,
    %92 = vector.extract_strided_slice %73 {offsets = [48, 0], sizes = [8, 32], strides = [1, 1]} : vector<200x32xf32> to vector<8x32xf32>
    %93 = arith.truncf %92 : vector<8x32xf32> to vector<8x32xbf16>
    %c0_62 = arith.constant 0 : index
    %c192 = arith.constant 192 : index
    %94 = vector.load %arg7[%c0_62, %c192] : memref<8x800xbf16, #tpu.memory_space<vmem>>, vector<8x32xbf16>
    tpu.vector_store %arg7[%c0_62, %c192], %93 {strides = array<i32>} : memref<8x800xbf16, #tpu.memory_space<vmem>>, vector<8x32xbf16>,
    %95 = vector.extract_strided_slice %73 {offsets = [56, 0], sizes = [8, 32], strides = [1, 1]} : vector<200x32xf32> to vector<8x32xf32>
    %96 = arith.truncf %95 : vector<8x32xf32> to vector<8x32xbf16>
    %c0_63 = arith.constant 0 : index
    %c224 = arith.constant 224 : index
    %97 = vector.load %arg7[%c0_63, %c224] : memref<8x800xbf16, #tpu.memory_space<vmem>>, vector<8x32xbf16>
    tpu.vector_store %arg7[%c0_63, %c224], %96 {strides = array<i32>} : memref<8x800xbf16, #tpu.memory_space<vmem>>, vector<8x32xbf16>,
    %98 = vector.extract_strided_slice %73 {offsets = [64, 0], sizes = [8, 32], strides = [1, 1]} : vector<200x32xf32> to vector<8x32xf32>
    %99 = arith.truncf %98 : vector<8x32xf32> to vector<8x32xbf16>
    %c0_64 = arith.constant 0 : index
    %c256 = arith.constant 256 : index
    %100 = vector.load %arg7[%c0_64, %c256] : memref<8x800xbf16, #tpu.memory_space<vmem>>, vector<8x32xbf16>
    tpu.vector_store %arg7[%c0_64, %c256], %99 {strides = array<i32>} : memref<8x800xbf16, #tpu.memory_space<vmem>>, vector<8x32xbf16>,
    %101 = vector.extract_strided_slice %73 {offsets = [72, 0], sizes = [8, 32], strides = [1, 1]} : vector<200x32xf32> to vector<8x32xf32>
    %102 = arith.truncf %101 : vector<8x32xf32> to vector<8x32xbf16>
    %c0_65 = arith.constant 0 : index
    %c288 = arith.constant 288 : index
    %103 = vector.load %arg7[%c0_65, %c288] : memref<8x800xbf16, #tpu.memory_space<vmem>>, vector<8x32xbf16>
    tpu.vector_store %arg7[%c0_65, %c288], %102 {strides = array<i32>} : memref<8x800xbf16, #tpu.memory_space<vmem>>, vector<8x32xbf16>,
    %104 = vector.extract_strided_slice %73 {offsets = [80, 0], sizes = [8, 32], strides = [1, 1]} : vector<200x32xf32> to vector<8x32xf32>
    %105 = arith.truncf %104 : vector<8x32xf32> to vector<8x32xbf16>
    %c0_66 = arith.constant 0 : index
    %c320 = arith.constant 320 : index
    %106 = vector.load %arg7[%c0_66, %c320] : memref<8x800xbf16, #tpu.memory_space<vmem>>, vector<8x32xbf16>
    tpu.vector_store %arg7[%c0_66, %c320], %105 {strides = array<i32>} : memref<8x800xbf16, #tpu.memory_space<vmem>>, vector<8x32xbf16>,
    %107 = vector.extract_strided_slice %73 {offsets = [88, 0], sizes = [8, 32], strides = [1, 1]} : vector<200x32xf32> to vector<8x32xf32>
    %108 = arith.truncf %107 : vector<8x32xf32> to vector<8x32xbf16>
    %c0_67 = arith.constant 0 : index
    %c352 = arith.constant 352 : index
    %109 = vector.load %arg7[%c0_67, %c352] : memref<8x800xbf16, #tpu.memory_space<vmem>>, vector<8x32xbf16>
    tpu.vector_store %arg7[%c0_67, %c352], %108 {strides = array<i32>} : memref<8x800xbf16, #tpu.memory_space<vmem>>, vector<8x32xbf16>,
    %110 = vector.extract_strided_slice %73 {offsets = [96, 0], sizes = [8, 32], strides = [1, 1]} : vector<200x32xf32> to vector<8x32xf32>
    %111 = arith.truncf %110 : vector<8x32xf32> to vector<8x32xbf16>
    %c0_68 = arith.constant 0 : index
    %c384 = arith.constant 384 : index
    %112 = vector.load %arg7[%c0_68, %c384] : memref<8x800xbf16, #tpu.memory_space<vmem>>, vector<8x32xbf16>
    tpu.vector_store %arg7[%c0_68, %c384], %111 {strides = array<i32>} : memref<8x800xbf16, #tpu.memory_space<vmem>>, vector<8x32xbf16>,
    %113 = vector.extract_strided_slice %73 {offsets = [104, 0], sizes = [8, 32], strides = [1, 1]} : vector<200x32xf32> to vector<8x32xf32>
    %114 = arith.truncf %113 : vector<8x32xf32> to vector<8x32xbf16>
    %c0_69 = arith.constant 0 : index
    %c416 = arith.constant 416 : index
    %115 = vector.load %arg7[%c0_69, %c416] : memref<8x800xbf16, #tpu.memory_space<vmem>>, vector<8x32xbf16>
    tpu.vector_store %arg7[%c0_69, %c416], %114 {strides = array<i32>} : memref<8x800xbf16, #tpu.memory_space<vmem>>, vector<8x32xbf16>,
    %116 = vector.extract_strided_slice %73 {offsets = [112, 0], sizes = [8, 32], strides = [1, 1]} : vector<200x32xf32> to vector<8x32xf32>
    %117 = arith.truncf %116 : vector<8x32xf32> to vector<8x32xbf16>
    %c0_70 = arith.constant 0 : index
    %c448 = arith.constant 448 : index
    %118 = vector.load %arg7[%c0_70, %c448] : memref<8x800xbf16, #tpu.memory_space<vmem>>, vector<8x32xbf16>
    tpu.vector_store %arg7[%c0_70, %c448], %117 {strides = array<i32>} : memref<8x800xbf16, #tpu.memory_space<vmem>>, vector<8x32xbf16>,
    %119 = vector.extract_strided_slice %73 {offsets = [120, 0], sizes = [8, 32], strides = [1, 1]} : vector<200x32xf32> to vector<8x32xf32>
    %120 = arith.truncf %119 : vector<8x32xf32> to vector<8x32xbf16>
    %c0_71 = arith.constant 0 : index
    %c480 = arith.constant 480 : index
    %121 = vector.load %arg7[%c0_71, %c480] : memref<8x800xbf16, #tpu.memory_space<vmem>>, vector<8x32xbf16>
    tpu.vector_store %arg7[%c0_71, %c480], %120 {strides = array<i32>} : memref<8x800xbf16, #tpu.memory_space<vmem>>, vector<8x32xbf16>,
    %122 = vector.extract_strided_slice %73 {offsets = [128, 0], sizes = [8, 32], strides = [1, 1]} : vector<200x32xf32> to vector<8x32xf32>
    %123 = arith.truncf %122 : vector<8x32xf32> to vector<8x32xbf16>
    %c0_72 = arith.constant 0 : index
    %c512 = arith.constant 512 : index
    %124 = vector.load %arg7[%c0_72, %c512] : memref<8x800xbf16, #tpu.memory_space<vmem>>, vector<8x32xbf16>
    tpu.vector_store %arg7[%c0_72, %c512], %123 {strides = array<i32>} : memref<8x800xbf16, #tpu.memory_space<vmem>>, vector<8x32xbf16>,
    %125 = vector.extract_strided_slice %73 {offsets = [136, 0], sizes = [8, 32], strides = [1, 1]} : vector<200x32xf32> to vector<8x32xf32>
    %126 = arith.truncf %125 : vector<8x32xf32> to vector<8x32xbf16>
    %c0_73 = arith.constant 0 : index
    %c544 = arith.constant 544 : index
    %127 = vector.load %arg7[%c0_73, %c544] : memref<8x800xbf16, #tpu.memory_space<vmem>>, vector<8x32xbf16>
    tpu.vector_store %arg7[%c0_73, %c544], %126 {strides = array<i32>} : memref<8x800xbf16, #tpu.memory_space<vmem>>, vector<8x32xbf16>,
    %128 = vector.extract_strided_slice %73 {offsets = [144, 0], sizes = [8, 32], strides = [1, 1]} : vector<200x32xf32> to vector<8x32xf32>
    %129 = arith.truncf %128 : vector<8x32xf32> to vector<8x32xbf16>
    %c0_74 = arith.constant 0 : index
    %c576 = arith.constant 576 : index
    %130 = vector.load %arg7[%c0_74, %c576] : memref<8x800xbf16, #tpu.memory_space<vmem>>, vector<8x32xbf16>
    tpu.vector_store %arg7[%c0_74, %c576], %129 {strides = array<i32>} : memref<8x800xbf16, #tpu.memory_space<vmem>>, vector<8x32xbf16>,
    %131 = vector.extract_strided_slice %73 {offsets = [152, 0], sizes = [8, 32], strides = [1, 1]} : vector<200x32xf32> to vector<8x32xf32>
    %132 = arith.truncf %131 : vector<8x32xf32> to vector<8x32xbf16>
    %c0_75 = arith.constant 0 : index
    %c608 = arith.constant 608 : index
    %133 = vector.load %arg7[%c0_75, %c608] : memref<8x800xbf16, #tpu.memory_space<vmem>>, vector<8x32xbf16>
    tpu.vector_store %arg7[%c0_75, %c608], %132 {strides = array<i32>} : memref<8x800xbf16, #tpu.memory_space<vmem>>, vector<8x32xbf16>,
    %134 = vector.extract_strided_slice %73 {offsets = [160, 0], sizes = [8, 32], strides = [1, 1]} : vector<200x32xf32> to vector<8x32xf32>
    %135 = arith.truncf %134 : vector<8x32xf32> to vector<8x32xbf16>
    %c0_76 = arith.constant 0 : index
    %c640 = arith.constant 640 : index
    %136 = vector.load %arg7[%c0_76, %c640] : memref<8x800xbf16, #tpu.memory_space<vmem>>, vector<8x32xbf16>
    tpu.vector_store %arg7[%c0_76, %c640], %135 {strides = array<i32>} : memref<8x800xbf16, #tpu.memory_space<vmem>>, vector<8x32xbf16>,
    %137 = vector.extract_strided_slice %73 {offsets = [168, 0], sizes = [8, 32], strides = [1, 1]} : vector<200x32xf32> to vector<8x32xf32>
    %138 = arith.truncf %137 : vector<8x32xf32> to vector<8x32xbf16>
    %c0_77 = arith.constant 0 : index
    %c672 = arith.constant 672 : index
    %139 = vector.load %arg7[%c0_77, %c672] : memref<8x800xbf16, #tpu.memory_space<vmem>>, vector<8x32xbf16>
    tpu.vector_store %arg7[%c0_77, %c672], %138 {strides = array<i32>} : memref<8x800xbf16, #tpu.memory_space<vmem>>, vector<8x32xbf16>,
    %140 = vector.extract_strided_slice %73 {offsets = [176, 0], sizes = [8, 32], strides = [1, 1]} : vector<200x32xf32> to vector<8x32xf32>
    %141 = arith.truncf %140 : vector<8x32xf32> to vector<8x32xbf16>
    %c0_78 = arith.constant 0 : index
    %c704 = arith.constant 704 : index
    %142 = vector.load %arg7[%c0_78, %c704] : memref<8x800xbf16, #tpu.memory_space<vmem>>, vector<8x32xbf16>
    tpu.vector_store %arg7[%c0_78, %c704], %141 {strides = array<i32>} : memref<8x800xbf16, #tpu.memory_space<vmem>>, vector<8x32xbf16>,
    %143 = vector.extract_strided_slice %73 {offsets = [184, 0], sizes = [8, 32], strides = [1, 1]} : vector<200x32xf32> to vector<8x32xf32>
    %144 = arith.truncf %143 : vector<8x32xf32> to vector<8x32xbf16>
    %c0_79 = arith.constant 0 : index
    %c736 = arith.constant 736 : index
    %145 = vector.load %arg7[%c0_79, %c736] : memref<8x800xbf16, #tpu.memory_space<vmem>>, vector<8x32xbf16>
    tpu.vector_store %arg7[%c0_79, %c736], %144 {strides = array<i32>} : memref<8x800xbf16, #tpu.memory_space<vmem>>, vector<8x32xbf16>,
    %146 = vector.extract_strided_slice %73 {offsets = [192, 0], sizes = [8, 32], strides = [1, 1]} : vector<200x32xf32> to vector<8x32xf32>
    %147 = arith.truncf %146 : vector<8x32xf32> to vector<8x32xbf16>
    %c0_80 = arith.constant 0 : index
    %c768 = arith.constant 768 : index
    %148 = vector.load %arg7[%c0_80, %c768] : memref<8x800xbf16, #tpu.memory_space<vmem>>, vector<8x32xbf16>
    tpu.vector_store %arg7[%c0_80, %c768], %147 {strides = array<i32>} : memref<8x800xbf16, #tpu.memory_space<vmem>>, vector<8x32xbf16>,
    %c0_81 = arith.constant 0 : index
    %c0_82 = arith.constant 0 : index
    %149 = vector.load %arg7[%c0_81, %c0_82] : memref<8x800xbf16, #tpu.memory_space<vmem>>, vector<8x800xbf16>
    %c0_83 = arith.constant 0 : index
    %c0_84 = arith.constant 0 : index
    %150 = vector.load %arg4[%c0_83, %c0_84] : memref<800x128xbf16, #tpu.memory_space<vmem>>, vector<800x128xbf16>
    %cst_85 = arith.constant dense<0.000000e+00> : vector<8x128xf32>
    %151 = tpu.matmul %149, %150, %cst_85 {dimension_numbers = #tpu.dot_dimension_numbers<[1], [0], [0], [1], [0, 0, 1, 1], [], []>} : vector<8x800xbf16>, vector<800x128xbf16>, vector<8x128xf32> -> vector<8x128xf32>
    %c1_86 = arith.constant 1 : index
    %c0_87 = arith.constant 0 : index
    %152 = vector.load %arg3[%c1_86, %c0_87] : memref<8x128xf32, #tpu.memory_space<vmem>>, vector<1x128xf32>
    %153 = vector.broadcast %152 : vector<1x128xf32> to vector<8x128xf32>
    %154 = arith.addf %151, %153 : vector<8x128xf32>
    %cst_88 = arith.constant 0.000000e+00 : f32
    %155 = vector.broadcast %cst_88 : f32 to vector<8x128xf32>
    %156 = arith.maximumf %154, %155 : vector<8x128xf32>
    %157 = arith.truncf %156 : vector<8x128xf32> to vector<8x128xbf16>
    %c0_89 = arith.constant 0 : index
    %c0_90 = arith.constant 0 : index
    %158 = vector.load %arg5[%c0_89, %c0_90] : memref<128x128xbf16, #tpu.memory_space<vmem>>, vector<128x128xbf16>
    %cst_91 = arith.constant dense<0.000000e+00> : vector<8x128xf32>
    %159 = tpu.matmul %157, %158, %cst_91 {dimension_numbers = #tpu.dot_dimension_numbers<[1], [0], [0], [1], [0, 0, 1, 1], [], []>} : vector<8x128xbf16>, vector<128x128xbf16>, vector<8x128xf32> -> vector<8x128xf32>
    %c2_92 = arith.constant 2 : index
    %c0_93 = arith.constant 0 : index
    %160 = vector.load %arg3[%c2_92, %c0_93] : memref<8x128xf32, #tpu.memory_space<vmem>>, vector<1x128xf32>
    %161 = vector.broadcast %160 : vector<1x128xf32> to vector<8x128xf32>
    %162 = arith.addf %159, %161 : vector<8x128xf32>
    %c0_94 = arith.constant 0 : index
    %c0_95 = arith.constant 0 : index
    %163 = vector.load %arg6[%c0_94, %c0_95] : memref<8x128xf32, #tpu.memory_space<vmem>>, vector<8x128xf32>
    tpu.vector_store %arg6[%c0_94, %c0_95], %162 {strides = array<i32>} : memref<8x128xf32, #tpu.memory_space<vmem>>, vector<8x128xf32>,
    return
  }
  func.func @transform_0(%arg0: i32) -> (i32, i32, i32) {
    %c0_i32 = arith.constant 0 : i32
    %c0_i32_0 = arith.constant 0 : i32
    %c0_i32_1 = arith.constant 0 : i32
    return %c0_i32, %arg0, %c0_i32_0 : i32, i32, i32
  }
  func.func @transform_1(%arg0: i32) -> (i32, i32) {
    %c0_i32 = arith.constant 0 : i32
    %c0_i32_0 = arith.constant 0 : i32
    %c0_i32_1 = arith.constant 0 : i32
    return %c0_i32, %c0_i32_0 : i32, i32
  }
  func.func @transform_2(%arg0: i32) -> (i32, i32) {
    %c0_i32 = arith.constant 0 : i32
    %c0_i32_0 = arith.constant 0 : i32
    %c0_i32_1 = arith.constant 0 : i32
    return %c0_i32, %c0_i32_0 : i32, i32
  }
  func.func @transform_3(%arg0: i32) -> (i32, i32) {
    %c0_i32 = arith.constant 0 : i32
    %c0_i32_0 = arith.constant 0 : i32
    %c0_i32_1 = arith.constant 0 : i32
    return %c0_i32, %c0_i32_0 : i32, i32
  }
  func.func @transform_4(%arg0: i32) -> (i32, i32) {
    %c0_i32 = arith.constant 0 : i32
    %c0_i32_0 = arith.constant 0 : i32
    %c0_i32_1 = arith.constant 0 : i32
    return %c0_i32, %c0_i32_0 : i32, i32
  }
  func.func @transform_5(%arg0: i32) -> (i32, i32) {
    %c0_i32 = arith.constant 0 : i32
    %c0_i32_0 = arith.constant 0 : i32
    return %arg0, %c0_i32 : i32, i32
  }
}

</mosaic_0001>

<bundles_post_ra>
// kernel: model_forward.1
= control target key start
LH: loop header
LB: loop body
LE: loop exit
PB: predicated region body
PF: predicated region fallthrough
CT: control target
= control target key end

     0   :  { %vm169_vm0 = vcmask 1044480   ;;  %vm170_vm1 = vcmask 1045504   ;;  %v5207_v0 = vmov 0.0   ;;  %v5208_v2 = vmov 65535   ;;  %s5210_s10 = smov 32   ;;  %s5211_s11 = smov 64   ;;  %s7011_s1 = inlined_call_operand.vmem [shape: bf16[27,32], index: 1, kind: input, shape index: {}]   ;;  %s7012_s0 = inlined_call_operand.vmem [shape: bf16[9,200,27], index: 0, kind: input, shape index: {}]   ;;  %s7013_s2 = inlined_call_operand.vmem [shape: f32[8,128], index: 2, kind: input, shape index: {}]   ;;  %s7014_s3 = inlined_call_operand.vmem [shape: bf16[800,128], index: 3, kind: input, shape index: {}]   ;;  %s7015_s4 = inlined_call_operand.vmem [shape: bf16[128,128], index: 4, kind: input, shape index: {}]   ;;  %s7016_s5 = inlined_call_operand.vmem [shape: f32[8,128], index: 5, kind: output, shape index: {}]  }
   0x1   :  { %4478 = vmatprep.subr.bf16.mxu0 %v5207_v0  ;;  %5010 = vmatprep.subr.bf16.mxu1 %v5207_v0  ;;  %v5248_v1 = vld [vmem:[%s7011_s1] sm:$0xff]   ;;  %v171_v3 = vsel %vm169_vm0, 4294967295, %v5208_v2  ;;  %v5021_v4 = vld [vmem:[%s7011_s1 + $0x8] sm:$0x3f]   ;;  %vm5209_vm2 = vmmov 0   ;;  %v5023_v8 = vld [vmem:[%s7012_s0 + $0x58] sm:$0xff]  }
   0x2   :  { %4479 = vmatpush3.bf16.msra.mxu0 %v5248_v1  ;;  %5012 = vmatpush3.bf16.msra.mxu1 %v5248_v1  ;;  %v172_v5 = vsel %vm170_vm1, %v171_v3, 0  ;;  %v5022_v7 = vld [vmem:[%s7012_s0] sm:$0xff]   ;;  %vm129_vm3 = vcmask 220160   ;;  %v5024_v9 = vld [vmem:[%s7012_s0 + $0x8] sm:$0xff]   ;;  %v5026_v11 = vld [vmem:[%s7012_s0 + $0x10] sm:$0xff]   ;;  %vm2850_vm4 = vcmask 257024  }
   0x3   :  { %4480 = vmatprep.subr.bf16.mxu0 %v5207_v0  ;;  %5011 = vmatprep.subr.bf16.mxu1 %v5207_v0  ;;  %v5257_v6 = vand.u32 %v5021_v4, %v172_v5  ;;  %v5025_v10 = vld [vmem:[%s7012_s0 + $0x60] ss:$0 sps:$4 sm:$0xff]   ;;  %v5027_v12 = vld [vmem:[%s7012_s0 + $0x64] sm:$0xff]   ;;  %v5028_v13 = vld [vmem:[%s7012_s0 + $0x18] sm:$0xff]   ;;  %s5212_s16 = smov 96   ;;  %vm2859_vm5 = vcmask 519424  }
   0x4   :  { %4482 = vmatprep.mubr.msk.bf16.mxu0 %vm5209_vm2, %v5207_v0  ;;  %4526 = vmatprep.mubr.msk.bf16.mxu1 %vm5209_vm2, %v5207_v0  ;;  %v5029_v14 = vld [vmem:[%s7012_s0 + $0x6c] sm:$0xff]   ;;  %v5030_v15 = vld [vmem:[%s7012_s0 + $0x20] sm:$0xff]   ;;  %v5031_v16 = vld [vmem:[%s7012_s0 + $0x74] sm:$0xff]   ;;  %vm2868_vm6 = vcmask 781824   ;;  %vm2877_vm7 = vcmask 1044224   ;;  %vm3444_vm8 = vcmask 261120  }
   0x5   :  { %v5032_v17 = vld [vmem:[%s7012_s0 + $0x28] sm:$0xff]   ;;  %v5033_v18 = vld [vmem:[%s7012_s0 + $0x7c] sm:$0xff]   ;;  %v5034_v19 = vld [vmem:[%s7012_s0 + $0x30] sm:$0xff]  }
   0x6   :  { %4481 = vmatpush3.bf16.msra.mxu0 %v5257_v6  ;;  %5013 = vmatpush3.bf16.msra.mxu1 %v5257_v6  ;;  %v5035_v20 = vld [vmem:[%s7012_s0 + $0x84] sm:$0xff]   ;;  %v5036_v21 = vld [vmem:[%s7012_s0 + $0x38] sm:$0xff]   ;;  %v5037_v22 = vld [vmem:[%s7012_s0 + $0x8c] sm:$0xff]  }
   0x7   :  { %4590 = vmatprep.subr.bf16.mxu0 %v5207_v0  ;;  %4534 = vmatprep.subr.bf16.mxu1 %v5207_v0  ;;  %v5038_v23 = vld [vmem:[%s7012_s0 + $0x40] sm:$0xff]   ;;  %v5039_v24 = vld [vmem:[%s7012_s0 + $0x94] sm:$0xff]   ;;  %v5040_v25 = vld [vmem:[%s7012_s0 + $0x48] sm:$0xff]  }
   0x8   :  { %v5041_v26 = vld [vmem:[%s7012_s0 + $0x9c] sm:$0xff]   ;;  %v5042_v27 = vld [vmem:[%s7012_s0 + $0x50] sm:$0xff]   ;;  %v5043_v28 = vld [vmem:[%s7012_s0 + $0xa4] sm:$0xff]  }
   0x9   :  { %4483 = vmatmul.mubr.msk.bf16.vlgmr.msra.gmra.mrb[0].mxu0 %vm129_vm3, %v5022_v7  ;;  %4527 = vmatmul.mubr.msk.bf16.vlgmr.msra.gmra.mrb[0].mxu1 %vm129_vm3, %v5023_v8  ;;  %v5044_v29 = vld [vmem:[%s7012_s0 + $0xac] sm:$0xff]   ;;  %v5046_v31 = vld [vmem:[%s7012_s0 + $0xb4] sm:$0xff]   ;;  %v5048_v33 = vld [vmem:[%s7012_s0 + $0xbc] sm:$0xff]  }
   0xa   :  { %4591 = vmatpush3.bf16.msra.mxu0 %v5248_v1  ;;  %4486 = vmatprep.mubr.msk.bf16.mxu0 %vm5209_vm2, %v5207_v0  ;;  %v5045_v30 = vld [vmem:[%s7012_s0 + $0xc8] sm:$0xff]   ;;  %v5047_v32 = vld [vmem:[%s7012_s0 + $0xd0] sm:$0xff]   ;;  %v5049_v34 = vld [vmem:[%s7012_s0 + $0xd8] sm:$0xff]  }
   0xb   :  { %4530 = vmatprep.mubr.msk.bf16.mxu1 %vm5209_vm2, %v5207_v0  ;;  %4535 = vmatpush3.bf16.msra.mxu1 %v5248_v1  ;;  %v5050_v35 = vld [vmem:[%s7012_s0 + $0xc4] ss:$0 sps:$4 sm:$0xff]   ;;  %v5052_v37 = vld [vmem:[%s7012_s0 + $0xe8] sm:$0xff]   ;;  %v5054_v39 = vld [vmem:[%s7012_s0 + $0xf0] sm:$0xff]  }
   0xc   :  { %4536 = vmatprep.subr.bf16.mxu1 %v5207_v0  ;;  %4592 = vmatprep.subr.bf16.mxu0 %v5207_v0  ;;  %v5051_v36 = vld [vmem:[%s7012_s0 + $0xe0] sm:$0xff]   ;;  %v5053_v38 = vld [vmem:[%s7012_s0 + $0x12c] sm:$0xff]   ;;  %v5055_v40 = vld [vmem:[%s7012_s0 + $0x134] sm:$0xff]  }
   0xd   :  { %v5056_v41 = vld [vmem:[%s7012_s0 + $0xf8] sm:$0xff]   ;;  %v5058_v43 = vld [vmem:[%s7012_s0 + $0x100] sm:$0xff]   ;;  %v5060_v45 = vld [vmem:[%s7012_s0 + $0x108] sm:$0xff]  }
   0xe   :  { %4593 = vmatpush3.bf16.msra.mxu0 %v5257_v6  ;;  %v5057_v42 = vld [vmem:[%s7012_s0 + $0x13c] sm:$0xff]   ;;  %v5059_v44 = vld [vmem:[%s7012_s0 + $0x144] sm:$0xff]   ;;  %v5061_v46 = vld [vmem:[%s7012_s0 + $0x14c] sm:$0xff]  }
   0xf   :  { %4537 = vmatpush3.bf16.msra.mxu1 %v5257_v6  ;;  %4702 = vmatprep.subr.bf16.mxu0 %v5207_v0  ;;  %v5062_v47 = vld [vmem:[%s7012_s0 + $0x110] sm:$0xff]   ;;  %v5064_v49 = vld [vmem:[%s7012_s0 + $0x118] sm:$0xff]   ;;  %v5066_v51 = vld [vmem:[%s7012_s0 + $0x120] sm:$0xff]  }
  0x10   :  { %4646 = vmatprep.subr.bf16.mxu1 %v5207_v0  ;;  %v5063_v48 = vld [vmem:[%s7012_s0 + $0x154] sm:$0xff]   ;;  %v5065_v50 = vld [vmem:[%s7012_s0 + $0x15c] sm:$0xff]   ;;  %v5067_v52 = vld [vmem:[%s7012_s0 + $0x164] sm:$0xff]  }
  0x11   :  { %4487 = vmatmul.mubr.msk.bf16.gmra.mrb[4].mxu0 %vm129_vm3, %v5024_v9  ;;  %4531 = vmatmul.mubr.msk.bf16.gmra.mrb[4].mxu1 %vm129_vm3, %v5025_v10  ;;  %v5068_v53 = vld [vmem:[%s7012_s0 + $0x128] ss:$0 sps:$4 sm:$0xff]   ;;  %v5069_v54 = vld [vmem:[%s7012_s0 + $0x16c] sm:$0xff]   ;;  %v5070_v55 = vld [vmem:[%s7012_s0 + $0x174] sm:$0xff]  }
  0x12   :  { %4490 = vmatprep.mubr.msk.bf16.mxu0 %vm5209_vm2, %v5207_v0  ;;  %4538 = vmatprep.mubr.msk.bf16.mxu1 %vm5209_vm2, %v5207_v0  ;;  %v5071_v56 = vld [vmem:[%s7012_s0 + $0x190] sm:$0xff]   ;;  %v5072_v57 = vld [vmem:[%s7012_s0 + $0x17c] sm:$0xff]   ;;  %v5074_v59 = vld [vmem:[%s7012_s0 + $0x184] sm:$0xff]  }
  0x13   :  { %v5073_v58 = vld [vmem:[%s7012_s0 + $0x198] sm:$0xff]   ;;  %v5075_v60 = vld [vmem:[%s7012_s0 + $0x1a0] sm:$0xff]   ;;  %v5076_v2 = vld [vmem:[%s7012_s0 + $0x18c] ss:$0 sps:$4 sm:$0xff]  }
  0x14   :  { %v5077_v3 = vld [vmem:[%s7012_s0 + $0x1a8] sm:$0xff]  }
  0x19   :  { %4491 = vmatmul.mubr.msk.bf16.gmra.mrb[8].mxu0 %vm129_vm3, %v5026_v11  ;;  %4539 = vmatmul.mubr.msk.bf16.vlgmr.msra.gmra.mrb[8].mxu1 %vm129_vm3, %v5027_v12 }
  0x1a   :  { %4494 = vmatprep.mubr.msk.bf16.mxu0 %vm5209_vm2, %v5207_v0  ;;  %4542 = vmatprep.mubr.msk.bf16.mxu1 %vm5209_vm2, %v5207_v0 }
  0x1b   :  { %4647 = vmatpush3.bf16.msra.mxu1 %v5248_v1 }
  0x1c   :  { %4648 = vmatprep.subr.bf16.mxu1 %v5207_v0 }
  0x1f   :  { %4649 = vmatpush3.bf16.msra.mxu1 %v5257_v6 }
  0x20   :  { %4758 = vmatprep.subr.bf16.mxu1 %v5207_v0 }
  0x21   :  { %4495 = vmatmul.mubr.msk.bf16.gmra.mrb[12].mxu0 %vm129_vm3, %v5028_v13  ;;  %4543 = vmatmul.mubr.msk.bf16.gmra.mrb[12].mxu1 %vm129_vm3, %v5029_v14  ;;  %v5078_v14 = vld [vmem:[%s7012_s0 + $0x1b0] sm:$0xff]  }
  0x22   :  { %4498 = vmatprep.mubr.msk.bf16.mxu0 %vm5209_vm2, %v5207_v0  ;;  %4546 = vmatprep.mubr.msk.bf16.mxu1 %vm5209_vm2, %v5207_v0 }
  0x29   :  { %4499 = vmatmul.mubr.msk.bf16.gmra.mrb[16].mxu0 %vm129_vm3, %v5030_v15  ;;  %4547 = vmatmul.mubr.msk.bf16.gmra.mrb[16].mxu1 %vm129_vm3, %v5031_v16  ;;  %v5079_v15 = vld [vmem:[%s7012_s0 + $0x1f4] sm:$0xff]  }
  0x2a   :  { %4502 = vmatprep.mubr.msk.bf16.mxu0 %vm5209_vm2, %v5207_v0  ;;  %4550 = vmatprep.mubr.msk.bf16.mxu1 %vm5209_vm2, %v5207_v0 }
  0x31   :  { %4503 = vmatmul.mubr.msk.bf16.gmra.mrb[20].mxu0 %vm129_vm3, %v5032_v17  ;;  %4551 = vmatmul.mubr.msk.bf16.gmra.mrb[20].mxu1 %vm129_vm3, %v5033_v18 }
  0x32   :  { %4506 = vmatprep.mubr.msk.bf16.mxu0 %vm5209_vm2, %v5207_v0  ;;  %4554 = vmatprep.mubr.msk.bf16.mxu1 %vm5209_vm2, %v5207_v0 }
  0x39   :  { %4507 = vmatmul.mubr.msk.bf16.gmra.mrb[24].mxu0 %vm129_vm3, %v5034_v19  ;;  %4555 = vmatmul.mubr.msk.bf16.gmra.mrb[24].mxu1 %vm129_vm3, %v5035_v20  ;;  %v5642_v20 = vld [vmem:[%s7013_s2] ss:$0 sm:$0xff] }
  0x3a   :  { %4510 = vmatprep.mubr.msk.bf16.mxu0 %vm5209_vm2, %v5207_v0  ;;  %4558 = vmatprep.mubr.msk.bf16.mxu1 %vm5209_vm2, %v5207_v0 }
  0x41   :  { %4511 = vmatmul.mubr.msk.bf16.gmra.mrb[28].mxu0 %vm129_vm3, %v5036_v21  ;;  %4559 = vmatmul.mubr.msk.bf16.gmra.mrb[28].mxu1 %vm129_vm3, %v5037_v22 }
  0x42   :  { %4514 = vmatprep.mubr.msk.bf16.mxu0 %vm5209_vm2, %v5207_v0  ;;  %4562 = vmatprep.mubr.msk.bf16.mxu1 %vm5209_vm2, %v5207_v0 }
  0x49   :  { %4515 = vmatmul.mubr.msk.bf16.gmra.mrb[32].mxu0 %vm129_vm3, %v5038_v23  ;;  %4563 = vmatmul.mubr.msk.bf16.gmra.mrb[32].mxu1 %vm129_vm3, %v5039_v24 }
  0x4a   :  { %4518 = vmatprep.mubr.msk.bf16.mxu0 %vm5209_vm2, %v5207_v0  ;;  %4566 = vmatprep.mubr.msk.bf16.mxu1 %vm5209_vm2, %v5207_v0 }
  0x51   :  { %4519 = vmatmul.mubr.msk.bf16.gmra.mrb[36].mxu0 %vm129_vm3, %v5040_v25  ;;  %4567 = vmatmul.mubr.msk.bf16.gmra.mrb[36].mxu1 %vm129_vm3, %v5041_v26 }
  0x52   :  { %4522 = vmatprep.mubr.msk.bf16.mxu0 %vm5209_vm2, %v5207_v0  ;;  %4570 = vmatprep.mubr.msk.bf16.mxu1 %vm5209_vm2, %v5207_v0 }
  0x59   :  { %4523 = vmatmul.mubr.msk.bf16.gmra.mrb[40].mxu0 %vm129_vm3, %v5042_v27  ;;  %4571 = vmatmul.mubr.msk.bf16.gmra.mrb[40].mxu1 %vm129_vm3, %v5043_v28  ;;  %v5080_v28 = vld [vmem:[%s7012_s0 + $0x1b8] sm:$0xff]  }
  0x5a   :  { %4574 = vmatprep.mubr.msk.bf16.mxu1 %vm5209_vm2, %v5207_v0  ;;  %4594 = vmatprep.mubr.msk.bf16.mxu0 %vm5209_vm2, %v5207_v0 }
  0x61   :  { %4575 = vmatmul.mubr.msk.bf16.gmra.mrb[44].mxu1 %vm129_vm3, %v5044_v29  ;;  %4595 = vmatmul.mubr.msk.bf16.vlgmr.msra.gmra.mrb[44].mxu0 %vm129_vm3, %v5045_v30  ;;  %v5081_v29 = vld [vmem:[%s7012_s0 + $0x1fc] sm:$0xff]  }
  0x62   :  { %4703 = vmatpush3.bf16.msra.mxu0 %v5248_v1  ;;  %4578 = vmatprep.mubr.msk.bf16.mxu1 %vm5209_vm2, %v5207_v0 }
  0x63   :  { %4598 = vmatprep.mubr.msk.bf16.mxu0 %vm5209_vm2, %v5207_v0  ;;  %4704 = vmatprep.subr.bf16.mxu0 %v5207_v0 }
  0x66   :  { %4705 = vmatpush3.bf16.msra.mxu0 %v5257_v6 }
  0x67   :  { %4814 = vmatprep.subr.bf16.mxu0 %v5207_v0 }
  0x69   :  { %4579 = vmatmul.mubr.msk.bf16.gmra.mrb[48].mxu1 %vm129_vm3, %v5046_v31  ;;  %4599 = vmatmul.mubr.msk.bf16.gmra.mrb[48].mxu0 %vm129_vm3, %v5047_v32 }
  0x6a   :  { %4582 = vmatprep.mubr.msk.bf16.mxu1 %vm5209_vm2, %v5207_v0  ;;  %4602 = vmatprep.mubr.msk.bf16.mxu0 %vm5209_vm2, %v5207_v0 }
  0x71   :  { %4583 = vmatmul.mubr.msk.bf16.gmra.mrb[52].mxu1 %vm129_vm3, %v5048_v33  ;;  %4603 = vmatmul.mubr.msk.bf16.gmra.mrb[52].mxu0 %vm129_vm3, %v5049_v34 }
  0x72   :  { %4586 = vmatprep.mubr.msk.bf16.mxu1 %vm5209_vm2, %v5207_v0  ;;  %4606 = vmatprep.mubr.msk.bf16.mxu0 %vm5209_vm2, %v5207_v0 }
  0x79   :  { %4587 = vmatmul.mubr.msk.bf16.gmra.mrb[56].mxu1 %vm129_vm3, %v5050_v35  ;;  %4607 = vmatmul.mubr.msk.bf16.gmra.mrb[56].mxu0 %vm129_vm3, %v5051_v36 }
  0x7a   :  { %4610 = vmatprep.mubr.msk.bf16.mxu0 %vm5209_vm2, %v5207_v0  ;;  %4650 = vmatprep.mubr.msk.bf16.mxu1 %vm5209_vm2, %v5207_v0 }
  0x81   :  { %4611 = vmatmul.mubr.msk.bf16.gmra.mrb[60].mxu0 %vm129_vm3, %v5052_v37  ;;  %4651 = vmatmul.mubr.msk.bf16.vlgmr.msra.gmra.mrb[60].mxu1 %vm129_vm3, %v5053_v38 }
  0x82   :  { %4614 = vmatprep.mubr.msk.bf16.mxu0 %vm5209_vm2, %v5207_v0  ;;  %4654 = vmatprep.mubr.msk.bf16.mxu1 %vm5209_vm2, %v5207_v0 }
  0x83   :  { %4759 = vmatpush3.bf16.msra.mxu1 %v5248_v1 }
  0x84   :  { %4760 = vmatprep.subr.bf16.mxu1 %v5207_v0 }
  0x87   :  { %4761 = vmatpush3.bf16.msra.mxu1 %v5257_v6 }
  0x88   :  { %4870 = vmatprep.subr.bf16.mxu1 %v5207_v0 }
  0x89   :  { %4615 = vmatmul.mubr.msk.bf16.gmra.mrb[64].mxu0 %vm129_vm3, %v5054_v39  ;;  %4655 = vmatmul.mubr.msk.bf16.gmra.mrb[64].mxu1 %vm129_vm3, %v5055_v40 }
  0x8a   :  { %4618 = vmatprep.mubr.msk.bf16.mxu0 %vm5209_vm2, %v5207_v0  ;;  %4658 = vmatprep.mubr.msk.bf16.mxu1 %vm5209_vm2, %v5207_v0 }
  0x91   :  { %4619 = vmatmul.mubr.msk.bf16.gmra.mrb[68].mxu0 %vm129_vm3, %v5056_v41  ;;  %4659 = vmatmul.mubr.msk.bf16.gmra.mrb[68].mxu1 %vm129_vm3, %v5057_v42 }
  0x92   :  { %4622 = vmatprep.mubr.msk.bf16.mxu0 %vm5209_vm2, %v5207_v0  ;;  %4662 = vmatprep.mubr.msk.bf16.mxu1 %vm5209_vm2, %v5207_v0 }
  0x99   :  { %4623 = vmatmul.mubr.msk.bf16.gmra.mrb[72].mxu0 %vm129_vm3, %v5058_v43  ;;  %4663 = vmatmul.mubr.msk.bf16.gmra.mrb[72].mxu1 %vm129_vm3, %v5059_v44 }
  0x9a   :  { %4626 = vmatprep.mubr.msk.bf16.mxu0 %vm5209_vm2, %v5207_v0  ;;  %4666 = vmatprep.mubr.msk.bf16.mxu1 %vm5209_vm2, %v5207_v0 }
  0xa1   :  { %4627 = vmatmul.mubr.msk.bf16.gmra.mrb[76].mxu0 %vm129_vm3, %v5060_v45  ;;  %4667 = vmatmul.mubr.msk.bf16.gmra.mrb[76].mxu1 %vm129_vm3, %v5061_v46 }
  0xa2   :  { %4630 = vmatprep.mubr.msk.bf16.mxu0 %vm5209_vm2, %v5207_v0  ;;  %4670 = vmatprep.mubr.msk.bf16.mxu1 %vm5209_vm2, %v5207_v0 }
  0xa9   :  { %4631 = vmatmul.mubr.msk.bf16.gmra.mrb[80].mxu0 %vm129_vm3, %v5062_v47  ;;  %4671 = vmatmul.mubr.msk.bf16.gmra.mrb[80].mxu1 %vm129_vm3, %v5063_v48  ;;  %v5082_v47 = vld [vmem:[%s7012_s0 + $0x1c0] sm:$0xff]  }
  0xaa   :  { %4634 = vmatprep.mubr.msk.bf16.mxu0 %vm5209_vm2, %v5207_v0  ;;  %4674 = vmatprep.mubr.msk.bf16.mxu1 %vm5209_vm2, %v5207_v0  ;;  %v5083_v48 = vld [vmem:[%s7012_s0 + $0x204] sm:$0xff]  }
  0xb1   :  { %4635 = vmatmul.mubr.msk.bf16.gmra.mrb[84].mxu0 %vm129_vm3, %v5064_v49  ;;  %4675 = vmatmul.mubr.msk.bf16.gmra.mrb[84].mxu1 %vm129_vm3, %v5065_v50 }
  0xb2   :  { %4638 = vmatprep.mubr.msk.bf16.mxu0 %vm5209_vm2, %v5207_v0  ;;  %4678 = vmatprep.mubr.msk.bf16.mxu1 %vm5209_vm2, %v5207_v0 }
  0xb9   :  { %4639 = vmatmul.mubr.msk.bf16.gmra.mrb[88].mxu0 %vm129_vm3, %v5066_v51  ;;  %4679 = vmatmul.mubr.msk.bf16.gmra.mrb[88].mxu1 %vm129_vm3, %v5067_v52 }
  0xba   :  { %4642 = vmatprep.mubr.msk.bf16.mxu0 %vm5209_vm2, %v5207_v0  ;;  %4682 = vmatprep.mubr.msk.bf16.mxu1 %vm5209_vm2, %v5207_v0 }
  0xc1   :  { %4643 = vmatmul.mubr.msk.bf16.gmra.mrb[92].mxu0 %vm129_vm3, %v5068_v53  ;;  %4683 = vmatmul.mubr.msk.bf16.gmra.mrb[92].mxu1 %vm129_vm3, %v5069_v54 }
  0xc2   :  { %4686 = vmatprep.mubr.msk.bf16.mxu1 %vm5209_vm2, %v5207_v0  ;;  %4706 = vmatprep.mubr.msk.bf16.mxu0 %vm5209_vm2, %v5207_v0 }
  0xc9   :  { %4687 = vmatmul.mubr.msk.bf16.gmra.mrb[96].mxu1 %vm129_vm3, %v5070_v55  ;;  %4707 = vmatmul.mubr.msk.bf16.vlgmr.msra.gmra.mrb[96].mxu0 %vm129_vm3, %v5071_v56 }
  0xca   :  { %4815 = vmatpush3.bf16.msra.mxu0 %v5248_v1  ;;  %4690 = vmatprep.mubr.msk.bf16.mxu1 %vm5209_vm2, %v5207_v0 }
  0xcb   :  { %4710 = vmatprep.mubr.msk.bf16.mxu0 %vm5209_vm2, %v5207_v0  ;;  %4816 = vmatprep.subr.bf16.mxu0 %v5207_v0 }
  0xce   :  { %4817 = vmatpush3.bf16.msra.mxu0 %v5257_v6 }
  0xcf   :  { %4926 = vmatprep.subr.bf16.mxu0 %v5207_v0 }
  0xd1   :  { %4691 = vmatmul.mubr.msk.bf16.gmra.mrb[100].mxu1 %vm129_vm3, %v5072_v57  ;;  %4711 = vmatmul.mubr.msk.bf16.gmra.mrb[100].mxu0 %vm129_vm3, %v5073_v58 }
  0xd2   :  { %4694 = vmatprep.mubr.msk.bf16.mxu1 %vm5209_vm2, %v5207_v0  ;;  %4714 = vmatprep.mubr.msk.bf16.mxu0 %vm5209_vm2, %v5207_v0 }
  0xd9   :  { %4695 = vmatmul.mubr.msk.bf16.gmra.mrb[104].mxu1 %vm129_vm3, %v5074_v59  ;;  %4715 = vmatmul.mubr.msk.bf16.gmra.mrb[104].mxu0 %vm129_vm3, %v5075_v60 }
  0xda   :  { %4698 = vmatprep.mubr.msk.bf16.mxu1 %vm5209_vm2, %v5207_v0  ;;  %4718 = vmatprep.mubr.msk.bf16.mxu0 %vm5209_vm2, %v5207_v0 }
  0xdc   :  { %v210_v61 = vpop.f32.mrb[0].mxu0  ;;  %v5615_v62 = vpop.f32.mrb[0].mxu1 }
  0xdd   :  { %v4484_v63 = vpop.f32.mrb[1].mxu0  ;;  %v4528_v4 = vpop.f32.mrb[1].mxu1  ;;  %v211_v21 = vadd.f32 %v5642_v20, %v210_v61 }
  0xde   :  { %v213_v5 = vpop.f32.mrb[2].mxu0  ;;  %v5623_v7 = vpop.f32.mrb[2].mxu1 }
  0xdf   :  { %v4485_v8 = vpop.f32.mrb[3].mxu0  ;;  %v4529_v9 = vpop.f32.mrb[3].mxu1  ;;  %v214_v24 = vadd.f32 %v5642_v20, %v213_v5  ;;  %v312_v31 = vmax.f32 %v211_v21, 0.0 }
  0xe0   :  { %v5084_v8 = vld [vmem:[%s7012_s0 + $0x1c8] sm:$0xff]  }
  0xe1   :  { %4699 = vmatmul.mubr.msk.bf16.gmra.mrb[108].mxu1 %vm129_vm3, %v5076_v2  ;;  %4719 = vmatmul.mubr.msk.bf16.gmra.mrb[108].mxu0 %vm129_vm3, %v5077_v3  ;;  %v313_v36 = vmax.f32 %v214_v24, 0.0  ;;  %v5085_v9 = vld [vmem:[%s7012_s0 + $0x20c] sm:$0xff]  }
  0xe2   :  { %4722 = vmatprep.mubr.msk.bf16.mxu0 %vm5209_vm2, %v5207_v0  ;;  %4762 = vmatprep.mubr.msk.bf16.mxu1 %vm5209_vm2, %v5207_v0 }
  0xe4   :  { %v218_v10 = vpop.f32.mrb[4].mxu0  ;;  %v5631_v11 = vpop.f32.mrb[4].mxu1 }
  0xe5   :  { %v4488_v12 = vpop.f32.mrb[5].mxu0  ;;  %v4532_v13 = vpop.f32.mrb[5].mxu1  ;;  %v219_v39 = vadd.f32 %v5642_v20, %v218_v10 }
  0xe6   :  { %v221_v16 = vpop.f32.mrb[6].mxu0  ;;  %v309_v17 = vpop.f32.mrb[6].mxu1 }
  0xe7   :  { %v4489_v18 = vpop.f32.mrb[7].mxu0  ;;  %v4533_v19 = vpop.f32.mrb[7].mxu1  ;;  %v222_v43 = vadd.f32 %v5642_v20, %v221_v16  ;;  %v314_v51 = vmax.f32 %v219_v39, 0.0 }
  0xe9   :  { %4723 = vmatmul.mubr.msk.bf16.gmra.mrb[112].mxu0 %vm129_vm3, %v5078_v14  ;;  %4763 = vmatmul.mubr.msk.bf16.vlgmr.msra.gmra.mrb[112].mxu1 %vm129_vm3, %v5079_v15  ;;  %v315_v56 = vmax.f32 %v222_v43, 0.0 }
  0xea   :  { %4726 = vmatprep.mubr.msk.bf16.mxu0 %vm5209_vm2, %v5207_v0  ;;  %4766 = vmatprep.mubr.msk.bf16.mxu1 %vm5209_vm2, %v5207_v0 }
  0xeb   :  { %4871 = vmatpush3.bf16.msra.mxu1 %v5248_v1 }
  0xec   :  { %v226_v22 = vpop.f32.mrb[8].mxu0  ;;  %v499_v23 = vpop.f32.mrb[8].mxu1  ;;  %4872 = vmatprep.subr.bf16.mxu1 %v5207_v0 }
  0xed   :  { %v500_v25 = vadd.f32 %v5642_v20, %v499_v23  ;;  %v4492_v26 = vpop.f32.mrb[9].mxu0  ;;  %v4540_v27 = vpop.f32.mrb[9].mxu1  ;;  %v227_v59 = vadd.f32 %v5642_v20, %v226_v22 }
  0xee   :  { %v229_v30 = vpop.f32.mrb[10].mxu0  ;;  %v502_v1 = vpop.f32.mrb[10].mxu1 }
  0xef   :  { %v601_v32 = vmax.f32 %v500_v25, 0.0  ;;  %v503_v33 = vadd.f32 %v5642_v20, %v502_v1  ;;  %v4493_v34 = vpop.f32.mrb[11].mxu0  ;;  %v4541_v35 = vpop.f32.mrb[11].mxu1  ;;  %4873 = vmatpush3.bf16.msra.mxu1 %v5257_v6  ;;  %v230_v2 = vadd.f32 %v5642_v20, %v229_v30  ;;  %v316_v13 = vmax.f32 %v227_v59, 0.0  ;;  %v5086_v30 = vld [vmem:[%s7012_s0 + $0x1d0] sm:$0xff]  }
  0xf0   :  { %v5087_v1 = vld [vmem:[%s7012_s0 + $0x214] sm:$0xff]  }
  0xf1   :  { %v5663_v37 = vadd.f32 %v601_v32, %v312_v31  ;;  %v602_v38 = vmax.f32 %v503_v33, 0.0  ;;  %4727 = vmatmul.mubr.msk.bf16.gmra.mrb[116].mxu0 %vm129_vm3, %v5080_v28  ;;  %4767 = vmatmul.mubr.msk.bf16.gmra.mrb[116].mxu1 %vm129_vm3, %v5081_v29  ;;  %v317_v18 = vmax.f32 %v230_v2, 0.0 }
  0xf2   :  { %4730 = vmatprep.mubr.msk.bf16.mxu0 %vm5209_vm2, %v5207_v0  ;;  %4770 = vmatprep.mubr.msk.bf16.mxu1 %vm5209_vm2, %v5207_v0 }
  0xf3   :  { %v5672_v40 = vadd.f32 %v602_v38, %v313_v36 }
  0xf4   :  { %v234_v41 = vpop.f32.mrb[12].mxu0  ;;  %v507_v42 = vpop.f32.mrb[12].mxu1 }
  0xf5   :  { %v508_v44 = vadd.f32 %v5642_v20, %v507_v42  ;;  %v4496_v45 = vpop.f32.mrb[13].mxu0  ;;  %v4544_v46 = vpop.f32.mrb[13].mxu1  ;;  %v235_v22 = vadd.f32 %v5642_v20, %v234_v41 }
  0xf6   :  { %v237_v49 = vpop.f32.mrb[14].mxu0  ;;  %v510_v50 = vpop.f32.mrb[14].mxu1 }
  0xf7   :  { %v603_v52 = vmax.f32 %v508_v44, 0.0  ;;  %v511_v53 = vadd.f32 %v5642_v20, %v510_v50  ;;  %v4497_v54 = vpop.f32.mrb[15].mxu0  ;;  %v4545_v55 = vpop.f32.mrb[15].mxu1  ;;  %v238_v26 = vadd.f32 %v5642_v20, %v237_v49  ;;  %v318_v33 = vmax.f32 %v235_v22, 0.0 }
  0xf9   :  { %v5683_v57 = vadd.f32 %v603_v52, %v314_v51  ;;  %v604_v58 = vmax.f32 %v511_v53, 0.0  ;;  %4731 = vmatmul.mubr.msk.bf16.gmra.mrb[120].mxu0 %vm129_vm3, %v5082_v47  ;;  %4771 = vmatmul.mubr.msk.bf16.gmra.mrb[120].mxu1 %vm129_vm3, %v5083_v48  ;;  %v319_v39 = vmax.f32 %v238_v26, 0.0  ;;  %v5088_v51 = vld [vmem:[%s7012_s0 + $0x1d8] sm:$0xff]  }
  0xfa   :  { %4734 = vmatprep.mubr.msk.bf16.mxu0 %vm5209_vm2, %v5207_v0  ;;  %4774 = vmatprep.mubr.msk.bf16.mxu1 %vm5209_vm2, %v5207_v0  ;;  %v5089_v52 = vld [vmem:[%s7012_s0 + $0x21c] sm:$0xff]  }
  0xfb   :  { %v5692_v60 = vadd.f32 %v604_v58, %v315_v56 }
  0xfc   :  { %v242_v61 = vpop.f32.mrb[16].mxu0  ;;  %v515_v63 = vpop.f32.mrb[16].mxu1 }
  0xfd   :  { %v516_v3 = vadd.f32 %v5642_v20, %v515_v63  ;;  %v4500_v4 = vpop.f32.mrb[17].mxu0  ;;  %v4548_v5 = vpop.f32.mrb[17].mxu1  ;;  %v243_v43 = vadd.f32 %v5642_v20, %v242_v61 }
  0xfe   :  { %v245_v10 = vpop.f32.mrb[18].mxu0  ;;  %v518_v12 = vpop.f32.mrb[18].mxu1 }
  0xff   :  { %v605_v14 = vmax.f32 %v516_v3, 0.0  ;;  %v519_v15 = vadd.f32 %v5642_v20, %v518_v12  ;;  %v4501_v16 = vpop.f32.mrb[19].mxu0  ;;  %v4549_v17 = vpop.f32.mrb[19].mxu1  ;;  %v246_v47 = vadd.f32 %v5642_v20, %v245_v10  ;;  %v320_v55 = vmax.f32 %v243_v43, 0.0 }
 0x100   :  { %v5091_v16 = vld [vmem:[%s7012_s0 + $0x224] sm:$0xff]  }
 0x101   :  { %v5703_v19 = vadd.f32 %v605_v14, %v316_v13  ;;  %v606_v21 = vmax.f32 %v519_v15, 0.0  ;;  %4735 = vmatmul.mubr.msk.bf16.gmra.mrb[124].mxu0 %vm129_vm3, %v5084_v8  ;;  %4775 = vmatmul.mubr.msk.bf16.gmra.mrb[124].mxu1 %vm129_vm3, %v5085_v9  ;;  %v321_v63 = vmax.f32 %v246_v47, 0.0  ;;  %v5090_v15 = vld [vmem:[%s7012_s0 + $0x1e0] sm:$0xff]  }
 0x102   :  { %4738 = vmatprep.mubr.msk.bf16.mxu0 %vm5209_vm2, %v5207_v0  ;;  %4778 = vmatprep.mubr.msk.bf16.mxu1 %vm5209_vm2, %v5207_v0 }
 0x103   :  { %v5712_v23 = vadd.f32 %v606_v21, %v317_v18 }
 0x104   :  { %v250_v24 = vpop.f32.mrb[20].mxu0  ;;  %v523_v25 = vpop.f32.mrb[20].mxu1 }
 0x105   :  { %v524_v27 = vadd.f32 %v5642_v20, %v523_v25  ;;  %v4504_v28 = vpop.f32.mrb[21].mxu0  ;;  %v4552_v29 = vpop.f32.mrb[21].mxu1  ;;  %v251_v4 = vadd.f32 %v5642_v20, %v250_v24 }
 0x106   :  { %v253_v31 = vpop.f32.mrb[22].mxu0  ;;  %v526_v32 = vpop.f32.mrb[22].mxu1 }
 0x107   :  { %v607_v34 = vmax.f32 %v524_v27, 0.0  ;;  %v527_v35 = vadd.f32 %v5642_v20, %v526_v32  ;;  %v4505_v36 = vpop.f32.mrb[23].mxu0  ;;  %v4553_v38 = vpop.f32.mrb[23].mxu1  ;;  %v254_v10 = vadd.f32 %v5642_v20, %v253_v31  ;;  %v322_v21 = vmax.f32 %v251_v4, 0.0  ;;  %v5095_v4 = vld [vmem:[%s7012_s0 + $0x234] sm:$0xff]  }
 0x108   :  { %v5092_v38 = vld [vmem:[%s7012_s0 + $0x1e8] sm:$0xff]  }
 0x109   :  { %v5723_v41 = vadd.f32 %v607_v34, %v318_v33  ;;  %v608_v42 = vmax.f32 %v527_v35, 0.0  ;;  %4739 = vmatmul.mubr.msk.bf16.gmra.mrb[128].mxu0 %vm129_vm3, %v5086_v30  ;;  %4779 = vmatmul.mubr.msk.bf16.gmra.mrb[128].mxu1 %vm129_vm3, %v5087_v1  ;;  %v323_v27 = vmax.f32 %v254_v10, 0.0 }
 0x10a   :  { %4742 = vmatprep.mubr.msk.bf16.mxu0 %vm5209_vm2, %v5207_v0  ;;  %4782 = vmatprep.mubr.msk.bf16.mxu1 %vm5209_vm2, %v5207_v0 }
 0x10b   :  { %v5732_v44 = vadd.f32 %v608_v42, %v319_v39  ;;  %v5093_v39 = vld [vmem:[%s7012_s0 + $0x22c] sm:$0xff]  }
 0x10c   :  { %v258_v45 = vpop.f32.mrb[24].mxu0  ;;  %v531_v46 = vpop.f32.mrb[24].mxu1 }
 0x10d   :  { %v532_v48 = vadd.f32 %v5642_v20, %v531_v46  ;;  %v4508_v49 = vpop.f32.mrb[25].mxu0  ;;  %v4556_v50 = vpop.f32.mrb[25].mxu1  ;;  %v259_v30 = vadd.f32 %v5642_v20, %v258_v45 }
 0x10e   :  { %v261_v53 = vpop.f32.mrb[26].mxu0  ;;  %v534_v54 = vpop.f32.mrb[26].mxu1 }
 0x10f   :  { %v609_v56 = vmax.f32 %v532_v48, 0.0  ;;  %v535_v58 = vadd.f32 %v5642_v20, %v534_v54  ;;  %v4509_v59 = vpop.f32.mrb[27].mxu0  ;;  %v4557_v61 = vpop.f32.mrb[27].mxu1  ;;  %v262_v33 = vadd.f32 %v5642_v20, %v261_v53  ;;  %v324_v45 = vmax.f32 %v259_v30, 0.0 }
 0x111   :  { %v5743_v2 = vadd.f32 %v609_v56, %v320_v55  ;;  %v610_v3 = vmax.f32 %v535_v58, 0.0  ;;  %4743 = vmatmul.mubr.msk.bf16.gmra.mrb[132].mxu0 %vm129_vm3, %v5088_v51  ;;  %4783 = vmatmul.mubr.msk.bf16.gmra.mrb[132].mxu1 %vm129_vm3, %v5089_v52  ;;  %v325_v50 = vmax.f32 %v262_v33, 0.0  ;;  %v5097_v33 = vld [vmem:[%s7012_s0 + $0x258] sm:$0xff]  }
 0x112   :  { %4746 = vmatprep.mubr.msk.bf16.mxu0 %vm5209_vm2, %v5207_v0  ;;  %4786 = vmatprep.mubr.msk.bf16.mxu1 %vm5209_vm2, %v5207_v0 }
 0x113   :  { %v5752_v5 = vadd.f32 %v610_v3, %v321_v63  ;;  %v5094_v3 = vld [vmem:[%s7012_s0 + $0x1f0] ss:$0 sps:$4 sm:$0xff]  }
 0x114   :  { %v266_v8 = vpop.f32.mrb[28].mxu0  ;;  %v539_v9 = vpop.f32.mrb[28].mxu1 }
 0x115   :  { %v540_v12 = vadd.f32 %v5642_v20, %v539_v9  ;;  %v4512_v13 = vpop.f32.mrb[29].mxu0  ;;  %v4560_v14 = vpop.f32.mrb[29].mxu1  ;;  %v267_v53 = vadd.f32 %v5642_v20, %v266_v8 }
 0x116   :  { %v269_v17 = vpop.f32.mrb[30].mxu0  ;;  %v542_v18 = vpop.f32.mrb[30].mxu1 }
 0x117   :  { %v611_v22 = vmax.f32 %v540_v12, 0.0  ;;  %v543_v24 = vadd.f32 %v5642_v20, %v542_v18  ;;  %v4513_v25 = vpop.f32.mrb[31].mxu0  ;;  %v4561_v26 = vpop.f32.mrb[31].mxu1  ;;  %v270_v58 = vadd.f32 %v5642_v20, %v269_v17  ;;  %v326_v10 = vmax.f32 %v267_v53, 0.0 }
 0x119   :  { %v5763_v28 = vadd.f32 %v611_v22, %v322_v21  ;;  %v612_v29 = vmax.f32 %v543_v24, 0.0  ;;  %4747 = vmatmul.mubr.msk.bf16.gmra.mrb[136].mxu0 %vm129_vm3, %v5090_v15  ;;  %4787 = vmatmul.mubr.msk.bf16.gmra.mrb[136].mxu1 %vm129_vm3, %v5091_v16  ;;  %v327_v16 = vmax.f32 %v270_v58, 0.0 }
 0x11a   :  { %4750 = vmatprep.mubr.msk.bf16.mxu0 %vm5209_vm2, %v5207_v0  ;;  %4790 = vmatprep.mubr.msk.bf16.mxu1 %vm5209_vm2, %v5207_v0 }
 0x11b   :  { %v5772_v1 = vadd.f32 %v612_v29, %v323_v27 }
 0x11c   :  { %v274_v31 = vpop.f32.mrb[32].mxu0  ;;  %v547_v32 = vpop.f32.mrb[32].mxu1 }
 0x11d   :  { %v548_v34 = vadd.f32 %v5642_v20, %v547_v32  ;;  %v4516_v35 = vpop.f32.mrb[33].mxu0  ;;  %v4564_v36 = vpop.f32.mrb[33].mxu1  ;;  %v275_v21 = vadd.f32 %v5642_v20, %v274_v31  ;;  %v5096_v32 = vld [vmem:[%s7012_s0 + $0x23c] sm:$0xff]  }
 0x11e   :  { %v277_v42 = vpop.f32.mrb[34].mxu0  ;;  %v550_v43 = vpop.f32.mrb[34].mxu1 }
 0x11f   :  { %v613_v46 = vmax.f32 %v548_v34, 0.0  ;;  %v551_v47 = vadd.f32 %v5642_v20, %v550_v43  ;;  %v4517_v48 = vpop.f32.mrb[35].mxu0  ;;  %v4565_v49 = vpop.f32.mrb[35].mxu1  ;;  %v278_v26 = vadd.f32 %v5642_v20, %v277_v42  ;;  %v328_v35 = vmax.f32 %v275_v21, 0.0 }
 0x120   :  { %v5204_v48 = vld [vmem:[%s7011_s1] sm:$0xff]  }
 0x121   :  { %v5783_v51 = vadd.f32 %v613_v46, %v324_v45  ;;  %v614_v52 = vmax.f32 %v551_v47, 0.0  ;;  %4751 = vmatmul.mubr.msk.bf16.gmra.mrb[140].mxu0 %vm129_vm3, %v5092_v38  ;;  %4791 = vmatmul.mubr.msk.bf16.gmra.mrb[140].mxu1 %vm129_vm3, %v5093_v39  ;;  %v329_v43 = vmax.f32 %v278_v26, 0.0 }
 0x122   :  { %4754 = vmatprep.mubr.msk.bf16.mxu0 %vm5209_vm2, %v5207_v0  ;;  %4794 = vmatprep.mubr.msk.bf16.mxu1 %vm5209_vm2, %v5207_v0 }
 0x123   :  { %v5792_v54 = vadd.f32 %v614_v52, %v325_v50 }
 0x124   :  { %v282_v55 = vpop.f32.mrb[36].mxu0  ;;  %v555_v56 = vpop.f32.mrb[36].mxu1 }
 0x125   :  { %v556_v59 = vadd.f32 %v5642_v20, %v555_v56  ;;  %v4520_v61 = vpop.f32.mrb[37].mxu0  ;;  %v4568_v63 = vpop.f32.mrb[37].mxu1  ;;  %v283_v47 = vadd.f32 %v5642_v20, %v282_v55 }
 0x126   :  { %v285_v9 = vpop.f32.mrb[38].mxu0  ;;  %v558_v8 = vpop.f32.mrb[38].mxu1  ;;  %v5098_v61 = vld [vmem:[%s7012_s0 + $0x244] sm:$0xff]  }
 0x127   :  { %v615_v12 = vmax.f32 %v556_v59, 0.0  ;;  %v559_v13 = vadd.f32 %v5642_v20, %v558_v8  ;;  %v4521_v14 = vpop.f32.mrb[39].mxu0  ;;  %v4569_v15 = vpop.f32.mrb[39].mxu1  ;;  %v286_v50 = vadd.f32 %v5642_v20, %v285_v9  ;;  %v5099_v63 = vld [vmem:[%s7012_s0 + $0x260] sm:$0xff]  }
 0x129   :  { %v5803_v17 = vadd.f32 %v615_v12, %v326_v10  ;;  %v616_v18 = vmax.f32 %v559_v13, 0.0  ;;  %4755 = vmatmul.mubr.msk.bf16.gmra.mrb[144].mxu0 %vm129_vm3, %v5094_v3  ;;  %4795 = vmatmul.mubr.msk.bf16.gmra.mrb[144].mxu1 %vm129_vm3, %v5095_v4  ;;  %v330_v3 = vmax.f32 %v283_v47, 0.0 }
 0x12a   :  { %4798 = vmatprep.mubr.msk.bf16.mxu1 %vm5209_vm2, %v5207_v0  ;;  %4818 = vmatprep.mubr.msk.bf16.mxu0 %vm5209_vm2, %v5207_v0 }
 0x12b   :  { %v5812_v22 = vadd.f32 %v616_v18, %v327_v16  ;;  %v331_v16 = vmax.f32 %v286_v50, 0.0 }
 0x12c   :  { %v290_v24 = vpop.f32.mrb[40].mxu0  ;;  %v563_v25 = vpop.f32.mrb[40].mxu1 }
 0x12d   :  { %v564_v27 = vadd.f32 %v5642_v20, %v563_v25  ;;  %v4524_v29 = vpop.f32.mrb[41].mxu0  ;;  %v4572_v30 = vpop.f32.mrb[41].mxu1 }
 0x12e   :  { %v293_v34 = vpop.f32.mrb[42].mxu0  ;;  %v566_v31 = vpop.f32.mrb[42].mxu1 }
 0x12f   :  { %v617_v36 = vmax.f32 %v564_v27, 0.0  ;;  %v567_v38 = vadd.f32 %v5642_v20, %v566_v31  ;;  %v4525_v39 = vpop.f32.mrb[43].mxu0  ;;  %v4573_v42 = vpop.f32.mrb[43].mxu1 }
 0x131   :  { %v5823_v45 = vadd.f32 %v617_v36, %v328_v35  ;;  %v618_v46 = vmax.f32 %v567_v38, 0.0  ;;  %4799 = vmatmul.mubr.msk.bf16.gmra.mrb[148].mxu1 %vm129_vm3, %v5096_v32  ;;  %4819 = vmatmul.mubr.msk.bf16.vlgmr.msra.gmra.mrb[148].mxu0 %vm129_vm3, %v5097_v33  ;;  %v5100_v36 = vld [vmem:[%s7012_s0 + $0x24c] sm:$0xff]  }
 0x132   :  { %4927 = vmatpush3.bf16.msra.mxu0 %v5204_v48  ;;  %4802 = vmatprep.mubr.msk.bf16.mxu1 %vm5209_vm2, %v5207_v0  ;;  %v5101_v38 = vld [vmem:[%s7012_s0 + $0x268] sm:$0xff]  }
 0x133   :  { %v5833_v49 = vadd.f32 %v618_v46, %v329_v43  ;;  %4822 = vmatprep.mubr.msk.bf16.mxu0 %vm5209_vm2, %v5207_v0  ;;  %4928 = vmatprep.subr.bf16.mxu0 %v5207_v0 }
 0x134   :  { %v571_v52 = vpop.f32.mrb[44].mxu1  ;;  %v813_v53 = vpop.f32.mrb[44].mxu0 }
 0x135   :  { %v572_v55 = vadd.f32 %v5642_v20, %v571_v52  ;;  %v814_v56 = vadd.f32 %v5642_v20, %v813_v53  ;;  %v4576_v58 = vpop.f32.mrb[45].mxu1  ;;  %v4596_v59 = vpop.f32.mrb[45].mxu0 }
 0x136   :  { %v574_v4 = vpop.f32.mrb[46].mxu1  ;;  %v816_v8 = vpop.f32.mrb[46].mxu0  ;;  %4929 = vmatpush3.bf16.msra.mxu0 %v5257_v6  ;;  %v291_v6 = vadd.f32 %v5642_v20, %v290_v24  ;;  %v299_v59 = vadd.f32 %v5642_v20, %v5615_v62 }
 0x137   :  { %v619_v9 = vmax.f32 %v572_v55, 0.0  ;;  %v915_v10 = vmax.f32 %v814_v56, 0.0  ;;  %v575_v12 = vadd.f32 %v5642_v20, %v574_v4  ;;  %v817_v13 = vadd.f32 %v5642_v20, %v816_v8  ;;  %v4597_v14 = vpop.f32.mrb[47].mxu0  ;;  %v4577_v15 = vpop.f32.mrb[47].mxu1  ;;  %4990 = vmatprep.subr.bf16.mxu0 %v5207_v0 }
 0x139   :  { %v5851_v18 = vadd.f32 %v619_v9, %v330_v3  ;;  %v5854_v21 = vadd.f32 %v915_v10, %v5663_v37  ;;  %v620_v25 = vmax.f32 %v575_v12, 0.0  ;;  %v916_v26 = vmax.f32 %v817_v13, 0.0  ;;  %4803 = vmatmul.mubr.msk.bf16.gmra.mrb[152].mxu1 %vm129_vm3, %v5098_v61  ;;  %4823 = vmatmul.mubr.msk.bf16.gmra.mrb[152].mxu0 %vm129_vm3, %v5099_v63  ;;  %v5102_v12 = vld [vmem:[%s7012_s0 + $0x254] ss:$0 sps:$4 sm:$0xff]  }
 0x13a   :  { %4806 = vmatprep.mubr.msk.bf16.mxu1 %vm5209_vm2, %v5207_v0  ;;  %4826 = vmatprep.mubr.msk.bf16.mxu0 %vm5209_vm2, %v5207_v0  ;;  %v294_v37 = vadd.f32 %v5642_v20, %v293_v34  ;;  %v302_v63 = vadd.f32 %v5642_v20, %v5623_v7  ;;  %v334_v13 = vmax.f32 %v299_v59, 0.0 }
 0x13b   :  { %v5863_v27 = vadd.f32 %v620_v25, %v331_v16  ;;  %v5866_v29 = vadd.f32 %v916_v26, %v5672_v40  ;;  %v332_v40 = vmax.f32 %v291_v6, 0.0 }
 0x13c   :  { %v579_v30 = vpop.f32.mrb[48].mxu1  ;;  %v821_v32 = vpop.f32.mrb[48].mxu0  ;;  %v333_v52 = vmax.f32 %v294_v37, 0.0 }
 0x13d   :  { %v580_v33 = vadd.f32 %v5642_v20, %v579_v30  ;;  %v822_v31 = vadd.f32 %v5642_v20, %v821_v32  ;;  %v4580_v24 = vpop.f32.mrb[49].mxu1  ;;  %v4600_v35 = vpop.f32.mrb[49].mxu0  ;;  %v335_v30 = vmax.f32 %v302_v63, 0.0 }
 0x13e   :  { %v582_v39 = vpop.f32.mrb[50].mxu1  ;;  %v824_v42 = vpop.f32.mrb[50].mxu0  ;;  %v307_v35 = vadd.f32 %v5642_v20, %v5631_v11  ;;  %v5105_v11 = vld [vmem:[%s7012_s0 + $0x2bc] sm:$0xff]  }
 0x13f   :  { %v621_v34 = vmax.f32 %v580_v33, 0.0  ;;  %v917_v43 = vmax.f32 %v822_v31, 0.0  ;;  %v583_v46 = vadd.f32 %v5642_v20, %v582_v39  ;;  %v825_v47 = vadd.f32 %v5642_v20, %v824_v42  ;;  %v4601_v48 = vpop.f32.mrb[51].mxu0  ;;  %v4581_v50 = vpop.f32.mrb[51].mxu1 }
 0x141   :  { %v5879_v53 = vadd.f32 %v621_v34, %v332_v40  ;;  %v5882_v55 = vadd.f32 %v917_v43, %v5683_v57  ;;  %v622_v56 = vmax.f32 %v583_v46, 0.0  ;;  %v918_v58 = vmax.f32 %v825_v47, 0.0  ;;  %4807 = vmatmul.mubr.msk.bf16.gmra.mrb[156].mxu1 %vm129_vm3, %v5100_v36  ;;  %4827 = vmatmul.mubr.msk.bf16.gmra.mrb[156].mxu0 %vm129_vm3, %v5101_v38  ;;  %v5104_v46 = vld [vmem:[%s7012_s0 + $0x278] sm:$0xff]  }
 0x142   :  { %4810 = vmatprep.mubr.msk.bf16.mxu1 %vm5209_vm2, %v5207_v0  ;;  %4830 = vmatprep.mubr.msk.bf16.mxu0 %vm5209_vm2, %v5207_v0 }
 0x143   :  { %v5892_v61 = vadd.f32 %v622_v56, %v333_v52  ;;  %v5895_v57 = vadd.f32 %v918_v58, %v5692_v60  ;;  %v5103_v60 = vld [vmem:[%s7012_s0 + $0x270] sm:$0xff]  }
 0x144   :  { %v587_v3 = vpop.f32.mrb[52].mxu1  ;;  %v829_v4 = vpop.f32.mrb[52].mxu0 }
 0x145   :  { %v588_v8 = vadd.f32 %v5642_v20, %v587_v3  ;;  %v830_v62 = vadd.f32 %v5642_v20, %v829_v4  ;;  %v4584_v9 = vpop.f32.mrb[53].mxu1  ;;  %v4604_v10 = vpop.f32.mrb[53].mxu0 }
 0x146   :  { %v590_v14 = vpop.f32.mrb[54].mxu1  ;;  %v832_v15 = vpop.f32.mrb[54].mxu0 }
 0x147   :  { %v623_v7 = vmax.f32 %v588_v8, 0.0  ;;  %v919_v16 = vmax.f32 %v830_v62, 0.0  ;;  %v591_v25 = vadd.f32 %v5642_v20, %v590_v14  ;;  %v833_v26 = vadd.f32 %v5642_v20, %v832_v15  ;;  %v4605_v6 = vpop.f32.mrb[55].mxu0  ;;  %v4585_v37 = vpop.f32.mrb[55].mxu1  ;;  %v5107_v14 = vld [vmem:[%s7012_s0 + $0x2c4] sm:$0xff]  }
 0x149   :  { %v5909_v32 = vadd.f32 %v623_v7, %v334_v13  ;;  %v5912_v33 = vadd.f32 %v919_v16, %v5703_v19  ;;  %v624_v31 = vmax.f32 %v591_v25, 0.0  ;;  %v920_v24 = vmax.f32 %v833_v26, 0.0  ;;  %4811 = vmatmul.mubr.msk.bf16.gmra.mrb[160].mxu1 %vm129_vm3, %v5102_v12  ;;  %4831 = vmatmul.mubr.msk.bf16.gmra.mrb[160].mxu0 %vm129_vm3, %v5103_v60  ;;  %v5106_v13 = vld [vmem:[%s7012_s0 + $0x280] sm:$0xff]  }
 0x14a   :  { %4834 = vmatprep.mubr.msk.bf16.mxu0 %vm5209_vm2, %v5207_v0  ;;  %4874 = vmatprep.mubr.msk.bf16.mxu1 %vm5209_vm2, %v5207_v0 }
 0x14b   :  { %v5922_v36 = vadd.f32 %v624_v31, %v335_v30  ;;  %v5925_v19 = vadd.f32 %v920_v24, %v5712_v23  ;;  %v336_v23 = vmax.f32 %v307_v35, 0.0 }
 0x14c   :  { %v595_v38 = vpop.f32.mrb[56].mxu1  ;;  %v837_v40 = vpop.f32.mrb[56].mxu0 }
 0x14d   :  { %v596_v39 = vadd.f32 %v5642_v20, %v595_v38  ;;  %v838_v42 = vadd.f32 %v5642_v20, %v837_v40  ;;  %v4608_v34 = vpop.f32.mrb[57].mxu0  ;;  %v4588_v43 = vpop.f32.mrb[57].mxu1 }
 0x14e   :  { %v840_v47 = vpop.f32.mrb[58].mxu0  ;;  %v598_v48 = vpop.f32.mrb[58].mxu1 }
 0x14f   :  { %v625_v50 = vmax.f32 %v596_v39, 0.0  ;;  %v921_v52 = vmax.f32 %v838_v42, 0.0  ;;  %v841_v56 = vadd.f32 %v5642_v20, %v840_v47  ;;  %v4609_v58 = vpop.f32.mrb[59].mxu0  ;;  %v4589_v59 = vpop.f32.mrb[59].mxu1 }
 0x151   :  { %v5936_v63 = vadd.f32 %v625_v50, %v336_v23  ;;  %v5939_v3 = vadd.f32 %v921_v52, %v5723_v41  ;;  %v922_v4 = vmax.f32 %v841_v56, 0.0  ;;  %4835 = vmatmul.mubr.msk.bf16.gmra.mrb[164].mxu0 %vm129_vm3, %v5104_v46  ;;  %4875 = vmatmul.mubr.msk.bf16.vlgmr.msra.gmra.mrb[164].mxu1 %vm129_vm3, %v5105_v11  ;;  %v5108_v46 = vld [vmem:[%s7012_s0 + $0x288] sm:$0xff]  }
 0x152   :  { %4838 = vmatprep.mubr.msk.bf16.mxu0 %vm5209_vm2, %v5207_v0  ;;  %4878 = vmatprep.mubr.msk.bf16.mxu1 %vm5209_vm2, %v5207_v0 }
 0x153   :  { %v5948_v8 = vadd.f32 %v922_v4, %v5732_v44 }
 0x154   :  { %v845_v62 = vpop.f32.mrb[60].mxu0  ;;  %v1127_v9 = vpop.f32.mrb[60].mxu1 }
 0x155   :  { %v846_v10 = vadd.f32 %v5642_v20, %v845_v62  ;;  %v1128_v41 = vadd.f32 %v5642_v20, %v1127_v9  ;;  %v4612_v12 = vpop.f32.mrb[61].mxu0  ;;  %v4652_v60 = vpop.f32.mrb[61].mxu1 }
 0x156   :  { %v848_v15 = vpop.f32.mrb[62].mxu0  ;;  %v1130_v7 = vpop.f32.mrb[62].mxu1 }
 0x157   :  { %v923_v44 = vmax.f32 %v846_v10, 0.0  ;;  %v1229_v16 = vmax.f32 %v1128_v41, 0.0  ;;  %v849_v25 = vadd.f32 %v5642_v20, %v848_v15  ;;  %v1131_v26 = vadd.f32 %v5642_v20, %v1130_v7  ;;  %v4613_v6 = vpop.f32.mrb[63].mxu0  ;;  %v4653_v37 = vpop.f32.mrb[63].mxu1 }
 0x159   :  { %v5961_v30 = vadd.f32 %v923_v44, %v5743_v2  ;;  %v5964_v31 = vadd.f32 %v1229_v16, %v5854_v21  ;;  %v924_v24 = vmax.f32 %v849_v25, 0.0  ;;  %v1230_v35 = vmax.f32 %v1131_v26, 0.0  ;;  %4839 = vmatmul.mubr.msk.bf16.gmra.mrb[168].mxu0 %vm129_vm3, %v5106_v13  ;;  %4879 = vmatmul.mubr.msk.bf16.gmra.mrb[168].mxu1 %vm129_vm3, %v5107_v14  ;;  %v5110_v14 = vld [vmem:[%s7012_s0 + $0x290] sm:$0xff]  }
 0x15a   :  { %4842 = vmatprep.mubr.msk.bf16.mxu0 %vm5209_vm2, %v5207_v0  ;;  %4882 = vmatprep.mubr.msk.bf16.mxu1 %vm5209_vm2, %v5207_v0 }
 0x15b   :  { %v5973_v38 = vadd.f32 %v924_v24, %v5752_v5  ;;  %v5976_v2 = vadd.f32 %v1230_v35, %v5866_v29  ;;  %v5109_v5 = vld [vmem:[%s7012_s0 + $0x2cc] sm:$0xff]  }
 0x15c   :  { %v853_v21 = vpop.f32.mrb[64].mxu0  ;;  %v1135_v40 = vpop.f32.mrb[64].mxu1 }
 0x15d   :  { %v854_v39 = vadd.f32 %v5642_v20, %v853_v21  ;;  %v1136_v42 = vadd.f32 %v5642_v20, %v1135_v40  ;;  %v4616_v34 = vpop.f32.mrb[65].mxu0  ;;  %v4656_v43 = vpop.f32.mrb[65].mxu1 }
 0x15e   :  { %v856_v11 = vpop.f32.mrb[66].mxu0  ;;  %v1138_v47 = vpop.f32.mrb[66].mxu1 }
 0x15f   :  { %v925_v29 = vmax.f32 %v854_v39, 0.0  ;;  %v1231_v48 = vmax.f32 %v1136_v42, 0.0  ;;  %v857_v23 = vadd.f32 %v5642_v20, %v856_v11  ;;  %v1139_v50 = vadd.f32 %v5642_v20, %v1138_v47  ;;  %v4617_v52 = vpop.f32.mrb[67].mxu0  ;;  %v4657_v56 = vpop.f32.mrb[67].mxu1 }
 0x161   :  { %v5989_v58 = vadd.f32 %v925_v29, %v5763_v28  ;;  %v5992_v59 = vadd.f32 %v1231_v48, %v5882_v55  ;;  %v926_v4 = vmax.f32 %v857_v23, 0.0  ;;  %v1232_v62 = vmax.f32 %v1139_v50, 0.0  ;;  %4843 = vmatmul.mubr.msk.bf16.gmra.mrb[172].mxu0 %vm129_vm3, %v5108_v46  ;;  %4883 = vmatmul.mubr.msk.bf16.gmra.mrb[172].mxu1 %vm129_vm3, %v5109_v5  ;;  %v5112_v5 = vld [vmem:[%s7012_s0 + $0x298] sm:$0xff]  }
 0x162   :  { %4846 = vmatprep.mubr.msk.bf16.mxu0 %vm5209_vm2, %v5207_v0  ;;  %4886 = vmatprep.mubr.msk.bf16.mxu1 %vm5209_vm2, %v5207_v0 }
 0x163   :  { %v6001_v9 = vadd.f32 %v926_v4, %v5772_v1  ;;  %v6004_v28 = vadd.f32 %v1232_v62, %v5895_v57  ;;  %v5111_v1 = vld [vmem:[%s7012_s0 + $0x2d4] sm:$0xff]  }
 0x164   :  { %v861_v55 = vpop.f32.mrb[68].mxu0  ;;  %v1143_v10 = vpop.f32.mrb[68].mxu1 }
 0x165   :  { %v862_v41 = vadd.f32 %v5642_v20, %v861_v55  ;;  %v1144_v12 = vadd.f32 %v5642_v20, %v1143_v10  ;;  %v4620_v60 = vpop.f32.mrb[69].mxu0  ;;  %v4660_v13 = vpop.f32.mrb[69].mxu1 }
 0x166   :  { %v864_v15 = vpop.f32.mrb[70].mxu0  ;;  %v1146_v7 = vpop.f32.mrb[70].mxu1 }
 0x167   :  { %v927_v57 = vmax.f32 %v862_v41, 0.0  ;;  %v1233_v44 = vmax.f32 %v1144_v12, 0.0  ;;  %v865_v16 = vadd.f32 %v5642_v20, %v864_v15  ;;  %v1147_v25 = vadd.f32 %v5642_v20, %v1146_v7  ;;  %v4621_v26 = vpop.f32.mrb[71].mxu0  ;;  %v4661_v6 = vpop.f32.mrb[71].mxu1 }
 0x169   :  { %v6017_v37 = vadd.f32 %v927_v57, %v5783_v51  ;;  %v6020_v24 = vadd.f32 %v1233_v44, %v5912_v33  ;;  %v928_v35 = vmax.f32 %v865_v16, 0.0  ;;  %v1234_v21 = vmax.f32 %v1147_v25, 0.0  ;;  %4847 = vmatmul.mubr.msk.bf16.gmra.mrb[176].mxu0 %vm129_vm3, %v5110_v14  ;;  %4887 = vmatmul.mubr.msk.bf16.gmra.mrb[176].mxu1 %vm129_vm3, %v5111_v1  ;;  %v5114_v1 = vld [vmem:[%s7012_s0 + $0x2a0] sm:$0xff]  }
 0x16a   :  { %4850 = vmatprep.mubr.msk.bf16.mxu0 %vm5209_vm2, %v5207_v0  ;;  %4890 = vmatprep.mubr.msk.bf16.mxu1 %vm5209_vm2, %v5207_v0 }
 0x16b   :  { %v6029_v40 = vadd.f32 %v928_v35, %v5792_v54  ;;  %v6032_v51 = vadd.f32 %v1234_v21, %v5925_v19  ;;  %v5113_v54 = vld [vmem:[%s7012_s0 + $0x2dc] sm:$0xff]  }
 0x16c   :  { %v869_v33 = vpop.f32.mrb[72].mxu0  ;;  %v1151_v39 = vpop.f32.mrb[72].mxu1 }
 0x16d   :  { %v870_v42 = vadd.f32 %v5642_v20, %v869_v33  ;;  %v1152_v34 = vadd.f32 %v5642_v20, %v1151_v39  ;;  %v4624_v43 = vpop.f32.mrb[73].mxu0  ;;  %v4664_v46 = vpop.f32.mrb[73].mxu1 }
 0x16e   :  { %v872_v11 = vpop.f32.mrb[74].mxu0  ;;  %v1154_v47 = vpop.f32.mrb[74].mxu1 }
 0x16f   :  { %v929_v19 = vmax.f32 %v870_v42, 0.0  ;;  %v1235_v29 = vmax.f32 %v1152_v34, 0.0  ;;  %v873_v48 = vadd.f32 %v5642_v20, %v872_v11  ;;  %v1155_v23 = vadd.f32 %v5642_v20, %v1154_v47  ;;  %v4625_v50 = vpop.f32.mrb[75].mxu0  ;;  %v4665_v52 = vpop.f32.mrb[75].mxu1 }
 0x171   :  { %v6045_v56 = vadd.f32 %v929_v19, %v5803_v17  ;;  %v6048_v4 = vadd.f32 %v1235_v29, %v5939_v3  ;;  %v930_v62 = vmax.f32 %v873_v48, 0.0  ;;  %v1236_v55 = vmax.f32 %v1155_v23, 0.0  ;;  %4851 = vmatmul.mubr.msk.bf16.gmra.mrb[180].mxu0 %vm129_vm3, %v5112_v5  ;;  %4891 = vmatmul.mubr.msk.bf16.gmra.mrb[180].mxu1 %vm129_vm3, %v5113_v54  ;;  %v5116_v54 = vld [vmem:[%s7012_s0 + $0x2a8] sm:$0xff]  }
 0x172   :  { %4854 = vmatprep.mubr.msk.bf16.mxu0 %vm5209_vm2, %v5207_v0  ;;  %4894 = vmatprep.mubr.msk.bf16.mxu1 %vm5209_vm2, %v5207_v0 }
 0x173   :  { %v6057_v10 = vadd.f32 %v930_v62, %v5812_v22  ;;  %v6060_v17 = vadd.f32 %v1236_v55, %v5948_v8  ;;  %v5115_v22 = vld [vmem:[%s7012_s0 + $0x2e4] sm:$0xff]  }
 0x174   :  { %v877_v3 = vpop.f32.mrb[76].mxu0  ;;  %v1159_v41 = vpop.f32.mrb[76].mxu1 }
 0x175   :  { %v878_v12 = vadd.f32 %v5642_v20, %v877_v3  ;;  %v1160_v60 = vadd.f32 %v5642_v20, %v1159_v41  ;;  %v4628_v13 = vpop.f32.mrb[77].mxu0  ;;  %v4668_v14 = vpop.f32.mrb[77].mxu1 }
 0x176   :  { %v880_v15 = vpop.f32.mrb[78].mxu0  ;;  %v1162_v7 = vpop.f32.mrb[78].mxu1 }
 0x177   :  { %v931_v8 = vmax.f32 %v878_v12, 0.0  ;;  %v1237_v57 = vmax.f32 %v1160_v60, 0.0  ;;  %v881_v44 = vadd.f32 %v5642_v20, %v880_v15  ;;  %v1163_v16 = vadd.f32 %v5642_v20, %v1162_v7  ;;  %v4629_v25 = vpop.f32.mrb[79].mxu0  ;;  %v4669_v26 = vpop.f32.mrb[79].mxu1 }
 0x179   :  { %v6073_v6 = vadd.f32 %v931_v8, %v5823_v45  ;;  %v6076_v35 = vadd.f32 %v1237_v57, %v5961_v30  ;;  %v932_v21 = vmax.f32 %v881_v44, 0.0  ;;  %v1238_v33 = vmax.f32 %v1163_v16, 0.0  ;;  %4855 = vmatmul.mubr.msk.bf16.gmra.mrb[184].mxu0 %vm129_vm3, %v5114_v1  ;;  %4895 = vmatmul.mubr.msk.bf16.gmra.mrb[184].mxu1 %vm129_vm3, %v5115_v22  ;;  %v5118_v22 = vld [vmem:[%s7012_s0 + $0x2b0] sm:$0xff]   ;;  %v6130_v44 = vld [vmem:[%s7013_s2] ss:$0 sm:$0xff] }
 0x17a   :  { %4858 = vmatprep.mubr.msk.bf16.mxu0 %vm5209_vm2, %v5207_v0  ;;  %4898 = vmatprep.mubr.msk.bf16.mxu1 %vm5209_vm2, %v5207_v0 }
 0x17b   :  { %v6085_v39 = vadd.f32 %v932_v21, %v5833_v49  ;;  %v6088_v45 = vadd.f32 %v1238_v33, %v5973_v38  ;;  %v5117_v49 = vld [vmem:[%s7012_s0 + $0x2ec] sm:$0xff]  }
 0x17c   :  { %v885_v30 = vpop.f32.mrb[80].mxu0  ;;  %v1167_v42 = vpop.f32.mrb[80].mxu1 }
 0x17d   :  { %v886_v34 = vadd.f32 %v5642_v20, %v885_v30  ;;  %v1168_v43 = vadd.f32 %v5642_v20, %v1167_v42  ;;  %v4632_v46 = vpop.f32.mrb[81].mxu0  ;;  %v4672_v5 = vpop.f32.mrb[81].mxu1 }
 0x17e   :  { %v888_v11 = vpop.f32.mrb[82].mxu0  ;;  %v1170_v47 = vpop.f32.mrb[82].mxu1 }
 0x17f   :  { %v933_v38 = vmax.f32 %v886_v34, 0.0  ;;  %v1239_v19 = vmax.f32 %v1168_v43, 0.0  ;;  %v889_v29 = vadd.f32 %v5642_v20, %v888_v11  ;;  %v1171_v48 = vadd.f32 %v5642_v20, %v1170_v47  ;;  %v4633_v23 = vpop.f32.mrb[83].mxu0  ;;  %v4673_v50 = vpop.f32.mrb[83].mxu1 }
 0x181   :  { %v6101_v52 = vadd.f32 %v933_v38, %v5851_v18  ;;  %v6104_v62 = vadd.f32 %v1239_v19, %v5989_v58  ;;  %v934_v55 = vmax.f32 %v889_v29, 0.0  ;;  %v1240_v3 = vmax.f32 %v1171_v48, 0.0  ;;  %4859 = vmatmul.mubr.msk.bf16.gmra.mrb[188].mxu0 %vm129_vm3, %v5116_v54  ;;  %4899 = vmatmul.mubr.msk.bf16.gmra.mrb[188].mxu1 %vm129_vm3, %v5117_v49  ;;  %v5120_v49 = vld [vmem:[%s7012_s0 + $0x2b8] ss:$0 sps:$4 sm:$0xff]  }
 0x182   :  { %4862 = vmatprep.mubr.msk.bf16.mxu0 %vm5209_vm2, %v5207_v0  ;;  %4902 = vmatprep.mubr.msk.bf16.mxu1 %vm5209_vm2, %v5207_v0 }
 0x183   :  { %v6113_v41 = vadd.f32 %v934_v55, %v5863_v27  ;;  %v6116_v18 = vadd.f32 %v1240_v3, %v6001_v9  ;;  %v5119_v27 = vld [vmem:[%s7012_s0 + $0x2f4] sm:$0xff]  }
 0x184   :  { %v893_v58 = vpop.f32.mrb[84].mxu0  ;;  %v1175_v12 = vpop.f32.mrb[84].mxu1 }
 0x185   :  { %v894_v60 = vadd.f32 %v5642_v20, %v893_v58  ;;  %v1176_v13 = vadd.f32 %v5642_v20, %v1175_v12  ;;  %v4636_v14 = vpop.f32.mrb[85].mxu0  ;;  %v4676_v1 = vpop.f32.mrb[85].mxu1 }
 0x186   :  { %v896_v15 = vpop.f32.mrb[86].mxu0  ;;  %v1178_v7 = vpop.f32.mrb[86].mxu1 }
 0x187   :  { %v935_v9 = vmax.f32 %v894_v60, 0.0  ;;  %v1241_v8 = vmax.f32 %v1176_v13, 0.0  ;;  %v897_v57 = vadd.f32 %v5642_v20, %v896_v15  ;;  %v1179_v16 = vadd.f32 %v6130_v44, %v1178_v7  ;;  %v4637_v25 = vpop.f32.mrb[87].mxu0  ;;  %v4677_v26 = vpop.f32.mrb[87].mxu1 }
 0x189   :  { %v6134_v21 = vadd.f32 %v935_v9, %v5879_v53  ;;  %v6137_v33 = vadd.f32 %v1241_v8, %v6017_v37  ;;  %v936_v30 = vmax.f32 %v897_v57, 0.0  ;;  %v1242_v42 = vmax.f32 %v1179_v16, 0.0  ;;  %4863 = vmatmul.mubr.msk.bf16.gmra.mrb[192].mxu0 %vm129_vm3, %v5118_v22  ;;  %4903 = vmatmul.mubr.msk.bf16.gmra.mrb[192].mxu1 %vm129_vm3, %v5119_v27  ;;  %v5122_v27 = vld [vmem:[%s7012_s0 + $0x304] sm:$0xff]  }
 0x18a   :  { %4866 = vmatprep.mubr.msk.bf16.mxu0 %vm5209_vm2, %v5207_v0  ;;  %4906 = vmatprep.mubr.msk.bf16.mxu1 %vm5209_vm2, %v5207_v0 }
 0x18b   :  { %v6146_v20 = vadd.f32 %v936_v30, %v5892_v61  ;;  %v6149_v53 = vadd.f32 %v1242_v42, %v6029_v40  ;;  %v5121_v61 = vld [vmem:[%s7012_s0 + $0x2fc] sm:$0xff]  }
 0x18c   :  { %v901_v37 = vpop.f32.mrb[88].mxu0  ;;  %v1183_v34 = vpop.f32.mrb[88].mxu1 }
 0x18d   :  { %v902_v43 = vadd.f32 %v6130_v44, %v901_v37  ;;  %v1184_v46 = vadd.f32 %v6130_v44, %v1183_v34  ;;  %v4640_v5 = vpop.f32.mrb[89].mxu0  ;;  %v4680_v54 = vpop.f32.mrb[89].mxu1 }
 0x18e   :  { %v904_v11 = vpop.f32.mrb[90].mxu0  ;;  %v1186_v47 = vpop.f32.mrb[90].mxu1  ;;  %v5124_v5 = vld [vmem:[%s7012_s0 + $0x30c] sm:$0xff]  }
 0x18f   :  { %v937_v40 = vmax.f32 %v902_v43, 0.0  ;;  %v1243_v38 = vmax.f32 %v1184_v46, 0.0  ;;  %v905_v19 = vadd.f32 %v6130_v44, %v904_v11  ;;  %v1187_v29 = vadd.f32 %v6130_v44, %v1186_v47  ;;  %v4641_v48 = vpop.f32.mrb[91].mxu0  ;;  %v4681_v23 = vpop.f32.mrb[91].mxu1  ;;  %v5125_v54 = vld [vmem:[%s7012_s0 + $0x328] sm:$0xff]  }
 0x191   :  { %v6162_v50 = vadd.f32 %v937_v40, %v5909_v32  ;;  %v6165_v55 = vadd.f32 %v1243_v38, %v6045_v56  ;;  %v938_v3 = vmax.f32 %v905_v19, 0.0  ;;  %v1244_v58 = vmax.f32 %v1187_v29, 0.0  ;;  %4867 = vmatmul.mubr.msk.bf16.gmra.mrb[196].mxu0 %vm129_vm3, %v5120_v49  ;;  %4907 = vmatmul.mubr.msk.bf16.gmra.mrb[196].mxu1 %vm129_vm3, %v5121_v61 }
 0x192   :  { %4910 = vmatprep.mubr.msk.bf16.mxu1 %vm5209_vm2, %v5207_v0  ;;  %4930 = vmatprep.mubr.msk.bf16.mxu0 %vm5209_vm2, %v5207_v0 }
 0x193   :  { %v6174_v12 = vadd.f32 %v938_v3, %v5922_v36  ;;  %v6177_v32 = vadd.f32 %v1244_v58, %v6057_v10  ;;  %v5123_v36 = vld [vmem:[%s7012_s0 + $0x320] sm:$0xff]  }
 0x194   :  { %v909_v56 = vpop.f32.mrb[92].mxu0  ;;  %v1191_v60 = vpop.f32.mrb[92].mxu1 }
 0x195   :  { %v910_v13 = vadd.f32 %v6130_v44, %v909_v56  ;;  %v1192_v14 = vadd.f32 %v6130_v44, %v1191_v60  ;;  %v4644_v1 = vpop.f32.mrb[93].mxu0  ;;  %v4684_v22 = vpop.f32.mrb[93].mxu1 }
 0x196   :  { %v912_v15 = vpop.f32.mrb[94].mxu0  ;;  %v1194_v7 = vpop.f32.mrb[94].mxu1  ;;  %v5126_v22 = vld [vmem:[%s7012_s0 + $0x314] sm:$0xff]  }
 0x197   :  { %v939_v10 = vmax.f32 %v910_v13, 0.0  ;;  %v1245_v9 = vmax.f32 %v1192_v14, 0.0  ;;  %v1195_v8 = vadd.f32 %v6130_v44, %v1194_v7  ;;  %v4645_v57 = vpop.f32.mrb[95].mxu0  ;;  %v4685_v16 = vpop.f32.mrb[95].mxu1 }
 0x199   :  { %v6189_v25 = vadd.f32 %v939_v10, %v5936_v63  ;;  %v6192_v26 = vadd.f32 %v1245_v9, %v6073_v6  ;;  %v1246_v30 = vmax.f32 %v1195_v8, 0.0  ;;  %4911 = vmatmul.mubr.msk.bf16.gmra.mrb[200].mxu1 %vm129_vm3, %v5122_v27  ;;  %4931 = vmatmul.mubr.msk.bf16.vlgmr.msra.gmra.mrb[200].mxu0 %vm129_vm3, %v5123_v36 }
 0x19a   :  { %4914 = vmatprep.mubr.msk.bf16.mxu1 %vm5209_vm2, %v5207_v0  ;;  %4934 = vmatprep.mubr.msk.bf16.mxu0 %vm5209_vm2, %v5207_v0 }
 0x19b   :  { %v6201_v42 = vadd.f32 %v1246_v30, %v6085_v39 }
 0x19c   :  { %v1199_v37 = vpop.f32.mrb[96].mxu1  ;;  %v1441_v63 = vpop.f32.mrb[96].mxu0 }
 0x19d   :  { %v1200_v34 = vadd.f32 %v6130_v44, %v1199_v37  ;;  %v1442_v6 = vadd.f32 %v6130_v44, %v1441_v63  ;;  %v4688_v43 = vpop.f32.mrb[97].mxu1  ;;  %v4708_v46 = vpop.f32.mrb[97].mxu0 }
 0x19e   :  { %v1202_v49 = vpop.f32.mrb[98].mxu1  ;;  %v1444_v61 = vpop.f32.mrb[98].mxu0 }
 0x19f   :  { %v1247_v39 = vmax.f32 %v1200_v34, 0.0  ;;  %v1543_v11 = vmax.f32 %v1442_v6, 0.0  ;;  %v1203_v47 = vadd.f32 %v6130_v44, %v1202_v49  ;;  %v1445_v40 = vadd.f32 %v6130_v44, %v1444_v61  ;;  %v4709_v38 = vpop.f32.mrb[99].mxu0  ;;  %v4689_v19 = vpop.f32.mrb[99].mxu1 }
 0x1a1   :  { %v6214_v29 = vadd.f32 %v1247_v39, %v6101_v52  ;;  %v6217_v48 = vadd.f32 %v1543_v11, %v5964_v31  ;;  %v1248_v23 = vmax.f32 %v1203_v47, 0.0  ;;  %v1544_v3 = vmax.f32 %v1445_v40, 0.0  ;;  %4915 = vmatmul.mubr.msk.bf16.gmra.mrb[204].mxu1 %vm129_vm3, %v5124_v5  ;;  %4935 = vmatmul.mubr.msk.bf16.gmra.mrb[204].mxu0 %vm129_vm3, %v5125_v54  ;;  %v5128_v54 = vld [vmem:[%s7012_s0 + $0x31c] ss:$0 sps:$4 sm:$0xff]  }
 0x1a2   :  { %4918 = vmatprep.mubr.msk.bf16.mxu1 %vm5209_vm2, %v5207_v0  ;;  %4938 = vmatprep.mubr.msk.bf16.mxu0 %vm5209_vm2, %v5207_v0 }
 0x1a3   :  { %v6226_v58 = vadd.f32 %v1248_v23, %v6113_v41  ;;  %v6229_v52 = vadd.f32 %v1544_v3, %v5976_v2  ;;  %v5127_v41 = vld [vmem:[%s7012_s0 + $0x330] sm:$0xff]  }
 0x1a4   :  { %v1207_v31 = vpop.f32.mrb[100].mxu1  ;;  %v1449_v56 = vpop.f32.mrb[100].mxu0 }
 0x1a5   :  { %v1208_v60 = vadd.f32 %v6130_v44, %v1207_v31  ;;  %v1450_v13 = vadd.f32 %v6130_v44, %v1449_v56  ;;  %v4692_v14 = vpop.f32.mrb[101].mxu1  ;;  %v4712_v1 = vpop.f32.mrb[101].mxu0 }
 0x1a6   :  { %v1210_v27 = vpop.f32.mrb[102].mxu1  ;;  %v1452_v36 = vpop.f32.mrb[102].mxu0 }
 0x1a7   :  { %v1249_v2 = vmax.f32 %v1208_v60, 0.0  ;;  %v1545_v15 = vmax.f32 %v1450_v13, 0.0  ;;  %v1211_v7 = vadd.f32 %v6130_v44, %v1210_v27  ;;  %v1453_v10 = vadd.f32 %v6130_v44, %v1452_v36  ;;  %v4713_v9 = vpop.f32.mrb[103].mxu0  ;;  %v4693_v8 = vpop.f32.mrb[103].mxu1 }
 0x1a9   :  { %v6242_v57 = vadd.f32 %v1249_v2, %v6134_v21  ;;  %v6245_v16 = vadd.f32 %v1545_v15, %v5992_v59  ;;  %v1250_v30 = vmax.f32 %v1211_v7, 0.0  ;;  %v1546_v37 = vmax.f32 %v1453_v10, 0.0  ;;  %4919 = vmatmul.mubr.msk.bf16.gmra.mrb[208].mxu1 %vm129_vm3, %v5126_v22  ;;  %4939 = vmatmul.mubr.msk.bf16.gmra.mrb[208].mxu0 %vm129_vm3, %v5127_v41  ;;  %v5130_v41 = vld [vmem:[%s7012_s0 + $0x340] sm:$0xff]  }
 0x1aa   :  { %4922 = vmatprep.mubr.msk.bf16.mxu1 %vm5209_vm2, %v5207_v0  ;;  %4942 = vmatprep.mubr.msk.bf16.mxu0 %vm5209_vm2, %v5207_v0 }
 0x1ab   :  { %v6254_v63 = vadd.f32 %v1250_v30, %v6146_v20  ;;  %v6257_v21 = vadd.f32 %v1546_v37, %v6004_v28  ;;  %v5129_v20 = vld [vmem:[%s7012_s0 + $0x338] sm:$0xff]  }
 0x1ac   :  { %v1215_v59 = vpop.f32.mrb[104].mxu1  ;;  %v1457_v34 = vpop.f32.mrb[104].mxu0 }
 0x1ad   :  { %v1216_v6 = vadd.f32 %v6130_v44, %v1215_v59  ;;  %v1458_v43 = vadd.f32 %v6130_v44, %v1457_v34  ;;  %v4696_v46 = vpop.f32.mrb[105].mxu1  ;;  %v4716_v5 = vpop.f32.mrb[105].mxu0 }
 0x1ae   :  { %v1218_v49 = vpop.f32.mrb[106].mxu1  ;;  %v1460_v61 = vpop.f32.mrb[106].mxu0 }
 0x1af   :  { %v1251_v28 = vmax.f32 %v1216_v6, 0.0  ;;  %v1547_v39 = vmax.f32 %v1458_v43, 0.0  ;;  %v1219_v11 = vadd.f32 %v6130_v44, %v1218_v49  ;;  %v1461_v47 = vadd.f32 %v6130_v44, %v1460_v61  ;;  %v4717_v40 = vpop.f32.mrb[107].mxu0  ;;  %v4697_v38 = vpop.f32.mrb[107].mxu1 }
 0x1b1   :  { %v6270_v19 = vadd.f32 %v1251_v28, %v6162_v50  ;;  %v6273_v23 = vadd.f32 %v1547_v39, %v6020_v24  ;;  %v1252_v3 = vmax.f32 %v1219_v11, 0.0  ;;  %v1548_v31 = vmax.f32 %v1461_v47, 0.0  ;;  %4923 = vmatmul.mubr.msk.bf16.gmra.mrb[212].mxu1 %vm129_vm3, %v5128_v54  ;;  %4943 = vmatmul.mubr.msk.bf16.gmra.mrb[212].mxu0 %vm129_vm3, %v5129_v20 }
 0x1b2   :  { %4946 = vmatprep.mubr.msk.bf16.mxu0 %vm5209_vm2, %v5207_v0 }
 0x1b3   :  { %v6280_v56 = vadd.f32 %v1252_v3, %v6174_v12  ;;  %v6283_v60 = vadd.f32 %v1548_v31, %v6032_v51 }
 0x1b4   :  { %v1223_v50 = vpop.f32.mrb[108].mxu1  ;;  %v1465_v13 = vpop.f32.mrb[108].mxu0 }
 0x1b5   :  { %v1224_v24 = vadd.f32 %v6130_v44, %v1223_v50  ;;  %v1466_v14 = vadd.f32 %v6130_v44, %v1465_v13  ;;  %v4720_v1 = vpop.f32.mrb[109].mxu0  ;;  %v4700_v22 = vpop.f32.mrb[109].mxu1 }
 0x1b6   :  { %v1468_v27 = vpop.f32.mrb[110].mxu0  ;;  %v1226_v36 = vpop.f32.mrb[110].mxu1 }
 0x1b7   :  { %v1253_v2 = vmax.f32 %v1224_v24, 0.0  ;;  %v1549_v12 = vmax.f32 %v1466_v14, 0.0  ;;  %v1469_v15 = vadd.f32 %v6130_v44, %v1468_v27  ;;  %v4721_v51 = vpop.f32.mrb[111].mxu0  ;;  %v4701_v7 = vpop.f32.mrb[111].mxu1  ;;  %v5132_v14 = vld [vmem:[%s7012_s0 + $0x350] sm:$0xff]  }
 0x1b9   :  { %v6292_v10 = vadd.f32 %v1253_v2, %v6189_v25  ;;  %v6295_v9 = vadd.f32 %v1549_v12, %v6048_v4  ;;  %v1550_v8 = vmax.f32 %v1469_v15, 0.0  ;;  %4947 = vmatmul.mubr.msk.bf16.gmra.mrb[216].mxu0 %vm129_vm3, %v5130_v41  ;;  %v5131_v4 = vld [vmem:[%s7012_s0 + $0x348] sm:$0xff]  }
 0x1ba   :  { %4950 = vmatprep.mubr.msk.bf16.mxu0 %vm5209_vm2, %v5207_v0 }
 0x1bb   :  { %v6301_v30 = vadd.f32 %v1550_v8, %v6060_v17 }
 0x1bc   :  { %v1473_v37 = vpop.f32.mrb[112].mxu0  ;;  %v1755_v59 = vpop.f32.mrb[112].mxu1 }
 0x1bd   :  { %v1474_v34 = vadd.f32 %v6130_v44, %v1473_v37  ;;  %v1756_v6 = vadd.f32 %v6130_v44, %v1755_v59  ;;  %v4724_v25 = vpop.f32.mrb[113].mxu0  ;;  %v4764_v43 = vpop.f32.mrb[113].mxu1 }
 0x1be   :  { %v1476_v46 = vpop.f32.mrb[114].mxu0  ;;  %v1758_v5 = vpop.f32.mrb[114].mxu1  ;;  %v5133_v43 = vld [vmem:[%s7012_s0 + $0x358] sm:$0xff]  }
 0x1bf   :  { %v1551_v54 = vmax.f32 %v1474_v34, 0.0  ;;  %v1857_v20 = vmax.f32 %v1756_v6, 0.0  ;;  %v1477_v49 = vadd.f32 %v6130_v44, %v1476_v46  ;;  %v1759_v17 = vadd.f32 %v6130_v44, %v1758_v5  ;;  %v4725_v61 = vpop.f32.mrb[115].mxu0  ;;  %v4765_v28 = vpop.f32.mrb[115].mxu1 }
 0x1c1   :  { %v6311_v39 = vadd.f32 %v1551_v54, %v6076_v35  ;;  %v6314_v11 = vadd.f32 %v1857_v20, %v6217_v48  ;;  %v1552_v47 = vmax.f32 %v1477_v49, 0.0  ;;  %v1858_v40 = vmax.f32 %v1759_v17, 0.0  ;;  %4951 = vmatmul.mubr.msk.bf16.gmra.mrb[220].mxu0 %vm129_vm3, %v5131_v4 }
 0x1c2   :  { %4954 = vmatprep.mubr.msk.bf16.mxu0 %vm5209_vm2, %v5207_v0 }
 0x1c3   :  { %v6320_v38 = vadd.f32 %v1552_v47, %v6088_v45  ;;  %v6323_v3 = vadd.f32 %v1858_v40, %v6229_v52 }
 0x1c4   :  { %v1481_v31 = vpop.f32.mrb[116].mxu0  ;;  %v1763_v50 = vpop.f32.mrb[116].mxu1 }
 0x1c5   :  { %v1482_v35 = vadd.f32 %v6130_v44, %v1481_v31  ;;  %v1764_v48 = vadd.f32 %v6130_v44, %v1763_v50  ;;  %v4728_v13 = vpop.f32.mrb[117].mxu0  ;;  %v4768_v24 = vpop.f32.mrb[117].mxu1 }
 0x1c6   :  { %v1484_v1 = vpop.f32.mrb[118].mxu0  ;;  %v1766_v22 = vpop.f32.mrb[118].mxu1  ;;  %v5134_v24 = vld [vmem:[%s7012_s0 + $0x360] sm:$0xff]  }
 0x1c7   :  { %v1553_v41 = vmax.f32 %v1482_v35, 0.0  ;;  %v1859_v45 = vmax.f32 %v1764_v48, 0.0  ;;  %v1485_v27 = vadd.f32 %v6130_v44, %v1484_v1  ;;  %v1767_v52 = vadd.f32 %v6130_v44, %v1766_v22  ;;  %v4729_v36 = vpop.f32.mrb[119].mxu0  ;;  %v4769_v2 = vpop.f32.mrb[119].mxu1 }
 0x1c9   :  { %v6333_v12 = vadd.f32 %v1553_v41, %v6104_v62  ;;  %v6336_v15 = vadd.f32 %v1859_v45, %v6245_v16  ;;  %v1554_v51 = vmax.f32 %v1485_v27, 0.0  ;;  %v1860_v7 = vmax.f32 %v1767_v52, 0.0  ;;  %4955 = vmatmul.mubr.msk.bf16.gmra.mrb[224].mxu0 %vm129_vm3, %v5132_v14 }
 0x1ca   :  { %4958 = vmatprep.mubr.msk.bf16.mxu0 %vm5209_vm2, %v5207_v0 }
 0x1cb   :  { %v6342_v8 = vadd.f32 %v1554_v51, %v6116_v18  ;;  %v6345_v37 = vadd.f32 %v1860_v7, %v6257_v21 }
 0x1cc   :  { %v1489_v59 = vpop.f32.mrb[120].mxu0  ;;  %v1771_v34 = vpop.f32.mrb[120].mxu1 }
 0x1cd   :  { %v1490_v62 = vadd.f32 %v6130_v44, %v1489_v59  ;;  %v1772_v16 = vadd.f32 %v6130_v44, %v1771_v34  ;;  %v4732_v6 = vpop.f32.mrb[121].mxu0  ;;  %v4772_v25 = vpop.f32.mrb[121].mxu1 }
 0x1ce   :  { %v1492_v4 = vpop.f32.mrb[122].mxu0  ;;  %v1774_v46 = vpop.f32.mrb[122].mxu1  ;;  %v5135_v25 = vld [vmem:[%s7012_s0 + $0x368] sm:$0xff]  }
 0x1cf   :  { %v1555_v5 = vmax.f32 %v1490_v62, 0.0  ;;  %v1861_v18 = vmax.f32 %v1772_v16, 0.0  ;;  %v1493_v54 = vadd.f32 %v6130_v44, %v1492_v4  ;;  %v1775_v21 = vadd.f32 %v6130_v44, %v1774_v46  ;;  %v4733_v20 = vpop.f32.mrb[123].mxu0  ;;  %v4773_v49 = vpop.f32.mrb[123].mxu1 }
 0x1d1   :  { %v6355_v17 = vadd.f32 %v1555_v5, %v6137_v33  ;;  %v6358_v61 = vadd.f32 %v1861_v18, %v6273_v23  ;;  %v1556_v28 = vmax.f32 %v1493_v54, 0.0  ;;  %v1862_v47 = vmax.f32 %v1775_v21, 0.0  ;;  %4959 = vmatmul.mubr.msk.bf16.gmra.mrb[228].mxu0 %vm129_vm3, %v5133_v43 }
 0x1d2   :  { %4962 = vmatprep.mubr.msk.bf16.mxu0 %vm5209_vm2, %v5207_v0 }
 0x1d3   :  { %v6364_v40 = vadd.f32 %v1556_v28, %v6149_v53  ;;  %v6367_v31 = vadd.f32 %v1862_v47, %v6283_v60 }
 0x1d4   :  { %v1497_v50 = vpop.f32.mrb[124].mxu0  ;;  %v1779_v35 = vpop.f32.mrb[124].mxu1 }
 0x1d5   :  { %v1498_v33 = vadd.f32 %v6130_v44, %v1497_v50  ;;  %v1780_v23 = vadd.f32 %v6130_v44, %v1779_v35  ;;  %v4736_v48 = vpop.f32.mrb[125].mxu0  ;;  %v4776_v13 = vpop.f32.mrb[125].mxu1 }
 0x1d6   :  { %v1500_v14 = vpop.f32.mrb[126].mxu0  ;;  %v1782_v1 = vpop.f32.mrb[126].mxu1  ;;  %v5136_v13 = vld [vmem:[%s7012_s0 + $0x370] sm:$0xff]  }
 0x1d7   :  { %v1557_v22 = vmax.f32 %v1498_v33, 0.0  ;;  %v1863_v53 = vmax.f32 %v1780_v23, 0.0  ;;  %v1501_v41 = vadd.f32 %v6130_v44, %v1500_v14  ;;  %v1783_v60 = vadd.f32 %v6130_v44, %v1782_v1  ;;  %v4737_v45 = vpop.f32.mrb[127].mxu0  ;;  %v4777_v27 = vpop.f32.mrb[127].mxu1 }
 0x1d9   :  { %v6377_v52 = vadd.f32 %v1557_v22, %v6165_v55  ;;  %v6380_v36 = vadd.f32 %v1863_v53, %v6295_v9  ;;  %v1558_v2 = vmax.f32 %v1501_v41, 0.0  ;;  %v1864_v51 = vmax.f32 %v1783_v60, 0.0  ;;  %4963 = vmatmul.mubr.msk.bf16.gmra.mrb[232].mxu0 %vm129_vm3, %v5134_v24 }
 0x1da   :  { %4966 = vmatprep.mubr.msk.bf16.mxu0 %vm5209_vm2, %v5207_v0 }
 0x1db   :  { %v6386_v7 = vadd.f32 %v1558_v2, %v6177_v32  ;;  %v6389_v59 = vadd.f32 %v1864_v51, %v6301_v30 }
 0x1dc   :  { %v1505_v34 = vpop.f32.mrb[128].mxu0  ;;  %v1787_v62 = vpop.f32.mrb[128].mxu1 }
 0x1dd   :  { %v1506_v55 = vadd.f32 %v6130_v44, %v1505_v34  ;;  %v1788_v9 = vadd.f32 %v6130_v44, %v1787_v62  ;;  %v4740_v16 = vpop.f32.mrb[129].mxu0  ;;  %v4780_v6 = vpop.f32.mrb[129].mxu1 }
 0x1de   :  { %v1508_v43 = vpop.f32.mrb[130].mxu0  ;;  %v1790_v4 = vpop.f32.mrb[130].mxu1  ;;  %v5137_v6 = vld [vmem:[%s7012_s0 + $0x378] sm:$0xff]  }
 0x1df   :  { %v1559_v46 = vmax.f32 %v1506_v55, 0.0  ;;  %v1865_v32 = vmax.f32 %v1788_v9, 0.0  ;;  %v1509_v5 = vadd.f32 %v6130_v44, %v1508_v43  ;;  %v1791_v30 = vadd.f32 %v6130_v44, %v1790_v4  ;;  %v4741_v18 = vpop.f32.mrb[131].mxu0  ;;  %v4781_v54 = vpop.f32.mrb[131].mxu1 }
 0x1e1   :  { %v6399_v21 = vadd.f32 %v1559_v46, %v6192_v26  ;;  %v6402_v20 = vadd.f32 %v1865_v32, %v6311_v39  ;;  %v1560_v49 = vmax.f32 %v1509_v5, 0.0  ;;  %v1866_v28 = vmax.f32 %v1791_v30, 0.0  ;;  %4967 = vmatmul.mubr.msk.bf16.gmra.mrb[236].mxu0 %vm129_vm3, %v5135_v25 }
 0x1e2   :  { %4970 = vmatprep.mubr.msk.bf16.mxu0 %vm5209_vm2, %v5207_v0 }
 0x1e3   :  { %v6408_v47 = vadd.f32 %v1560_v49, %v6201_v42  ;;  %v6411_v50 = vadd.f32 %v1866_v28, %v6320_v38 }
 0x1e4   :  { %v1513_v35 = vpop.f32.mrb[132].mxu0  ;;  %v1795_v33 = vpop.f32.mrb[132].mxu1 }
 0x1e5   :  { %v1514_v26 = vadd.f32 %v6130_v44, %v1513_v35  ;;  %v1796_v39 = vadd.f32 %v6130_v44, %v1795_v33  ;;  %v4744_v23 = vpop.f32.mrb[133].mxu0  ;;  %v4784_v48 = vpop.f32.mrb[133].mxu1 }
 0x1e6   :  { %v1516_v24 = vpop.f32.mrb[134].mxu0  ;;  %v1798_v14 = vpop.f32.mrb[134].mxu1  ;;  %v5138_v48 = vld [vmem:[%s7012_s0 + $0x380] ss:$0 sps:$4 sm:$0xff]  }
 0x1e7   :  { %v1561_v1 = vmax.f32 %v1514_v26, 0.0  ;;  %v1867_v42 = vmax.f32 %v1796_v39, 0.0  ;;  %v1517_v22 = vadd.f32 %v6130_v44, %v1516_v24  ;;  %v1799_v38 = vadd.f32 %v6130_v44, %v1798_v14  ;;  %v4745_v53 = vpop.f32.mrb[135].mxu0  ;;  %v4785_v41 = vpop.f32.mrb[135].mxu1 }
 0x1e9   :  { %v6421_v60 = vadd.f32 %v1561_v1, %v6214_v29  ;;  %v6424_v45 = vadd.f32 %v1867_v42, %v6333_v12  ;;  %v1562_v27 = vmax.f32 %v1517_v22, 0.0  ;;  %v1868_v2 = vmax.f32 %v1799_v38, 0.0  ;;  %4971 = vmatmul.mubr.msk.bf16.gmra.mrb[240].mxu0 %vm129_vm3, %v5136_v13 }
 0x1ea   :  { %4974 = vmatprep.mubr.msk.bf16.mxu0 %vm5209_vm2, %v5207_v0 }
 0x1eb   :  { %v6430_v51 = vadd.f32 %v1562_v27, %v6226_v58  ;;  %v6433_v34 = vadd.f32 %v1868_v2, %v6342_v8 }
 0x1ec   :  { %v1521_v62 = vpop.f32.mrb[136].mxu0  ;;  %v1803_v55 = vpop.f32.mrb[136].mxu1 }
 0x1ed   :  { %v1522_v29 = vadd.f32 %v6130_v44, %v1521_v62  ;;  %v1804_v12 = vadd.f32 %v6130_v44, %v1803_v55  ;;  %v4748_v9 = vpop.f32.mrb[137].mxu0  ;;  %v4788_v16 = vpop.f32.mrb[137].mxu1 }
 0x1ee   :  { %v1524_v25 = vpop.f32.mrb[138].mxu0  ;;  %v1806_v43 = vpop.f32.mrb[138].mxu1 }
 0x1ef   :  { %v1563_v4 = vmax.f32 %v1522_v29, 0.0  ;;  %v1869_v58 = vmax.f32 %v1804_v12, 0.0  ;;  %v1525_v46 = vadd.f32 %v6130_v44, %v1524_v25  ;;  %v1807_v8 = vadd.f32 %v6130_v44, %v1806_v43  ;;  %v4749_v32 = vpop.f32.mrb[139].mxu0  ;;  %v4789_v5 = vpop.f32.mrb[139].mxu1 }
 0x1f1   :  { %v6443_v30 = vadd.f32 %v1563_v4, %v6242_v57  ;;  %v6446_v18 = vadd.f32 %v1869_v58, %v6355_v17  ;;  %v1564_v54 = vmax.f32 %v1525_v46, 0.0  ;;  %v1870_v49 = vmax.f32 %v1807_v8, 0.0  ;;  %4975 = vmatmul.mubr.msk.bf16.gmra.mrb[244].mxu0 %vm129_vm3, %v5137_v6 }
 0x1f2   :  { %4978 = vmatprep.mubr.msk.bf16.mxu0 %vm5209_vm2, %v5207_v0 }
 0x1f3   :  { %v6452_v28 = vadd.f32 %v1564_v54, %v6254_v63  ;;  %v6455_v35 = vadd.f32 %v1870_v49, %v6364_v40 }
 0x1f4   :  { %v1529_v33 = vpop.f32.mrb[140].mxu0  ;;  %v1811_v26 = vpop.f32.mrb[140].mxu1 }
 0x1f5   :  { %v1530_v57 = vadd.f32 %v6130_v44, %v1529_v33  ;;  %v1812_v17 = vadd.f32 %v6130_v44, %v1811_v26  ;;  %v4752_v39 = vpop.f32.mrb[141].mxu0  ;;  %v4792_v23 = vpop.f32.mrb[141].mxu1 }
 0x1f6   :  { %v1532_v13 = vpop.f32.mrb[142].mxu0  ;;  %v1814_v24 = vpop.f32.mrb[142].mxu1 }
 0x1f7   :  { %v1565_v14 = vmax.f32 %v1530_v57, 0.0  ;;  %v1871_v63 = vmax.f32 %v1812_v17, 0.0  ;;  %v1533_v1 = vadd.f32 %v6130_v44, %v1532_v13  ;;  %v1815_v40 = vadd.f32 %v6130_v44, %v1814_v24  ;;  %v4753_v42 = vpop.f32.mrb[143].mxu0  ;;  %v4793_v22 = vpop.f32.mrb[143].mxu1 }
 0x1f9   :  { %v6465_v38 = vadd.f32 %v1565_v14, %v6270_v19  ;;  %v6468_v53 = vadd.f32 %v1871_v63, %v6377_v52  ;;  %v1566_v41 = vmax.f32 %v1533_v1, 0.0  ;;  %v1872_v27 = vmax.f32 %v1815_v40, 0.0  ;;  %4979 = vmatmul.mubr.msk.bf16.gmra.mrb[248].mxu0 %vm129_vm3, %v5138_v48 }
 0x1fa   :  { %5006 = vmatprep.mubr.msk.bf16.mxu0 %vm5209_vm2, %v5207_v0 }
 0x1fb   :  { %v6474_v2 = vadd.f32 %v1566_v41, %v6280_v56  ;;  %v6477_v62 = vadd.f32 %v1872_v27, %v6386_v7 }
 0x1fc   :  { %v1537_v55 = vpop.f32.mrb[144].mxu0  ;;  %v1819_v29 = vpop.f32.mrb[144].mxu1 }
 0x1fd   :  { %v1538_v19 = vadd.f32 %v6130_v44, %v1537_v55  ;;  %v1820_v52 = vadd.f32 %v6130_v44, %v1819_v29  ;;  %v4756_v12 = vpop.f32.mrb[145].mxu0  ;;  %v4796_v9 = vpop.f32.mrb[145].mxu1 }
 0x1fe   :  { %v1540_v16 = vpop.f32.mrb[146].mxu0  ;;  %v1822_v6 = vpop.f32.mrb[146].mxu1 }
 0x1ff   :  { %v1567_v25 = vmax.f32 %v1538_v19, 0.0  ;;  %v1873_v43 = vmax.f32 %v1820_v52, 0.0  ;;  %v1823_v4 = vadd.f32 %v6130_v44, %v1822_v6  ;;  %v4757_v58 = vpop.f32.mrb[147].mxu0  ;;  %v4797_v56 = vpop.f32.mrb[147].mxu1 }
 0x201   :  { %v6483_v46 = vadd.f32 %v1567_v25, %v6292_v10  ;;  %v6486_v7 = vadd.f32 %v1873_v43, %v6399_v21  ;;  %v1874_v8 = vmax.f32 %v1823_v4, 0.0 }
 0x203   :  { %v6489_v32 = vadd.f32 %v1874_v8, %v6408_v47 }
 0x204   :  { %v1827_v5 = vpop.f32.mrb[148].mxu1  ;;  %v2069_v54 = vpop.f32.mrb[148].mxu0 }
 0x205   :  { %v1828_v49 = vadd.f32 %v6130_v44, %v1827_v5  ;;  %v2070_v33 = vadd.f32 %v6130_v44, %v2069_v54  ;;  %v4800_v26 = vpop.f32.mrb[149].mxu1  ;;  %v4820_v57 = vpop.f32.mrb[149].mxu0 }
 0x206   :  { %v1830_v17 = vpop.f32.mrb[150].mxu1  ;;  %v2072_v39 = vpop.f32.mrb[150].mxu0 }
 0x207   :  { %v1875_v23 = vmax.f32 %v1828_v49, 0.0  ;;  %v2171_v10 = vmax.f32 %v2070_v33, 0.0  ;;  %v1831_v48 = vadd.f32 %v6130_v44, %v1830_v17  ;;  %v2073_v21 = vadd.f32 %v6130_v44, %v2072_v39  ;;  %v4821_v13 = vpop.f32.mrb[151].mxu0  ;;  %v4801_v24 = vpop.f32.mrb[151].mxu1 }
 0x209   :  { %v6496_v47 = vadd.f32 %v1875_v23, %v6421_v60  ;;  %v6499_v14 = vadd.f32 %v2171_v10, %v6314_v11  ;;  %v1876_v63 = vmax.f32 %v1831_v48, 0.0  ;;  %v2172_v1 = vmax.f32 %v2073_v21, 0.0 }
 0x20b   :  { %v6502_v40 = vadd.f32 %v1876_v63, %v6430_v51  ;;  %v6505_v42 = vadd.f32 %v2172_v1, %v6323_v3 }
 0x20c   :  { %v1835_v22 = vpop.f32.mrb[152].mxu1  ;;  %v2077_v41 = vpop.f32.mrb[152].mxu0 }
 0x20d   :  { %v1836_v27 = vadd.f32 %v6130_v44, %v1835_v22  ;;  %v2078_v55 = vadd.f32 %v6130_v44, %v2077_v41  ;;  %v4804_v29 = vpop.f32.mrb[153].mxu1  ;;  %v4824_v60 = vpop.f32.mrb[153].mxu0 }
 0x20e   :  { %v1838_v19 = vpop.f32.mrb[154].mxu1  ;;  %v2080_v52 = vpop.f32.mrb[154].mxu0 }
 0x20f   :  { %v1877_v11 = vmax.f32 %v1836_v27, 0.0  ;;  %v2173_v12 = vmax.f32 %v2078_v55, 0.0  ;;  %v1839_v9 = vadd.f32 %v6130_v44, %v1838_v19  ;;  %v2081_v51 = vadd.f32 %v6130_v44, %v2080_v52  ;;  %v4825_v16 = vpop.f32.mrb[155].mxu0  ;;  %v4805_v6 = vpop.f32.mrb[155].mxu1 }
 0x211   :  { %v6512_v3 = vadd.f32 %v1877_v11, %v6443_v30  ;;  %v6515_v25 = vadd.f32 %v2173_v12, %v6336_v15  ;;  %v1878_v43 = vmax.f32 %v1839_v9, 0.0  ;;  %v2174_v4 = vmax.f32 %v2081_v51, 0.0 }
 0x213   :  { %v6518_v58 = vadd.f32 %v1878_v43, %v6452_v28  ;;  %v6521_v56 = vadd.f32 %v2174_v4, %v6345_v37 }
 0x214   :  { %v1843_v8 = vpop.f32.mrb[156].mxu1  ;;  %v2085_v5 = vpop.f32.mrb[156].mxu0 }
 0x215   :  { %v1844_v54 = vadd.f32 %v6130_v44, %v1843_v8  ;;  %v2086_v49 = vadd.f32 %v6130_v44, %v2085_v5  ;;  %v4808_v33 = vpop.f32.mrb[157].mxu1  ;;  %v4828_v30 = vpop.f32.mrb[157].mxu0 }
 0x216   :  { %v1846_v26 = vpop.f32.mrb[158].mxu1  ;;  %v2088_v57 = vpop.f32.mrb[158].mxu0 }
 0x217   :  { %v1879_v15 = vmax.f32 %v1844_v54, 0.0  ;;  %v2175_v17 = vmax.f32 %v2086_v49, 0.0  ;;  %v1847_v39 = vadd.f32 %v6130_v44, %v1846_v26  ;;  %v2089_v28 = vadd.f32 %v6130_v44, %v2088_v57  ;;  %v4829_v23 = vpop.f32.mrb[159].mxu0  ;;  %v4809_v10 = vpop.f32.mrb[159].mxu1 }
 0x219   :  { %v6528_v37 = vadd.f32 %v1879_v15, %v6465_v38  ;;  %v6531_v48 = vadd.f32 %v2175_v17, %v6358_v61  ;;  %v1880_v21 = vmax.f32 %v1847_v39, 0.0  ;;  %v2176_v13 = vmax.f32 %v2089_v28, 0.0 }
 0x21b   :  { %v6534_v24 = vadd.f32 %v1880_v21, %v6474_v2  ;;  %v6537_v63 = vadd.f32 %v2176_v13, %v6367_v31 }
 0x21c   :  { %v1851_v1 = vpop.f32.mrb[160].mxu1  ;;  %v2093_v22 = vpop.f32.mrb[160].mxu0 }
 0x21d   :  { %v1852_v41 = vadd.f32 %v6130_v44, %v1851_v1  ;;  %v2094_v27 = vadd.f32 %v6130_v44, %v2093_v22  ;;  %v4832_v55 = vpop.f32.mrb[161].mxu0  ;;  %v4812_v38 = vpop.f32.mrb[161].mxu1 }
 0x21e   :  { %v2096_v29 = vpop.f32.mrb[162].mxu0  ;;  %v1854_v60 = vpop.f32.mrb[162].mxu1 }
 0x21f   :  { %v1881_v61 = vmax.f32 %v1852_v41, 0.0  ;;  %v2177_v19 = vmax.f32 %v2094_v27, 0.0  ;;  %v2097_v52 = vadd.f32 %v6130_v44, %v2096_v29  ;;  %v4833_v11 = vpop.f32.mrb[163].mxu0  ;;  %v4813_v2 = vpop.f32.mrb[163].mxu1 }
 0x221   :  { %v6543_v12 = vadd.f32 %v1881_v61, %v6483_v46  ;;  %v6546_v31 = vadd.f32 %v2177_v19, %v6380_v36  ;;  %v2178_v9 = vmax.f32 %v2097_v52, 0.0  ;;  %v5140_v61 = vld [vmem:[%s7014_s3] sm:$0xff]  }
 0x223   :  { %v6549_v51 = vadd.f32 %v2178_v9, %v6389_v59 }
 0x224   :  { %v2101_v16 = vpop.f32.mrb[164].mxu0  ;;  %v2383_v6 = vpop.f32.mrb[164].mxu1 }
 0x225   :  { %v2102_v43 = vadd.f32 %v6130_v44, %v2101_v16  ;;  %v2384_v4 = vadd.f32 %v6130_v44, %v2383_v6  ;;  %v4836_v8 = vpop.f32.mrb[165].mxu0  ;;  %v4876_v5 = vpop.f32.mrb[165].mxu1 }
 0x226   :  { %v2104_v54 = vpop.f32.mrb[166].mxu0  ;;  %v2386_v49 = vpop.f32.mrb[166].mxu1 }
 0x227   :  { %v2179_v33 = vmax.f32 %v2102_v43, 0.0  ;;  %v2485_v46 = vmax.f32 %v2384_v4, 0.0  ;;  %v2105_v30 = vadd.f32 %v6130_v44, %v2104_v54  ;;  %v2387_v36 = vadd.f32 %v6130_v44, %v2386_v49  ;;  %v4837_v26 = vpop.f32.mrb[167].mxu0  ;;  %v4877_v57 = vpop.f32.mrb[167].mxu1 }
 0x229   :  { %v6556_v59 = vadd.f32 %v2179_v33, %v6402_v20  ;;  %v6559_v15 = vadd.f32 %v2485_v46, %v6499_v14  ;;  %v2180_v17 = vmax.f32 %v2105_v30, 0.0  ;;  %v2486_v39 = vmax.f32 %v2387_v36, 0.0 }
 0x22b   :  { %v6562_v28 = vadd.f32 %v2180_v17, %v6411_v50  ;;  %v6565_v23 = vadd.f32 %v2486_v39, %v6505_v42  ;;  %v5139_v42 = vld [vmem:[%s7014_s3 + $0x40] sm:$0xff]  }
 0x22c   :  { %v2109_v10 = vpop.f32.mrb[168].mxu0  ;;  %v2391_v21 = vpop.f32.mrb[168].mxu1  ;;  %4400 = vmatprep.subr.bf16.mxu1 %v5139_v42 }
 0x22d   :  { %v2110_v13 = vadd.f32 %v6130_v44, %v2109_v10  ;;  %v2392_v1 = vadd.f32 %v6130_v44, %v2391_v21  ;;  %v4840_v22 = vpop.f32.mrb[169].mxu0  ;;  %v4880_v20 = vpop.f32.mrb[169].mxu1  ;;  %4401 = vmatpush3.bf16.msra.mxu1 %v5140_v61  ;;  %v5141_v21 = vld [vmem:[%s7014_s3 + $0x48] sm:$0xff]  }
 0x22e   :  { %v2112_v41 = vpop.f32.mrb[170].mxu0  ;;  %v2394_v27 = vpop.f32.mrb[170].mxu1  ;;  %4402 = vmatprep.subr.bf16.mxu1 %v5141_v21 }
 0x22f   :  { %v2181_v14 = vmax.f32 %v2110_v13, 0.0  ;;  %v2487_v55 = vmax.f32 %v2392_v1, 0.0  ;;  %v2113_v38 = vadd.f32 %v6130_v44, %v2112_v41  ;;  %v2395_v50 = vadd.f32 %v6130_v44, %v2394_v27  ;;  %v4841_v29 = vpop.f32.mrb[171].mxu0  ;;  %v4881_v60 = vpop.f32.mrb[171].mxu1 }
 0x231   :  { %v6578_v19 = vadd.f32 %v2181_v14, %v6424_v45  ;;  %v6581_v52 = vadd.f32 %v2487_v55, %v6515_v25  ;;  %v2182_v11 = vmax.f32 %v2113_v38, 0.0  ;;  %v2488_v2 = vmax.f32 %v2395_v50, 0.0 }
 0x233   :  { %v6584_v9 = vadd.f32 %v2182_v11, %v6433_v34  ;;  %v6587_v16 = vadd.f32 %v2488_v2, %v6521_v56  ;;  %v6595_v34 = vld [vmem:[%s7013_s2] ss:$0 sm:$0xff] }
 0x234   :  { %v2117_v6 = vpop.f32.mrb[172].mxu0  ;;  %v2399_v43 = vpop.f32.mrb[172].mxu1 }
 0x235   :  { %v2118_v4 = vadd.f32 %v6130_v44, %v2117_v6  ;;  %v2400_v45 = vadd.f32 %v6130_v44, %v2399_v43  ;;  %v4844_v8 = vpop.f32.mrb[173].mxu0  ;;  %v4884_v5 = vpop.f32.mrb[173].mxu1 }
 0x236   :  { %v2120_v25 = vpop.f32.mrb[174].mxu0  ;;  %v2402_v54 = vpop.f32.mrb[174].mxu1 }
 0x237   :  { %v2183_v49 = vmax.f32 %v2118_v4, 0.0  ;;  %v2489_v33 = vmax.f32 %v2400_v45, 0.0  ;;  %v2121_v46 = vadd.f32 %v6130_v44, %v2120_v25  ;;  %v2403_v56 = vadd.f32 %v6595_v34, %v2402_v54  ;;  %v4845_v30 = vpop.f32.mrb[175].mxu0  ;;  %v4885_v36 = vpop.f32.mrb[175].mxu1 }
 0x239   :  { %v6599_v26 = vadd.f32 %v2183_v49, %v6446_v18  ;;  %v6602_v57 = vadd.f32 %v2489_v33, %v6531_v48  ;;  %v2184_v17 = vmax.f32 %v2121_v46, 0.0  ;;  %v2490_v39 = vmax.f32 %v2403_v56, 0.0 }
 0x23b   :  { %v6605_v10 = vadd.f32 %v2184_v17, %v6455_v35  ;;  %v6608_v44 = vadd.f32 %v2490_v39, %v6537_v63  ;;  %v5142_v35 = vld [vmem:[%s7014_s3 + $0x8] sm:$0xff]  }
 0x23c   :  { %v2125_v13 = vpop.f32.mrb[176].mxu0  ;;  %v2407_v1 = vpop.f32.mrb[176].mxu1  ;;  %4403 = vmatpush3.bf16.msra.mxu1 %v5142_v35 }
 0x23d   :  { %v2126_v18 = vadd.f32 %v6595_v34, %v2125_v13  ;;  %v2408_v22 = vadd.f32 %v6595_v34, %v2407_v1  ;;  %v4848_v48 = vpop.f32.mrb[177].mxu0  ;;  %v4888_v20 = vpop.f32.mrb[177].mxu1 }
 0x23e   :  { %v2128_v41 = vpop.f32.mrb[178].mxu0  ;;  %v2410_v63 = vpop.f32.mrb[178].mxu1 }
 0x23f   :  { %v2185_v27 = vmax.f32 %v2126_v18, 0.0  ;;  %v2491_v14 = vmax.f32 %v2408_v22, 0.0  ;;  %v2129_v55 = vadd.f32 %v6595_v34, %v2128_v41  ;;  %v2411_v38 = vadd.f32 %v6595_v34, %v2410_v63  ;;  %v4849_v50 = vpop.f32.mrb[179].mxu0  ;;  %v4889_v29 = vpop.f32.mrb[179].mxu1 }
 0x241   :  { %v6621_v60 = vadd.f32 %v2185_v27, %v6468_v53  ;;  %v6624_v42 = vadd.f32 %v2491_v14, %v6546_v31  ;;  %v2186_v61 = vmax.f32 %v2129_v55, 0.0  ;;  %v2492_v11 = vmax.f32 %v2411_v38, 0.0  ;;  %v5143_v31 = vld [vmem:[%s7014_s3 + $0x50] sm:$0xff]  }
 0x242   :  { %4404 = vmatprep.subr.bf16.mxu1 %v5143_v31 }
 0x243   :  { %v6627_v2 = vadd.f32 %v2186_v61, %v6477_v62  ;;  %v6630_v6 = vadd.f32 %v2492_v11, %v6549_v51  ;;  %v5144_v62 = vld [vmem:[%s7014_s3 + $0x10] sm:$0xff]  }
 0x244   :  { %v2133_v43 = vpop.f32.mrb[180].mxu0  ;;  %v2415_v4 = vpop.f32.mrb[180].mxu1  ;;  %4405 = vmatpush3.bf16.msra.mxu1 %v5144_v62 }
 0x245   :  { %v2134_v45 = vadd.f32 %v6595_v34, %v2133_v43  ;;  %v2416_v8 = vadd.f32 %v6595_v34, %v2415_v4  ;;  %v4852_v5 = vpop.f32.mrb[181].mxu0  ;;  %v4892_v53 = vpop.f32.mrb[181].mxu1 }
 0x246   :  { %v2136_v25 = vpop.f32.mrb[182].mxu0  ;;  %v2418_v54 = vpop.f32.mrb[182].mxu1 }
 0x247   :  { %v2187_v51 = vmax.f32 %v2134_v45, 0.0  ;;  %v2493_v49 = vmax.f32 %v2416_v8, 0.0  ;;  %v2137_v33 = vadd.f32 %v6595_v34, %v2136_v25  ;;  %v2419_v46 = vadd.f32 %v6595_v34, %v2418_v54  ;;  %v4853_v56 = vpop.f32.mrb[183].mxu0  ;;  %v4893_v30 = vpop.f32.mrb[183].mxu1  ;;  %v5148_v25 = vld [vmem:[%s7014_s3 + $0x20] sm:$0xff]  }
 0x248   :  { %v5149_v30 = vld [vmem:[%s7014_s3 + $0x68] sm:$0xff]  }
 0x249   :  { %v6643_v36 = vadd.f32 %v2187_v51, %v6486_v7  ;;  %v6646_v17 = vadd.f32 %v2493_v49, %v6556_v59  ;;  %v2188_v39 = vmax.f32 %v2137_v33, 0.0  ;;  %v2494_v21 = vmax.f32 %v2419_v46, 0.0 }
 0x24b   :  { %v6649_v13 = vadd.f32 %v2188_v39, %v6489_v32  ;;  %v6652_v1 = vadd.f32 %v2494_v21, %v6562_v28 }
 0x24c   :  { %v2141_v18 = vpop.f32.mrb[184].mxu0  ;;  %v2423_v22 = vpop.f32.mrb[184].mxu1 }
 0x24d   :  { %v2142_v48 = vadd.f32 %v6595_v34, %v2141_v18  ;;  %v2424_v20 = vadd.f32 %v6595_v34, %v2423_v22  ;;  %v4856_v35 = vpop.f32.mrb[185].mxu0  ;;  %v4896_v7 = vpop.f32.mrb[185].mxu1 }
 0x24e   :  { %v2144_v41 = vpop.f32.mrb[186].mxu0  ;;  %v2426_v63 = vpop.f32.mrb[186].mxu1 }
 0x24f   :  { %v2189_v59 = vmax.f32 %v2142_v48, 0.0  ;;  %v2495_v27 = vmax.f32 %v2424_v20, 0.0  ;;  %v2145_v14 = vadd.f32 %v6595_v34, %v2144_v41  ;;  %v2427_v32 = vadd.f32 %v6595_v34, %v2426_v63  ;;  %v4857_v55 = vpop.f32.mrb[187].mxu0  ;;  %v4897_v38 = vpop.f32.mrb[187].mxu1 }
 0x251   :  { %v6659_v28 = vadd.f32 %v2189_v59, %v6496_v47  ;;  %v6662_v50 = vadd.f32 %v2495_v27, %v6578_v19  ;;  %v2190_v29 = vmax.f32 %v2145_v14, 0.0  ;;  %v2496_v61 = vmax.f32 %v2427_v32, 0.0  ;;  %v5145_v19 = vld [vmem:[%s7014_s3 + $0x58] sm:$0xff]  }
 0x252   :  { %4406 = vmatprep.subr.bf16.mxu1 %v5145_v19 }
 0x253   :  { %v6665_v11 = vadd.f32 %v2190_v29, %v6502_v40  ;;  %v6668_v43 = vadd.f32 %v2496_v61, %v6584_v9  ;;  %v5146_v40 = vld [vmem:[%s7014_s3 + $0x18] sm:$0xff]   ;;  %v5147_v9 = vld [vmem:[%s7014_s3 + $0x60] sm:$0xff]  }
 0x254   :  { %v2149_v4 = vpop.f32.mrb[188].mxu0  ;;  %v2431_v45 = vpop.f32.mrb[188].mxu1  ;;  %4407 = vmatpush3.bf16.msra.mxu1 %v5146_v40 }
 0x255   :  { %v2150_v8 = vadd.f32 %v6595_v34, %v2149_v4  ;;  %v2432_v5 = vadd.f32 %v6595_v34, %v2431_v45  ;;  %v4860_v53 = vpop.f32.mrb[189].mxu0  ;;  %v4900_v47 = vpop.f32.mrb[189].mxu1  ;;  %4408 = vmatprep.subr.bf16.mxu1 %v5147_v9 }
 0x256   :  { %v2152_v31 = vpop.f32.mrb[190].mxu0  ;;  %v2434_v62 = vpop.f32.mrb[190].mxu1 }
 0x257   :  { %v2191_v54 = vmax.f32 %v2150_v8, 0.0  ;;  %v2497_v51 = vmax.f32 %v2432_v5, 0.0  ;;  %v2153_v49 = vadd.f32 %v6595_v34, %v2152_v31  ;;  %v2435_v33 = vadd.f32 %v6595_v34, %v2434_v62  ;;  %v4861_v46 = vpop.f32.mrb[191].mxu0  ;;  %v4901_v56 = vpop.f32.mrb[191].mxu1 }
 0x258   :  { %4409 = vmatpush3.bf16.msra.mxu1 %v5148_v25  ;;  %v5150_v46 = vld [vmem:[%s7014_s3 + $0x28] sm:$0xff]  }
 0x259   :  { %v6690_v39 = vadd.f32 %v2191_v54, %v6512_v3  ;;  %v6693_v21 = vadd.f32 %v2497_v51, %v6599_v26  ;;  %v2192_v18 = vmax.f32 %v2153_v49, 0.0  ;;  %v2498_v22 = vmax.f32 %v2435_v33, 0.0  ;;  %4410 = vmatprep.subr.bf16.mxu1 %v5149_v30 }
 0x25b   :  { %v6696_v48 = vadd.f32 %v2192_v18, %v6518_v58  ;;  %v6699_v20 = vadd.f32 %v2498_v22, %v6605_v10 }
 0x25c   :  { %v2157_v35 = vpop.f32.mrb[192].mxu0  ;;  %v2439_v7 = vpop.f32.mrb[192].mxu1  ;;  %4411 = vmatpush3.bf16.msra.mxu1 %v5150_v46 }
 0x25d   :  { %v2158_v41 = vadd.f32 %v6595_v34, %v2157_v35  ;;  %v2440_v3 = vadd.f32 %v6595_v34, %v2439_v7  ;;  %v4864_v63 = vpop.f32.mrb[193].mxu0  ;;  %v4904_v59 = vpop.f32.mrb[193].mxu1 }
 0x25e   :  { %v2160_v26 = vpop.f32.mrb[194].mxu0  ;;  %v2442_v27 = vpop.f32.mrb[194].mxu1 }
 0x25f   :  { %v2193_v14 = vmax.f32 %v2158_v41, 0.0  ;;  %v2499_v32 = vmax.f32 %v2440_v3, 0.0  ;;  %v2161_v58 = vadd.f32 %v6595_v34, %v2160_v26  ;;  %v2443_v55 = vadd.f32 %v6595_v34, %v2442_v27  ;;  %v4865_v10 = vpop.f32.mrb[195].mxu0  ;;  %v4905_v38 = vpop.f32.mrb[195].mxu1 }
 0x261   :  { %v6706_v29 = vadd.f32 %v2193_v14, %v6528_v37  ;;  %v6709_v61 = vadd.f32 %v2499_v32, %v6621_v60  ;;  %v2194_v4 = vmax.f32 %v2161_v58, 0.0  ;;  %v2500_v45 = vmax.f32 %v2443_v55, 0.0  ;;  %v5151_v14 = vld [vmem:[%s7014_s3 + $0x70] sm:$0xff]  }
 0x262   :  { %v5152_v32 = vld [vmem:[%s7014_s3 + $0x30] sm:$0xff]   ;;  %4412 = vmatprep.subr.bf16.mxu1 %v5151_v14  ;;  %v5153_v14 = vld [vmem:[%s7014_s3 + $0x78] sm:$0xff]  }
 0x263   :  { %v6712_v8 = vadd.f32 %v2194_v4, %v6534_v24  ;;  %v6715_v5 = vadd.f32 %v2500_v45, %v6627_v2  ;;  %4413 = vmatpush3.bf16.msra.mxu1 %v5152_v32 }
 0x264   :  { %v2165_v53 = vpop.f32.mrb[196].mxu0  ;;  %v2447_v47 = vpop.f32.mrb[196].mxu1  ;;  %4414 = vmatprep.subr.bf16.mxu1 %v5153_v14 }
 0x265   :  { %v2166_v19 = vadd.f32 %v6595_v34, %v2165_v53  ;;  %v2448_v40 = vadd.f32 %v6595_v34, %v2447_v47  ;;  %v4868_v9 = vpop.f32.mrb[197].mxu0  ;;  %v4908_v37 = vpop.f32.mrb[197].mxu1 }
 0x266   :  { %v2168_v31 = vpop.f32.mrb[198].mxu0  ;;  %v2450_v62 = vpop.f32.mrb[198].mxu1 }
 0x267   :  { %v2195_v60 = vmax.f32 %v2166_v19, 0.0  ;;  %v2501_v25 = vmax.f32 %v2448_v40, 0.0  ;;  %v2451_v54 = vadd.f32 %v6595_v34, %v2450_v62  ;;  %v4869_v51 = vpop.f32.mrb[199].mxu0  ;;  %v4909_v24 = vpop.f32.mrb[199].mxu1 }
 0x269   :  { %v6721_v49 = vadd.f32 %v2195_v60, %v6543_v12  ;;  %v6724_v2 = vadd.f32 %v2501_v25, %v6643_v36  ;;  %v2502_v33 = vmax.f32 %v2451_v54, 0.0 }
 0x26b   :  { %v6730_v56 = vadd.f32 %v2502_v33, %v6649_v13 }
 0x26c   :  { %v2455_v30 = vpop.f32.mrb[200].mxu1  ;;  %v2697_v18 = vpop.f32.mrb[200].mxu0 }
 0x26d   :  { %v2456_v22 = vadd.f32 %v6595_v34, %v2455_v30  ;;  %v2698_v35 = vadd.f32 %v6595_v34, %v2697_v18  ;;  %v4912_v12 = vpop.f32.mrb[201].mxu1  ;;  %v4932_v7 = vpop.f32.mrb[201].mxu0 }
 0x26e   :  { %v2458_v41 = vpop.f32.mrb[202].mxu1  ;;  %v2700_v36 = vpop.f32.mrb[202].mxu0 }
 0x26f   :  { %v2503_v3 = vmax.f32 %v2456_v22, 0.0  ;;  %v2799_v63 = vmax.f32 %v2698_v35, 0.0  ;;  %v2459_v59 = vadd.f32 %v6595_v34, %v2458_v41  ;;  %v2701_v26 = vadd.f32 %v6595_v34, %v2700_v36  ;;  %v4933_v27 = vpop.f32.mrb[203].mxu0  ;;  %v4913_v13 = vpop.f32.mrb[203].mxu1 }
 0x271   :  { %v6743_v58 = vadd.f32 %v2503_v3, %v6659_v28  ;;  %v2824_v55 = vadd.f32 %v2799_v63, %v6559_v15  ;;  %v2504_v10 = vmax.f32 %v2459_v59, 0.0  ;;  %v2800_v38 = vmax.f32 %v2701_v26, 0.0 }
 0x273   :  { %v2849_v4 = vpack.c.bf16 %v2824_v55, %v2824_v55  ;;  %v6747_v45 = vadd.f32 %v2504_v10, %v6665_v11  ;;  %v2825_v53 = vadd.f32 %v2800_v38, %v6565_v23 }
 0x274   :  { %v2463_v47 = vpop.f32.mrb[204].mxu1  ;;  %v2705_v19 = vpop.f32.mrb[204].mxu0 }
 0x275   :  { %v2464_v40 = vadd.f32 %v6595_v34, %v2463_v47  ;;  %v2706_v28 = vadd.f32 %v6595_v34, %v2705_v19  ;;  %v4916_v9 = vpop.f32.mrb[205].mxu1  ;;  %v4936_v37 = vpop.f32.mrb[205].mxu0  ;;  %v4247_v15 = vpack.c.bf16 %v2825_v53, %v2825_v53  ;;  %2851 = vst.msk [vmem:[#allocation2] sm:$0xf] %vm2850_vm4, %v2849_v4 }
 0x276   :  { %v2466_v31 = vpop.f32.mrb[206].mxu1  ;;  %v2708_v62 = vpop.f32.mrb[206].mxu0 }
 0x277   :  { %v2505_v60 = vmax.f32 %v2464_v40, 0.0  ;;  %v2801_v25 = vmax.f32 %v2706_v28, 0.0  ;;  %v2467_v11 = vadd.f32 %v6595_v34, %v2466_v31  ;;  %v2709_v23 = vadd.f32 %v6595_v34, %v2708_v62  ;;  %2856 = vrot.lane.b32.xlu0 %v4247_v15, %s5210_s10  ;;  %v4937_v54 = vpop.f32.mrb[207].mxu0  ;;  %v4917_v51 = vpop.f32.mrb[207].mxu1  ;;  %v5154_v28 = vld [vmem:[%s7014_s3 + $0x38] sm:$0xff]  }
 0x278   :  { %4415 = vmatpush3.bf16.msra.mxu1 %v5154_v28 }
 0x279   :  { %v6757_v24 = vadd.f32 %v2505_v60, %v6690_v39  ;;  %v2506_v33 = vmax.f32 %v2467_v11, 0.0  ;;  %v2802_v46 = vmax.f32 %v2709_v23, 0.0  ;;  %v2826_v30 = vadd.f32 %v2801_v25, %v6581_v52 }
 0x27b   :  { %v6761_v18 = vadd.f32 %v2506_v33, %v6696_v48  ;;  %v2827_v22 = vadd.f32 %v2802_v46, %v6587_v16  ;;  %v4248_v35 = vpack.c.bf16 %v2826_v30, %v2826_v30 }
 0x27c   :  { %v2471_v12 = vpop.f32.mrb[208].mxu1  ;;  %v2713_v7 = vpop.f32.mrb[208].mxu0 }
 0x27d   :  { %v2472_v41 = vadd.f32 %v6595_v34, %v2471_v12  ;;  %v2714_v36 = vadd.f32 %v6595_v34, %v2713_v7  ;;  %v4920_v3 = vpop.f32.mrb[209].mxu1  ;;  %2865 = vrot.lane.b32.xlu1 %v4248_v35, %s5211_s11  ;;  %v4940_v39 = vpop.f32.mrb[209].mxu0  ;;  %v4249_v23 = vpack.c.bf16 %v2827_v22, %v2827_v22 }
 0x27e   :  { %v2474_v63 = vpop.f32.mrb[210].mxu1  ;;  %v2716_v59 = vpop.f32.mrb[210].mxu0 }
 0x27f   :  { %v2507_v52 = vmax.f32 %v2472_v41, 0.0  ;;  %v2803_v26 = vmax.f32 %v2714_v36, 0.0  ;;  %v2475_v48 = vadd.f32 %v6595_v34, %v2474_v63  ;;  %v2717_v16 = vadd.f32 %v6595_v34, %v2716_v59  ;;  %v4941_v27 = vpop.f32.mrb[211].mxu0  ;;  %v4921_v13 = vpop.f32.mrb[211].mxu1 }
 0x281   :  { %v6773_v32 = vadd.f32 %v2507_v52, %v6706_v29  ;;  %v2828_v55 = vadd.f32 %v2803_v26, %v6602_v57  ;;  %v2508_v10 = vmax.f32 %v2475_v48, 0.0  ;;  %v2804_v38 = vmax.f32 %v2717_v16, 0.0 }
 0x283   :  { %v2879_v4 = vpack.c.bf16 %v2828_v55, %v2828_v55  ;;  %v6777_v53 = vadd.f32 %v2508_v10, %v6712_v8  ;;  %v2829_v47 = vadd.f32 %v2804_v38, %v6608_v44 }
 0x284   :  { %v2479_v19 = vpop.f32.mrb[212].mxu1  ;;  %v2721_v40 = vpop.f32.mrb[212].mxu0 }
 0x285   :  { %v4250_v9 = vpack.c.bf16 %v2829_v47, %v2829_v47  ;;  %v2480_v29 = vadd.f32 %v6595_v34, %v2479_v19  ;;  %v2722_v57 = vadd.f32 %v6595_v34, %v2721_v40  ;;  %v4944_v37 = vpop.f32.mrb[213].mxu0  ;;  %2880 = vst.msk [vmem:[#allocation2 + $0x4] sm:$0xf] %vm2850_vm4, %v2879_v4  ;;  %v4924_v15 = vpop.f32.mrb[213].mxu1 }
 0x286   :  { %v2724_v31 = vpop.f32.mrb[214].mxu0  ;;  %v2482_v8 = vpop.f32.mrb[214].mxu1 }
 0x287   :  { %v2509_v62 = vmax.f32 %v2480_v29, 0.0  ;;  %v2805_v44 = vmax.f32 %v2722_v57, 0.0  ;;  %v2725_v60 = vadd.f32 %v6595_v34, %v2724_v31  ;;  %2885 = vrot.lane.b32.xlu0 %v4250_v9, %s5210_s10  ;;  %v4945_v25 = vpop.f32.mrb[215].mxu0  ;;  %v4925_v11 = vpop.f32.mrb[215].mxu1 }
 0x289   :  { %v6789_v54 = vadd.f32 %v2509_v62, %v6721_v49  ;;  %v2830_v51 = vadd.f32 %v2805_v44, %v6624_v42  ;;  %v2806_v33 = vmax.f32 %v2725_v60, 0.0  ;;  %v5157_v49 = vld [vmem:[%s7014_s3 + $0xc0] sm:$0xff]  }
 0x28a   :  { %4422 = vmatprep.subr.bf16.mxu1 %v5157_v49 }
 0x28b   :  { %v4251_v46 = vpack.c.bf16 %v2830_v51, %v2830_v51  ;;  %v2831_v30 = vadd.f32 %v2806_v33, %v6630_v6  ;;  %2874 = vrot.lane.b32.xlu0 %v4249_v23, %s5212_s16 }
 0x28c   :  { %v2729_v35 = vpop.f32.mrb[216].mxu0 }
 0x28d   :  { %v2730_v12 = vadd.f32 %v6595_v34, %v2729_v35  ;;  %2893 = vrot.lane.b32.xlu1 %v4251_v46, %s5211_s11  ;;  %v4948_v7 = vpop.f32.mrb[217].mxu0  ;;  %v4252_v41 = vpack.c.bf16 %v2831_v30, %v2831_v30 }
 0x28e   :  { %v2732_v22 = vpop.f32.mrb[218].mxu0 }
 0x28f   :  { %v2807_v42 = vmax.f32 %v2730_v12, 0.0  ;;  %v2733_v36 = vadd.f32 %v6595_v34, %v2732_v22  ;;  %v4949_v3 = vpop.f32.mrb[219].mxu0 }
 0x291   :  { %v2832_v6 = vadd.f32 %v2807_v42, %v6646_v17  ;;  %v2808_v39 = vmax.f32 %v2733_v36, 0.0  ;;  %2901 = vrot.lane.b32.xlu1 %v4252_v41, %s5212_s16 }
 0x293   :  { %v2905_v63 = vpack.c.bf16 %v2832_v6, %v2832_v6  ;;  %v2833_v59 = vadd.f32 %v2808_v39, %v6652_v1 }
 0x294   :  { %v2737_v52 = vpop.f32.mrb[220].mxu0 }
 0x295   :  { %v4253_v26 = vpack.c.bf16 %v2833_v59, %v2833_v59  ;;  %v2738_v48 = vadd.f32 %v6595_v34, %v2737_v52  ;;  %v4952_v16 = vpop.f32.mrb[221].mxu0  ;;  %2906 = vst.msk [vmem:[#allocation2 + $0x8] sm:$0xf] %vm2850_vm4, %v2905_v63 }
 0x296   :  { %v2740_v27 = vpop.f32.mrb[222].mxu0 }
 0x297   :  { %v2809_v13 = vmax.f32 %v2738_v48, 0.0  ;;  %v2741_v14 = vadd.f32 %v6595_v34, %v2740_v27  ;;  %2911 = vrot.lane.b32.xlu0 %v4253_v26, %s5210_s10  ;;  %v4953_v17 = vpop.f32.mrb[223].mxu0 }
 0x299   :  { %v2834_v55 = vadd.f32 %v2809_v13, %v6662_v50  ;;  %v2810_v10 = vmax.f32 %v2741_v14, 0.0 }
 0x29b   :  { %v4254_v38 = vpack.c.bf16 %v2834_v55, %v2834_v55  ;;  %v2835_v1 = vadd.f32 %v2810_v10, %v6668_v43 }
 0x29c   :  { %v2745_v4 = vpop.f32.mrb[224].mxu0 }
 0x29d   :  { %v2746_v47 = vadd.f32 %v6595_v34, %v2745_v4  ;;  %2919 = vrot.lane.b32.xlu0 %v4254_v38, %s5211_s11  ;;  %v4956_v19 = vpop.f32.mrb[225].mxu0  ;;  %v4255_v28 = vpack.c.bf16 %v2835_v1, %v2835_v1 }
 0x29e   :  { %v2748_v40 = vpop.f32.mrb[226].mxu0 }
 0x29f   :  { %v2811_v9 = vmax.f32 %v2746_v47, 0.0  ;;  %v2749_v29 = vadd.f32 %v6595_v34, %v2748_v40  ;;  %v4957_v57 = vpop.f32.mrb[227].mxu0 }
 0x2a1   :  { %v2836_v37 = vadd.f32 %v2811_v9, %v6693_v21  ;;  %v2812_v15 = vmax.f32 %v2749_v29, 0.0  ;;  %2927 = vrot.lane.b32.xlu0 %v4255_v28, %s5212_s16 }
 0x2a3   :  { %v2931_v50 = vpack.c.bf16 %v2836_v37, %v2836_v37  ;;  %v2837_v43 = vadd.f32 %v2812_v15, %v6699_v20 }
 0x2a4   :  { %v2753_v31 = vpop.f32.mrb[228].mxu0 }
 0x2a5   :  { %v4256_v8 = vpack.c.bf16 %v2837_v43, %v2837_v43  ;;  %v2754_v62 = vadd.f32 %v6595_v34, %v2753_v31  ;;  %v4960_v44 = vpop.f32.mrb[229].mxu0  ;;  %2932 = vst.msk [vmem:[#allocation2 + $0xc] sm:$0xf] %vm2850_vm4, %v2931_v50 }
 0x2a6   :  { %v2756_v60 = vpop.f32.mrb[230].mxu0 }
 0x2a7   :  { %v2813_v25 = vmax.f32 %v2754_v62, 0.0  ;;  %v2757_v11 = vadd.f32 %v6595_v34, %v2756_v60  ;;  %2937 = vrot.lane.b32.xlu1 %v4256_v8, %s5210_s10  ;;  %v4961_v21 = vpop.f32.mrb[231].mxu0 }
 0x2a9   :  { %v2838_v23 = vadd.f32 %v2813_v25, %v6709_v61  ;;  %v2814_v51 = vmax.f32 %v2757_v11, 0.0 }
 0x2ab   :  { %v4257_v33 = vpack.c.bf16 %v2838_v23, %v2838_v23  ;;  %v2839_v20 = vadd.f32 %v2814_v51, %v6715_v5 }
 0x2ac   :  { %v2761_v46 = vpop.f32.mrb[232].mxu0 }
 0x2ad   :  { %v2762_v30 = vadd.f32 %v6595_v34, %v2761_v46  ;;  %2945 = vrot.lane.b32.xlu1 %v4257_v33, %s5211_s11  ;;  %v4964_v35 = vpop.f32.mrb[233].mxu0  ;;  %v4258_v7 = vpack.c.bf16 %v2839_v20, %v2839_v20 }
 0x2ae   :  { %v2764_v12 = vpop.f32.mrb[234].mxu0 }
 0x2af   :  { %v2815_v49 = vmax.f32 %v2762_v30, 0.0  ;;  %v2765_v22 = vadd.f32 %v6595_v34, %v2764_v12  ;;  %v4965_v41 = vpop.f32.mrb[235].mxu0 }
 0x2b0   :  { %v5159_v41 = vld [vmem:[%s7014_s3 + $0xc8] sm:$0xff]  }
 0x2b1   :  { %v2840_v42 = vadd.f32 %v2815_v49, %v6724_v2  ;;  %v2816_v36 = vmax.f32 %v2765_v22, 0.0  ;;  %2953 = vrot.lane.b32.xlu1 %v4258_v7, %s5212_s16  ;;  %v5158_v22 = vld [vmem:[%s7014_s3 + $0x80] sm:$0xff]  }
 0x2b3   :  { %v2957_v61 = vpack.c.bf16 %v2840_v42, %v2840_v42  ;;  %v2841_v5 = vadd.f32 %v2816_v36, %v6730_v56  ;;  %v5160_v36 = vld [vmem:[%s7014_s3 + $0x88] sm:$0xff]  }
 0x2b4   :  { %v2769_v3 = vpop.f32.mrb[236].mxu0 }
 0x2b5   :  { %v4259_v6 = vpack.c.bf16 %v2841_v5, %v2841_v5  ;;  %v2770_v39 = vadd.f32 %v6595_v34, %v2769_v3  ;;  %v4968_v63 = vpop.f32.mrb[237].mxu0  ;;  %2958 = vst.msk [vmem:[#allocation2 + $0x10] sm:$0xf] %vm2850_vm4, %v2957_v61  ;;  %v5161_v61 = vld [vmem:[%s7014_s3 + $0xd0] sm:$0xff]  }
 0x2b6   :  { %v2772_v59 = vpop.f32.mrb[238].mxu0  ;;  %v5162_v3 = vld [vmem:[%s7014_s3 + $0x90] sm:$0xff]  }
 0x2b7   :  { %v2817_v52 = vmax.f32 %v2770_v39, 0.0  ;;  %v2773_v26 = vadd.f32 %v6595_v34, %v2772_v59  ;;  %2963 = vrot.lane.b32.xlu0 %v4259_v6, %s5210_s10  ;;  %v4969_v2 = vpop.f32.mrb[239].mxu0  ;;  %v5163_v6 = vld [vmem:[%s7014_s3 + $0xd8] sm:$0xff]   ;;  %v5165_v59 = vld [vmem:[%s7014_s3 + $0xe0] sm:$0xff]  }
 0x2b8   :  { %v5164_v39 = vld [vmem:[%s7014_s3 + $0x98] sm:$0xff]  }
 0x2b9   :  { %v2842_v48 = vadd.f32 %v2817_v52, %v6743_v58  ;;  %v2818_v16 = vmax.f32 %v2773_v26, 0.0  ;;  %v5166_v52 = vld [vmem:[%s7014_s3 + $0xa0] sm:$0xff]   ;;  %v5167_v26 = vld [vmem:[%s7014_s3 + $0xe8] sm:$0xff]  }
 0x2bb   :  { %v4260_v27 = vpack.c.bf16 %v2842_v48, %v2842_v48  ;;  %v2843_v56 = vadd.f32 %v2818_v16, %v6747_v45  ;;  %v5168_v48 = vld [vmem:[%s7014_s3 + $0xa8] sm:$0xff]   ;;  %v5169_v16 = vld [vmem:[%s7014_s3 + $0xf0] sm:$0xff]  }
 0x2bc   :  { %v2777_v13 = vpop.f32.mrb[240].mxu0 }
 0x2bd   :  { %v2778_v14 = vadd.f32 %v6595_v34, %v2777_v13  ;;  %2971 = vrot.lane.b32.xlu0 %v4260_v27, %s5211_s11  ;;  %v4972_v17 = vpop.f32.mrb[241].mxu0  ;;  %v4261_v10 = vpack.c.bf16 %v2843_v56, %v2843_v56  ;;  %v5170_v56 = vld [vmem:[%s7014_s3 + $0xb0] sm:$0xff]   ;;  %v5171_v13 = vld [vmem:[%s7014_s3 + $0xf8] sm:$0xff]  }
 0x2be   :  { %v2780_v55 = vpop.f32.mrb[242].mxu0 }
 0x2bf   :  { %v2819_v38 = vmax.f32 %v2778_v14, 0.0  ;;  %v2781_v1 = vadd.f32 %v6595_v34, %v2780_v55  ;;  %v4973_v4 = vpop.f32.mrb[243].mxu0  ;;  %v5172_v14 = vld [vmem:[%s7014_s3 + $0xb8] sm:$0xff]   ;;  %v5175_v55 = vld [vmem:[%s7014_s3 + $0x140] sm:$0xff]  }
 0x2c0   :  { %v5176_v4 = vld [vmem:[%s7014_s3 + $0x100] sm:$0xff]  }
 0x2c1   :  { %v2844_v47 = vadd.f32 %v2819_v38, %v6757_v24  ;;  %v2820_v19 = vmax.f32 %v2781_v1, 0.0  ;;  %2979 = vrot.lane.b32.xlu0 %v4261_v10, %s5212_s16 }
 0x2c3   :  { %v2983_v58 = vpack.c.bf16 %v2844_v47, %v2844_v47  ;;  %v2845_v45 = vadd.f32 %v2820_v19, %v6761_v18  ;;  %v5177_v47 = vld [vmem:[%s7014_s3 + $0x148] sm:$0xff]  }
 0x2c4   :  { %v2785_v40 = vpop.f32.mrb[244].mxu0 }
 0x2c5   :  { %v4262_v28 = vpack.c.bf16 %v2845_v45, %v2845_v45  ;;  %v2786_v9 = vadd.f32 %v6595_v34, %v2785_v40  ;;  %v4976_v29 = vpop.f32.mrb[245].mxu0  ;;  %2984 = vst.msk [vmem:[#allocation2 + $0x14] sm:$0xf] %vm2850_vm4, %v2983_v58  ;;  %v5178_v58 = vld [vmem:[%s7014_s3 + $0x108] sm:$0xff]   ;;  %v5179_v45 = vld [vmem:[%s7014_s3 + $0x150] sm:$0xff]  }
 0x2c6   :  { %v2788_v57 = vpop.f32.mrb[246].mxu0  ;;  %v5182_v29 = vld [vmem:[%s7014_s3 + $0x118] sm:$0xff]  }
 0x2c7   :  { %v2821_v37 = vmax.f32 %v2786_v9, 0.0  ;;  %v2789_v15 = vadd.f32 %v6595_v34, %v2788_v57  ;;  %2989 = vrot.lane.b32.xlu1 %v4262_v28, %s5210_s10  ;;  %v4977_v24 = vpop.f32.mrb[247].mxu0  ;;  %v5180_v28 = vld [vmem:[%s7014_s3 + $0x110] sm:$0xff]   ;;  %v5181_v9 = vld [vmem:[%s7014_s3 + $0x158] sm:$0xff]  }
 0x2c8   :  { %v5185_v24 = vld [vmem:[%s7014_s3 + $0x168] sm:$0xff]  }
 0x2c9   :  { %v2846_v50 = vadd.f32 %v2821_v37, %v6773_v32  ;;  %v2822_v43 = vmax.f32 %v2789_v15, 0.0  ;;  %v5196_v32 = vld [vmem:[%s7015_s4] sm:$0xff]  }
 0x2ca   :  { %4991 = vmatpush3.bf16.msra.mxu0 %v5196_v32  ;;  %v5183_v37 = vld [vmem:[%s7014_s3 + $0x160] sm:$0xff]   ;;  %v5198_v32 = vld [vmem:[%s7015_s4 + $0x10] sm:$0xff]  }
 0x2cb   :  { %v4263_v31 = vpack.c.bf16 %v2846_v50, %v2846_v50  ;;  %v2847_v18 = vadd.f32 %v2822_v43, %v6777_v53  ;;  %4992 = vmatprep.subr.bf16.mxu0 %v5207_v0  ;;  %v5184_v15 = vld [vmem:[%s7014_s3 + $0x120] sm:$0xff]   ;;  %v5186_v43 = vld [vmem:[%s7014_s3 + $0x128] sm:$0xff]  }
 0x2cc   :  { %v2793_v8 = vpop.f32.mrb[248].mxu0 }
 0x2cd   :  { %v2794_v62 = vadd.f32 %v6595_v34, %v2793_v8  ;;  %2997 = vrot.lane.b32.xlu1 %v4263_v31, %s5211_s11  ;;  %v4980_v44 = vpop.f32.mrb[249].mxu0  ;;  %v4264_v25 = vpack.c.bf16 %v2847_v18, %v2847_v18  ;;  %v5197_v34 = vld [vmem:[%s7015_s4 + $0x8] sm:$0xff]   ;;  %v5187_v31 = vld [vmem:[%s7014_s3 + $0x170] sm:$0xff]  }
 0x2ce   :  { %v2796_v60 = vpop.f32.mrb[250].mxu0  ;;  %4993 = vmatpush3.bf16.msra.mxu0 %v5197_v34  ;;  %v5188_v8 = vld [vmem:[%s7014_s3 + $0x130] sm:$0xff]   ;;  %v5190_v44 = vld [vmem:[%s7014_s3 + $0x138] sm:$0xff]  }
 0x2cf   :  { %v2823_v11 = vmax.f32 %v2794_v62, 0.0  ;;  %v4981_v21 = vpop.f32.mrb[251].mxu0  ;;  %4994 = vmatprep.subr.bf16.mxu0 %v5207_v0  ;;  %v5189_v62 = vld [vmem:[%s7014_s3 + $0x178] sm:$0xff]  }
 0x2d0   :  { %v5193_v21 = vld [vmem:[%s7014_s3 + $0x180] sm:$0xff]   ;;  %v5199_v34 = vld [vmem:[%s7015_s4 + $0x18] sm:$0xff]  }
 0x2d1   :  { %v2848_v23 = vadd.f32 %v2823_v11, %v6789_v54  ;;  %3005 = vrot.lane.b32.xlu1 %v4264_v25, %s5212_s16 }
 0x2d2   :  { %4995 = vmatpush3.bf16.msra.mxu0 %v5198_v32 }
 0x2d3   :  { %v3009_v51 = vpack.c.bf16 %v2848_v23, %v2848_v23  ;;  %v5194_v23 = vld [vmem:[%s7014_s3 + $0x188] sm:$0xff]   ;;  %4996 = vmatprep.subr.bf16.mxu0 %v5207_v0 }
 0x2d5   :  { %3010 = vst.msk [vmem:[#allocation2 + $0x18] sm:$0xf] %vm2850_vm4, %v3009_v51 }
 0x2d6   :  { %4997 = vmatpush3.bf16.msra.mxu0 %v5199_v34 }
 0x2d7   :  { %4998 = vmatprep.subr.bf16.mxu0 %v5207_v0 }
 0x2dc   :  { %v5195_v51 = vld [vmem:[#allocation2 + $0x18] ss:$0 sps:$4 sm:$0xff]  }
 0x2e9   :  { %v2857_v53 = vpop.permute.xlu0 %2856 }
 0x2ea   :  { %2860 = vst.msk [vmem:[#allocation2] sm:$0xf] %vm2859_vm5, %v2857_v53  ;;  %v5200_v53 = vld [vmem:[%s7015_s4 + $0x20] sm:$0xff]  }
 0x2eb   :  { %4999 = vmatpush3.bf16.msra.mxu0 %v5200_v53 }
 0x2ec   :  { %5000 = vmatprep.subr.bf16.mxu0 %v5207_v0 }
 0x2ef   :  { %v2866_v54 = vpop.permute.xlu1 %2865 }
 0x2f0   :  { %2869 = vst.msk [vmem:[#allocation2] sm:$0xf] %vm2868_vm6, %v2866_v54  ;;  %v5201_v54 = vld [vmem:[%s7015_s4 + $0x28] sm:$0xff]  }
 0x2f1   :  { %5001 = vmatpush3.bf16.msra.mxu0 %v5201_v54 }
 0x2f2   :  { %5002 = vmatprep.subr.bf16.mxu0 %v5207_v0 }
 0x2f9   :  { %v2886_v33 = vpop.permute.xlu0 %2885 }
 0x2fa   :  { %2888 = vst.msk [vmem:[#allocation2 + $0x4] sm:$0xf] %vm2859_vm5, %v2886_v33  ;;  %v5202_v33 = vld [vmem:[%s7015_s4 + $0x30] sm:$0xff]  }
 0x2fb   :  { %5003 = vmatpush3.bf16.msra.mxu0 %v5202_v33 }
 0x2fc   :  { %5004 = vmatprep.subr.bf16.mxu0 %v5207_v0 }
 0x2fd   :  { %v2875_v20 = vpop.permute.xlu0 %2874 }
 0x2fe   :  { %2878 = vst.msk [vmem:[#allocation2] sm:$0xf] %vm2877_vm7, %v2875_v20  ;;  %v5203_v20 = vld [vmem:[%s7015_s4 + $0x38] sm:$0xff]  }
 0x2ff   :  { %v2894_v46 = vpop.permute.xlu1 %2893  ;;  %5005 = vmatpush3.bf16.msra.mxu0 %v5203_v20 }
 0x300   :  { %2896 = vst.msk [vmem:[#allocation2 + $0x4] sm:$0xf] %vm2868_vm6, %v2894_v46 }
 0x303   :  { %v2902_v30 = vpop.permute.xlu1 %2901 }
 0x304   :  { %2904 = vst.msk [vmem:[#allocation2 + $0x4] sm:$0xf] %vm2877_vm7, %v2902_v30 }
 0x309   :  { %v2912_v35 = vpop.permute.xlu0 %2911 }
 0x30a   :  { %2914 = vst.msk [vmem:[#allocation2 + $0x8] sm:$0xf] %vm2859_vm5, %v2912_v35 }
 0x30b   :  { %v3011_v12 = vld [vmem:[#allocation2] sm:$0xff] }
 0x30c   :  { %v4180_v7 = vcombine.low %v3011_v12, %v3011_v12  ;;  %v4181_v49 = vcombine.high %v3011_v12, %v3011_v12 }
 0x30e   :  { %3480 = vmatprep.mubr.bf16.mxu1 %v4181_v49  ;;  %v4179_v49 = vld [vmem:[%s7013_s2 + $0x1] ss:$0 sm:$0xff] }
 0x30f   :  { %3481 = vmatmul.mubr.bf16.vlgmr.msra.gmra.mrb[216].mxu1 %v4180_v7  ;;  %v2920_v42 = vpop.permute.xlu0 %2919 }
 0x310   :  { %2922 = vst.msk [vmem:[#allocation2 + $0x8] sm:$0xf] %vm2868_vm6, %v2920_v42  ;;  %4423 = vmatpush3.bf16.msra.mxu1 %v5158_v22 }
 0x311   :  { %4424 = vmatprep.subr.bf16.mxu1 %v5159_v41 }
 0x313   :  { %v2928_v5 = vpop.permute.xlu0 %2927 }
 0x314   :  { %2930 = vst.msk [vmem:[#allocation2 + $0x8] sm:$0xf] %vm2877_vm7, %v2928_v5  ;;  %4425 = vmatpush3.bf16.msra.mxu1 %v5160_v36 }
 0x315   :  { %4426 = vmatprep.subr.bf16.mxu1 %v5161_v61 }
 0x318   :  { %4427 = vmatpush3.bf16.msra.mxu1 %v5162_v3 }
 0x319   :  { %v2938_v63 = vpop.permute.xlu1 %2937  ;;  %4428 = vmatprep.subr.bf16.mxu1 %v5163_v6 }
 0x31a   :  { %2940 = vst.msk [vmem:[#allocation2 + $0xc] sm:$0xf] %vm2859_vm5, %v2938_v63 }
 0x31c   :  { %4429 = vmatpush3.bf16.msra.mxu1 %v5164_v39 }
 0x31d   :  { %4430 = vmatprep.subr.bf16.mxu1 %v5165_v59 }
 0x31f   :  { %v2946_v2 = vpop.permute.xlu1 %2945 }
 0x320   :  { %2948 = vst.msk [vmem:[#allocation2 + $0xc] sm:$0xf] %vm2868_vm6, %v2946_v2  ;;  %4431 = vmatpush3.bf16.msra.mxu1 %v5166_v52 }
 0x321   :  { %4432 = vmatprep.subr.bf16.mxu1 %v5167_v26 }
 0x323   :  { %v2954_v27 = vpop.permute.xlu1 %2953 }
 0x324   :  { %2956 = vst.msk [vmem:[#allocation2 + $0xc] sm:$0xf] %vm2877_vm7, %v2954_v27  ;;  %4433 = vmatpush3.bf16.msra.mxu1 %v5168_v48 }
 0x325   :  { %4434 = vmatprep.subr.bf16.mxu1 %v5169_v16 }
 0x328   :  { %4435 = vmatpush3.bf16.msra.mxu1 %v5170_v56 }
 0x329   :  { %v2964_v17 = vpop.permute.xlu0 %2963  ;;  %4436 = vmatprep.subr.bf16.mxu1 %v5171_v13 }
 0x32a   :  { %2966 = vst.msk [vmem:[#allocation2 + $0x10] sm:$0xf] %vm2859_vm5, %v2964_v17 }
 0x32b   :  { %v3012_v10 = vld [vmem:[#allocation2 + $0x8] sm:$0xff] }
 0x32c   :  { %4437 = vmatpush3.bf16.msra.mxu1 %v5172_v14  ;;  %v4182_v38 = vcombine.low %v3012_v10, %v3012_v10  ;;  %v4183_v1 = vcombine.high %v3012_v10, %v3012_v10  ;;  %v4238_v14 = vld [vmem:[%s7013_s2 + $0x2] ss:$0 sm:$0xff] }
 0x32d   :  { %4444 = vmatprep.subr.bf16.mxu1 %v5175_v55 }
 0x32e   :  { %3520 = vmatprep.mubr.bf16.mxu1 %v4183_v1 }
 0x32f   :  { %3521 = vmatmul.mubr.bf16.vlgmr.msra.gmra.mrb[220].mxu1 %v4182_v38  ;;  %v2972_v19 = vpop.permute.xlu0 %2971 }
 0x330   :  { %2974 = vst.msk [vmem:[#allocation2 + $0x10] sm:$0xf] %vm2868_vm6, %v2972_v19  ;;  %4445 = vmatpush3.bf16.msra.mxu1 %v5176_v4 }
 0x331   :  { %4446 = vmatprep.subr.bf16.mxu1 %v5177_v47 }
 0x333   :  { %v2980_v40 = vpop.permute.xlu0 %2979 }
 0x334   :  { %2982 = vst.msk [vmem:[#allocation2 + $0x10] sm:$0xf] %vm2877_vm7, %v2980_v40  ;;  %4447 = vmatpush3.bf16.msra.mxu1 %v5178_v58 }
 0x335   :  { %4448 = vmatprep.subr.bf16.mxu1 %v5179_v45 }
 0x338   :  { %4449 = vmatpush3.bf16.msra.mxu1 %v5180_v28 }
 0x339   :  { %v2990_v57 = vpop.permute.xlu1 %2989  ;;  %4450 = vmatprep.subr.bf16.mxu1 %v5181_v9 }
 0x33a   :  { %2992 = vst.msk [vmem:[#allocation2 + $0x14] sm:$0xf] %vm2859_vm5, %v2990_v57 }
 0x33c   :  { %4451 = vmatpush3.bf16.msra.mxu1 %v5182_v29 }
 0x33d   :  { %4452 = vmatprep.subr.bf16.mxu1 %v5183_v37 }
 0x33f   :  { %v2998_v50 = vpop.permute.xlu1 %2997 }
 0x340   :  { %3000 = vst.msk [vmem:[#allocation2 + $0x14] sm:$0xf] %vm2868_vm6, %v2998_v50  ;;  %4453 = vmatpush3.bf16.msra.mxu1 %v5184_v15 }
 0x341   :  { %4454 = vmatprep.subr.bf16.mxu1 %v5185_v24 }
 0x343   :  { %v3006_v18 = vpop.permute.xlu1 %3005 }
 0x344   :  { %3008 = vst.msk [vmem:[#allocation2 + $0x14] sm:$0xf] %vm2877_vm7, %v3006_v18  ;;  %4455 = vmatpush3.bf16.msra.mxu1 %v5186_v43 }
 0x345   :  { %4456 = vmatprep.subr.bf16.mxu1 %v5187_v31 }
 0x348   :  { %4457 = vmatpush3.bf16.msra.mxu1 %v5188_v8 }
 0x349   :  { %4458 = vmatprep.subr.bf16.mxu1 %v5189_v62 }
 0x34b   :  { %v3013_v60 = vld [vmem:[#allocation2 + $0x10] sm:$0xff] }
 0x34c   :  { %4459 = vmatpush3.bf16.msra.mxu1 %v5190_v44  ;;  %v4184_v25 = vcombine.low %v3013_v60, %v3013_v60  ;;  %v4185_v11 = vcombine.high %v3013_v60, %v3013_v60 }
 0x34d   :  { %4982 = vmatprep.subr.bf16.mxu1 %v5207_v0 }
 0x34e   :  { %3560 = vmatprep.mubr.bf16.mxu1 %v4185_v11 }
 0x34f   :  { %3561 = vmatmul.mubr.bf16.vlgmr.msra.gmra.mrb[224].mxu1 %v4184_v25 }
 0x350   :  { %4983 = vmatpush3.bf16.msra.mxu1 %v5193_v21  ;;  %4986 = vmatprep.mubr.msk.bf16.mxu1 %vm5209_vm2, %v5207_v0 }
 0x351   :  { %4984 = vmatprep.subr.bf16.mxu1 %v5207_v0 }
 0x354   :  { %4985 = vmatpush3.bf16.msra.mxu1 %v5194_v23 }
 0x357   :  { %4987 = vmatmul.mubr.msk.bf16.vlgmr.msra.gmra.mrb[228].mxu1 %vm3444_vm8, %v5195_v51 }
 0x3e2   :  { %v4416_v46 = vpop.f32.mrb[216].mxu1 }
 0x3e3   :  { %v4417_v30 = vpop.f32.mrb[217].mxu1 }
 0x3e4   :  { %v4418_v35 = vadd.f32 %v4417_v30, %v4416_v46  ;;  %v4419_v12 = vpop.f32.mrb[218].mxu1 }
 0x3e5   :  { %v4420_v7 = vpop.f32.mrb[219].mxu1 }
 0x3e6   :  { %v3483_v42 = vadd.f32 %v4418_v35, %v4179_v49 }
 0x402   :  { %v4438_v22 = vpop.f32.mrb[220].mxu1 }
 0x403   :  { %v4439_v41 = vpop.f32.mrb[221].mxu1 }
 0x404   :  { %v4440_v36 = vadd.f32 %v4439_v41, %v4438_v22  ;;  %v4441_v61 = vpop.f32.mrb[222].mxu1 }
 0x405   :  { %v4442_v0 = vpop.f32.mrb[223].mxu1 }
 0x406   :  { %v3523_v5 = vadd.f32 %v4440_v36, %v3483_v42 }
 0x422   :  { %v4460_v3 = vpop.f32.mrb[224].mxu1 }
 0x423   :  { %v4461_v6 = vpop.f32.mrb[225].mxu1 }
 0x424   :  { %v4462_v39 = vadd.f32 %v4461_v6, %v4460_v3  ;;  %v4463_v63 = vpop.f32.mrb[226].mxu1 }
 0x425   :  { %v4464_v59 = vpop.f32.mrb[227].mxu1 }
 0x426   :  { %v3563_v52 = vadd.f32 %v4462_v39, %v3523_v5 }
 0x42a   :  { %v3602_v26 = vpop.f32.mrb[228].mxu1 }
 0x42b   :  { %v3603_v2 = vadd.f32 %v3602_v26, %v3563_v52  ;;  %v4988_v48 = vpop.f32.mrb[229].mxu1 }
 0x42c   :  { %v3605_v16 = vpop.f32.mrb[230].mxu1 }
 0x42d   :  { %v3608_v27 = vmax.f32 %v3603_v2, 0.0  ;;  %v4989_v56 = vpop.f32.mrb[231].mxu1 }
 0x42f   :  { %v3609_v13 = vpack.c.bf16 %v3608_v27, %v3608_v27 }
 0x431   :  { %5007 = vmatmul.mubr.bf16.vlgmr.msra.gmra.mrb[252].mxu0 %v3609_v13 }
 0x504   :  { %v3713_v17 = vpop.f32.mrb[252].mxu0 }
 0x505   :  { %v3714_v55 = vadd.f32 %v4238_v14, %v3713_v17  ;;  %v5008_v10 = vpop.f32.mrb[253].mxu0 }
 0x506   :  { %v3716_v38 = vpop.f32.mrb[254].mxu0 }
 0x507   :  { %3719 = vst [vmem:[%s7016_s5] sm:$0xff] %v3714_v55  ;;  %v5009_v1 = vpop.f32.mrb[255].mxu0 }

</bundles_post_ra>
